<compile_context>
chip_gen: v7x
topology: tpu7x:2x2x1
jax: 0.10.0
libtpu: 0.0.40
codegen_flags: <defaults>
</compile_context>

<pallas_src>
import functools
import math

import jax
import jax.numpy as jnp
from jax.experimental import pallas as pl
from jax.experimental.pallas import tpu as pltpu

EMB_DIM = 64          # module default emb_dim
NHEAD = 2             # module default nhead
FF_DIM = 2048         # nn.TransformerEncoderLayer default dim_feedforward
LN_EPS = 1e-5         # nn.TransformerEncoderLayer default layer_norm_eps
NEG_MASK = -1e9       # additive mask value for padding


def _layer_norm(x, g, b):
    mu = jnp.mean(x, axis=-1, keepdims=True)
    var = jnp.mean((x - mu) ** 2, axis=-1, keepdims=True)
    return (x - mu) * jax.lax.rsqrt(var + LN_EPS) * g + b


def _encoder_kernel(nhead, vb, n,
                    x_ref, mask_ref,
                    w1_ref, b1_ref, w2_ref, b2_ref,
                    wq_ref, bq_ref, wk_ref, bk_ref, wv_ref, bv_ref,
                    wo_ref, bo_ref,
                    ln1g_ref, ln1b_ref,
                    wf1_ref, bf1_ref, wf2_ref, bf2_ref,
                    ln2g_ref, ln2b_ref,
                    o_ref):
    """One branch x Vb visits: pre-MLP -> post-LN TransformerEncoderLayer."""
    x = x_ref[0].astype(jnp.float32).reshape(vb * n, -1)      # (Vb*N, E)
    mask = mask_ref[0].astype(jnp.float32)                    # (Vb, 1, N) additive

    E = x.shape[-1]
    dh = E // nhead
    scale = 1.0 / math.sqrt(dh)

    # ---- Sequential: Linear(E,2E) -> Tanh -> Linear(2E,E) -> Dropout(identity) ----
    h = jnp.tanh(jnp.dot(x, w1_ref[0], preferred_element_type=jnp.float32) + b1_ref[0])
    h = jnp.dot(h, w2_ref[0], preferred_element_type=jnp.float32) + b2_ref[0]   # (Vb*N, E)

    # ---- Multi-head self-attention (additive src_mask) ----
    # Full-width (E,E) projections: 3 matmuls with 64-lane outputs instead of
    # 2 heads x 3 matmuls with 32-lane outputs.
    q = jnp.dot(h, wq_ref[0], preferred_element_type=jnp.float32) + bq_ref[0]
    k = jnp.dot(h, wk_ref[0], preferred_element_type=jnp.float32) + bk_ref[0]
    v = jnp.dot(h, wv_ref[0], preferred_element_type=jnp.float32) + bv_ref[0]

    # Merge (head, visit) into one batch axis: (H*Vb, N, Dh), head-major.
    def split_heads(t):
        t = t.reshape(vb, n, E)
        return jnp.concatenate(
            [t[..., hd * dh:(hd + 1) * dh] for hd in range(nhead)], axis=0)

    qh, kh, vh = split_heads(q), split_heads(k), split_heads(v)
    mask_b = jnp.concatenate([mask] * nhead, axis=0)           # (H*Vb, 1, N)

    s = jnp.einsum('bqd,bkd->bqk', qh, kh,
                   preferred_element_type=jnp.float32) * scale + mask_b
    s = s - jnp.max(s, axis=-1, keepdims=True)
    p = jnp.exp(s)
    p = p * pl.reciprocal(jnp.sum(p, axis=-1, keepdims=True), approx=True)
    ctx = jnp.einsum('bqk,bkd->bqd', p, vh,
                     preferred_element_type=jnp.float32)        # (H*Vb, N, Dh)

    # Re-concatenate heads along lanes -> (Vb*N, E), single (E,E) out-projection.
    ctx = jnp.concatenate([ctx[hd * vb:(hd + 1) * vb] for hd in range(nhead)],
                          axis=-1)                              # (Vb, N, E)
    attn = jnp.dot(ctx.reshape(vb * n, E), wo_ref[0],
                   preferred_element_type=jnp.float32) + bo_ref[0]

    # ---- residual + LayerNorm 1 ----
    h = _layer_norm(h + attn, ln1g_ref[0], ln1b_ref[0])

    # ---- feed-forward: Linear(E,F) -> ReLU -> Linear(F,E)  (bf16 weights) ----
    # Single fused bias+ReLU+cast pass on the (rows, F) slab (one narrow copy).
    ff = jnp.dot(h.astype(jnp.bfloat16), wf1_ref[0],
                 preferred_element_type=jnp.float32)
    ff = jnp.maximum(ff + bf1_ref[0], 0.0).astype(jnp.bfloat16)
    ff = jnp.dot(ff, wf2_ref[0], preferred_element_type=jnp.float32) + bf2_ref[0]

    # ---- residual + LayerNorm 2 ----
    h = _layer_norm(h + ff, ln2g_ref[0], ln2b_ref[0])

    o_ref[0] = h.reshape(vb, n, E).astype(o_ref.dtype)


_PARAM_ORDER = ("w1", "b1", "w2", "b2",
                "wq", "bq", "wk", "bk", "wv", "bv", "wo", "bo",
                "ln1g", "ln1b",
                "wf1", "bf1", "wf2", "bf2",
                "ln2g", "ln2b")
_BF16_PARAMS = ("wf1", "wf2")


def _prep_branch(params):
    """Split the fused (E, 3E) in-proj into full-width (E, E) q/k/v matrices.

    PyTorch layout: q = x @ in_proj_weight[:E].T etc.; wqkv here is stored
    transposed ((E, 3E)), so q/k/v use column blocks [0:E], [E:2E], [2E:3E].
    """
    E = params["w1"].shape[0]
    wqkv = params["wqkv"]
    bqkv = params["bqkv"].reshape(3 * E)
    out = {k: v for k, v in params.items() if k not in ("wqkv", "bqkv")}
    out["wq"], out["bq"] = wqkv[:, :E],         bqkv[:E].reshape(1, E)
    out["wk"], out["bk"] = wqkv[:, E:2 * E],    bqkv[E:2 * E].reshape(1, E)
    out["wv"], out["bv"] = wqkv[:, 2 * E:],     bqkv[2 * E:].reshape(1, E)
    return out


def pack_params(diag_params, proc_params):
    """Stack diag/proc parameters along a leading branch axis of size 2."""
    d = _prep_branch(diag_params)
    p = _prep_branch(proc_params)
    packed = []
    for name in _PARAM_ORDER:
        dt = jnp.bfloat16 if name in _BF16_PARAMS else jnp.float32
        packed.append(jnp.stack([d[name].astype(dt), p[name].astype(dt)], axis=0))
    return packed


def _param_spec(t):
    nd = t.ndim
    return pl.BlockSpec((1,) + tuple(t.shape[1:]),
                        lambda b, v, _nd=nd: (b,) + (0,) * (_nd - 1))


def _block_defaults():
    """(row target per visit block, vmem_limit_bytes) per TPU generation."""
    try:
        kind = jax.devices()[0].device_kind.lower()
    except Exception:
        kind = ""
    if "v7" in kind:
        # v7x: 64 MiB physical VMEM per core -> smaller blocks, tighter cap.
        return 1024, 48 * 1024 * 1024
    if "v5" in kind or "v6" in kind:
        # v5e / v6e: 128 MiB physical VMEM -> fill the MXU with ~2048-row slabs.
        return 2048, 96 * 1024 * 1024
    # Unknown / older generation: conservative, known-good budget.
    return 1024, 32 * 1024 * 1024


def tsf_encoder_forward(diag_seq, proc_seq, diag_mask, proc_mask,
                        diag_params, proc_params, nhead=NHEAD,
                        visits_per_block=None, vmem_limit_bytes=None):
    """Mirrors tsf_encoder.forward (batch_size = 1, eval mode).

    diag_seq/proc_seq: (1, V, N*, E); masks: (1, V, N*) additive float masks
    (0 = keep, NEG_MASK = padding).  Returns (V, Nd, E), (V, Np, E).
    """
    _, V, Nd, E = diag_seq.shape
    Np = proc_seq.shape[2]
    N = max(Nd, Np)

    target_rows, default_vmem = _block_defaults()
    if visits_per_block is None:
        visits_per_block = max(1, min(V, max(1, target_rows // N)))
    if vmem_limit_bytes is None:
        vmem_limit_bytes = default_vmem

    def pad_branch(seq, msk, n):
        seq = seq.reshape(V, n, E).astype(jnp.float32)
        msk = msk.reshape(V, n).astype(jnp.float32)
        if n < N:
            seq = jnp.pad(seq, ((0, 0), (0, N - n), (0, 0)))
            msk = jnp.pad(msk, ((0, 0), (0, N - n)), constant_values=NEG_MASK)
        return seq, msk

    dx, dm = pad_branch(diag_seq, diag_mask, Nd)
    px, pm = pad_branch(proc_seq, proc_mask, Np)
    x = jnp.stack([dx, px], axis=0)                  # (2, V, N, E)
    mask = jnp.stack([dm, pm], axis=0)               # (2, V, N)

    # ---- visit blocking: many visits per grid step (fill MXU, amortize overhead) ----
    Vb = visits_per_block
    n_vblk = -(-V // Vb)
    Vpad = n_vblk * Vb
    if Vpad > V:
        x = jnp.pad(x, ((0, 0), (0, Vpad - V), (0, 0), (0, 0)))
        mask = jnp.pad(mask, ((0, 0), (0, Vpad - V), (0, 0)))
    mask = mask.reshape(2, Vpad, 1, N)

    plist = pack_params(diag_params, proc_params)

    in_specs = [
        pl.BlockSpec((1, Vb, N, E), lambda b, v: (b, v, 0, 0)),   # input slab
        pl.BlockSpec((1, Vb, 1, N), lambda b, v: (b, v, 0, 0)),   # additive mask
    ]
    in_specs += [_param_spec(t) for t in plist]

    # Advisory cost estimate (per fused call, both branches).
    rows = 2 * Vpad * N
    dh = E // nhead
    flops = rows * (2 * E * (2 * E) * 2      # pre-MLP (two linears)
                    + 3 * 2 * E * E          # q/k/v projections
                    + 2 * E * E              # out projection
                    + 2 * 2 * E * FF_DIM)    # FFN
    flops += 2 * Vpad * nhead * 2 * (2 * N * N * dh)   # scores + context
    transcendentals = rows * (2 * E) + 2 * Vpad * nhead * N * N + 2 * rows
    bytes_accessed = (int(x.size) + int(mask.size) + 2 * Vpad * N * E) * 4
    bytes_accessed += sum(int(t.size) * int(t.dtype.itemsize) for t in plist)
    cost = pl.CostEstimate(flops=int(flops),
                           transcendentals=int(transcendentals),
                           bytes_accessed=int(bytes_accessed))

    out = pl.pallas_call(
        functools.partial(_encoder_kernel, nhead, Vb, N),
        out_shape=jax.ShapeDtypeStruct((2, Vpad, N, E), jnp.float32),
        grid_spec=pltpu.PrefetchScalarGridSpec(
            num_scalar_prefetch=0,
            grid=(2, n_vblk),
            in_specs=in_specs,
            out_specs=pl.BlockSpec((1, Vb, N, E), lambda b, v: (b, v, 0, 0)),
        ),
        compiler_params=pltpu.CompilerParams(
            # Branch axis parallel (v7x: one branch per TensorCore, weights stay
            # resident); inner visit axis iterated per core.
            dimension_semantics=("parallel", "arbitrary"),
            vmem_limit_bytes=int(vmem_limit_bytes)),
        cost_estimate=cost,
    )(x, mask, *plist)

    diag_out = out[0, :V, :Nd, :]
    proc_out = out[1, :V, :Np, :]
    return diag_out, proc_out


def init_branch_params(key, emb_dim=EMB_DIM, ff_dim=FF_DIM, scale=0.05):
    ks = jax.random.split(key, 8)
    nrm = lambda k, shp: (scale * jax.random.normal(k, shp, jnp.float32))
    return {
        # Sequential(Linear(E,2E), Tanh, Linear(2E,E), Dropout)
        "w1": nrm(ks[0], (emb_dim, 2 * emb_dim)),
        "b1": nrm(ks[1], (1, 2 * emb_dim)),
        "w2": nrm(ks[2], (2 * emb_dim, emb_dim)),
        "b2": nrm(ks[3], (1, emb_dim)),
        # MultiheadAttention in_proj (stored transposed: (E, 3E)) + out_proj (transposed)
        "wqkv": nrm(ks[4], (emb_dim, 3 * emb_dim)),
        "bqkv": jnp.zeros((1, 3 * emb_dim), jnp.float32),
        "wo": nrm(ks[5], (emb_dim, emb_dim)),
        "bo": jnp.zeros((1, emb_dim), jnp.float32),
        # LayerNorms
        "ln1g": jnp.ones((1, emb_dim), jnp.float32),
        "ln1b": jnp.zeros((1, emb_dim), jnp.float32),
        "ln2g": jnp.ones((1, emb_dim), jnp.float32),
        "ln2b": jnp.zeros((1, emb_dim), jnp.float32),
        # Feed-forward (dim_feedforward = 2048, activation = relu)
        "wf1": nrm(ks[6], (emb_dim, ff_dim)),
        "bf1": jnp.zeros((1, ff_dim), jnp.float32),
        "wf2": nrm(ks[7], (ff_dim, emb_dim)),
        "bf2": jnp.zeros((1, emb_dim), jnp.float32),
    }


if __name__ == "__main__":
    V, Nd, Np, E = 4, 8, 6, EMB_DIM

    key = jax.random.PRNGKey(0)
    k_d, k_p, k_x1, k_x2 = jax.random.split(key, 4)

    diag_params = init_branch_params(k_d)
    proc_params = init_branch_params(k_p)

    diag_seq = jax.random.normal(k_x1, (1, V, Nd, E), jnp.float32)
    proc_seq = jax.random.normal(k_x2, (1, V, Np, E), jnp.float32)

    # Additive masks: 0 for valid codes, -1e9 for padding (broadcast over query rows).
    lens_d = jnp.array([3, 5, 8, 1])
    lens_p = jnp.array([2, 6, 4, 5])
    diag_mask = jnp.where(jnp.arange(Nd)[None, :] < lens_d[:, None],
                          0.0, NEG_MASK).astype(jnp.float32).reshape(1, V, Nd)
    proc_mask = jnp.where(jnp.arange(Np)[None, :] < lens_p[:, None],
                          0.0, NEG_MASK).astype(jnp.float32).reshape(1, V, Np)

    d_out, p_out = tsf_encoder_forward(diag_seq, proc_seq, diag_mask, proc_mask,
                                       diag_params, proc_params)
    jax.block_until_ready((d_out, p_out))

    assert d_out.shape == (V, Nd, E) and p_out.shape == (V, Np, E)
    assert bool(jnp.all(jnp.isfinite(d_out))) and bool(jnp.all(jnp.isfinite(p_out)))
    print("KERNEL_OK")
</pallas_src>

<mosaic_0001>
module attributes {stable_mosaic.version = 11 : i64} {
  func.func @_encoder_kernel(%arg0: i32, %arg1: i32, %arg2: memref<1x4x8x64xf32, #tpu.memory_space<vmem>>, %arg3: memref<1x4x1x8xf32, #tpu.memory_space<vmem>>, %arg4: memref<1x64x128xf32, #tpu.memory_space<vmem>>, %arg5: memref<1x1x128xf32, #tpu.memory_space<vmem>>, %arg6: memref<1x128x64xf32, #tpu.memory_space<vmem>>, %arg7: memref<1x1x64xf32, #tpu.memory_space<vmem>>, %arg8: memref<1x64x64xf32, #tpu.memory_space<vmem>>, %arg9: memref<1x1x64xf32, #tpu.memory_space<vmem>>, %arg10: memref<1x64x64xf32, #tpu.memory_space<vmem>>, %arg11: memref<1x1x64xf32, #tpu.memory_space<vmem>>, %arg12: memref<1x64x64xf32, #tpu.memory_space<vmem>>, %arg13: memref<1x1x64xf32, #tpu.memory_space<vmem>>, %arg14: memref<1x64x64xf32, #tpu.memory_space<vmem>>, %arg15: memref<1x1x64xf32, #tpu.memory_space<vmem>>, %arg16: memref<1x1x64xf32, #tpu.memory_space<vmem>>, %arg17: memref<1x1x64xf32, #tpu.memory_space<vmem>>, %arg18: memref<1x64x2048xbf16, #tpu.memory_space<vmem>>, %arg19: memref<1x1x2048xf32, #tpu.memory_space<vmem>>, %arg20: memref<1x2048x64xbf16, #tpu.memory_space<vmem>>, %arg21: memref<1x1x64xf32, #tpu.memory_space<vmem>>, %arg22: memref<1x1x64xf32, #tpu.memory_space<vmem>>, %arg23: memref<1x1x64xf32, #tpu.memory_space<vmem>>, %arg24: memref<1x4x8x64xf32, #tpu.memory_space<vmem>>) attributes {dimension_semantics = [#tpu.dimension_semantics<parallel>, #tpu.dimension_semantics<arbitrary>], iteration_bounds = array<i64: 2, 1>, scalar_prefetch = 0 : i64, scratch_operands = 0 : i64, tpu.core_type = #tpu.core_type<tc>, window_params = [{transform_indices = @transform_0, window_bounds = array<i64: 1, 4, 8, 64>}, {transform_indices = @transform_1, window_bounds = array<i64: 1, 4, 1, 8>}, {transform_indices = @transform_2, window_bounds = array<i64: 1, 64, 128>}, {transform_indices = @transform_3, window_bounds = array<i64: 1, 1, 128>}, {transform_indices = @transform_4, window_bounds = array<i64: 1, 128, 64>}, {transform_indices = @transform_5, window_bounds = array<i64: 1, 1, 64>}, {transform_indices = @transform_6, window_bounds = array<i64: 1, 64, 64>}, {transform_indices = @transform_7, window_bounds = array<i64: 1, 1, 64>}, {transform_indices = @transform_8, window_bounds = array<i64: 1, 64, 64>}, {transform_indices = @transform_9, window_bounds = array<i64: 1, 1, 64>}, {transform_indices = @transform_10, window_bounds = array<i64: 1, 64, 64>}, {transform_indices = @transform_11, window_bounds = array<i64: 1, 1, 64>}, {transform_indices = @transform_12, window_bounds = array<i64: 1, 64, 64>}, {transform_indices = @transform_13, window_bounds = array<i64: 1, 1, 64>}, {transform_indices = @transform_14, window_bounds = array<i64: 1, 1, 64>}, {transform_indices = @transform_15, window_bounds = array<i64: 1, 1, 64>}, {transform_indices = @transform_16, window_bounds = array<i64: 1, 64, 2048>}, {transform_indices = @transform_17, window_bounds = array<i64: 1, 1, 2048>}, {transform_indices = @transform_18, window_bounds = array<i64: 1, 2048, 64>}, {transform_indices = @transform_19, window_bounds = array<i64: 1, 1, 64>}, {transform_indices = @transform_20, window_bounds = array<i64: 1, 1, 64>}, {transform_indices = @transform_21, window_bounds = array<i64: 1, 1, 64>}, {transform_indices = @transform_22, window_bounds = array<i64: 1, 4, 8, 64>}]} {
    %c0 = arith.constant 0 : index
    %c0_0 = arith.constant 0 : index
    %c0_1 = arith.constant 0 : index
    %c0_2 = arith.constant 0 : index
    %0 = vector.load %arg2[%c0, %c0_0, %c0_1, %c0_2] : memref<1x4x8x64xf32, #tpu.memory_space<vmem>>, vector<1x4x8x64xf32>
    %1 = vector.shape_cast %0 : vector<1x4x8x64xf32> to vector<4x8x64xf32>
    %2 = vector.shape_cast %1 : vector<4x8x64xf32> to vector<32x64xf32>
    %c0_3 = arith.constant 0 : index
    %c0_4 = arith.constant 0 : index
    %c0_5 = arith.constant 0 : index
    %c0_6 = arith.constant 0 : index
    %3 = vector.load %arg3[%c0_3, %c0_4, %c0_5, %c0_6] : memref<1x4x1x8xf32, #tpu.memory_space<vmem>>, vector<1x4x1x8xf32>
    %4 = vector.shape_cast %3 : vector<1x4x1x8xf32> to vector<4x1x8xf32>
    %c0_7 = arith.constant 0 : index
    %c0_8 = arith.constant 0 : index
    %c0_9 = arith.constant 0 : index
    %5 = vector.load %arg4[%c0_7, %c0_8, %c0_9] : memref<1x64x128xf32, #tpu.memory_space<vmem>>, vector<1x64x128xf32>
    %6 = vector.shape_cast %5 : vector<1x64x128xf32> to vector<64x128xf32>
    %cst = arith.constant dense<0.000000e+00> : vector<32x128xf32>
    %7 = tpu.matmul %2, %6, %cst {dimension_numbers = #tpu.dot_dimension_numbers<[1], [0], [0], [1], [0, 0, 1, 1], [], []>} : vector<32x64xf32>, vector<64x128xf32>, vector<32x128xf32> -> vector<32x128xf32>
    %c0_10 = arith.constant 0 : index
    %c0_11 = arith.constant 0 : index
    %c0_12 = arith.constant 0 : index
    %8 = vector.load %arg5[%c0_10, %c0_11, %c0_12] : memref<1x1x128xf32, #tpu.memory_space<vmem>>, vector<1x1x128xf32>
    %9 = vector.shape_cast %8 : vector<1x1x128xf32> to vector<1x128xf32>
    %10 = vector.broadcast %9 : vector<1x128xf32> to vector<32x128xf32>
    %11 = arith.addf %7, %10 : vector<32x128xf32>
    %12 = math.tanh %11 : vector<32x128xf32>
    %c0_13 = arith.constant 0 : index
    %c0_14 = arith.constant 0 : index
    %c0_15 = arith.constant 0 : index
    %13 = vector.load %arg6[%c0_13, %c0_14, %c0_15] : memref<1x128x64xf32, #tpu.memory_space<vmem>>, vector<1x128x64xf32>
    %14 = vector.shape_cast %13 : vector<1x128x64xf32> to vector<128x64xf32>
    %cst_16 = arith.constant dense<0.000000e+00> : vector<32x64xf32>
    %15 = tpu.matmul %12, %14, %cst_16 {dimension_numbers = #tpu.dot_dimension_numbers<[1], [0], [0], [1], [0, 0, 1, 1], [], []>} : vector<32x128xf32>, vector<128x64xf32>, vector<32x64xf32> -> vector<32x64xf32>
    %c0_17 = arith.constant 0 : index
    %c0_18 = arith.constant 0 : index
    %c0_19 = arith.constant 0 : index
    %16 = vector.load %arg7[%c0_17, %c0_18, %c0_19] : memref<1x1x64xf32, #tpu.memory_space<vmem>>, vector<1x1x64xf32>
    %17 = vector.shape_cast %16 : vector<1x1x64xf32> to vector<1x64xf32>
    %18 = vector.broadcast %17 : vector<1x64xf32> to vector<32x64xf32>
    %19 = arith.addf %15, %18 : vector<32x64xf32>
    %c0_20 = arith.constant 0 : index
    %c0_21 = arith.constant 0 : index
    %c0_22 = arith.constant 0 : index
    %20 = vector.load %arg8[%c0_20, %c0_21, %c0_22] : memref<1x64x64xf32, #tpu.memory_space<vmem>>, vector<1x64x64xf32>
    %21 = vector.shape_cast %20 : vector<1x64x64xf32> to vector<64x64xf32>
    %cst_23 = arith.constant dense<0.000000e+00> : vector<32x64xf32>
    %22 = tpu.matmul %19, %21, %cst_23 {dimension_numbers = #tpu.dot_dimension_numbers<[1], [0], [0], [1], [0, 0, 1, 1], [], []>} : vector<32x64xf32>, vector<64x64xf32>, vector<32x64xf32> -> vector<32x64xf32>
    %c0_24 = arith.constant 0 : index
    %c0_25 = arith.constant 0 : index
    %c0_26 = arith.constant 0 : index
    %23 = vector.load %arg9[%c0_24, %c0_25, %c0_26] : memref<1x1x64xf32, #tpu.memory_space<vmem>>, vector<1x1x64xf32>
    %24 = vector.shape_cast %23 : vector<1x1x64xf32> to vector<1x64xf32>
    %25 = vector.broadcast %24 : vector<1x64xf32> to vector<32x64xf32>
    %26 = arith.addf %22, %25 : vector<32x64xf32>
    %c0_27 = arith.constant 0 : index
    %c0_28 = arith.constant 0 : index
    %c0_29 = arith.constant 0 : index
    %27 = vector.load %arg10[%c0_27, %c0_28, %c0_29] : memref<1x64x64xf32, #tpu.memory_space<vmem>>, vector<1x64x64xf32>
    %28 = vector.shape_cast %27 : vector<1x64x64xf32> to vector<64x64xf32>
    %cst_30 = arith.constant dense<0.000000e+00> : vector<32x64xf32>
    %29 = tpu.matmul %19, %28, %cst_30 {dimension_numbers = #tpu.dot_dimension_numbers<[1], [0], [0], [1], [0, 0, 1, 1], [], []>} : vector<32x64xf32>, vector<64x64xf32>, vector<32x64xf32> -> vector<32x64xf32>
    %c0_31 = arith.constant 0 : index
    %c0_32 = arith.constant 0 : index
    %c0_33 = arith.constant 0 : index
    %30 = vector.load %arg11[%c0_31, %c0_32, %c0_33] : memref<1x1x64xf32, #tpu.memory_space<vmem>>, vector<1x1x64xf32>
    %31 = vector.shape_cast %30 : vector<1x1x64xf32> to vector<1x64xf32>
    %32 = vector.broadcast %31 : vector<1x64xf32> to vector<32x64xf32>
    %33 = arith.addf %29, %32 : vector<32x64xf32>
    %c0_34 = arith.constant 0 : index
    %c0_35 = arith.constant 0 : index
    %c0_36 = arith.constant 0 : index
    %34 = vector.load %arg12[%c0_34, %c0_35, %c0_36] : memref<1x64x64xf32, #tpu.memory_space<vmem>>, vector<1x64x64xf32>
    %35 = vector.shape_cast %34 : vector<1x64x64xf32> to vector<64x64xf32>
    %cst_37 = arith.constant dense<0.000000e+00> : vector<32x64xf32>
    %36 = tpu.matmul %19, %35, %cst_37 {dimension_numbers = #tpu.dot_dimension_numbers<[1], [0], [0], [1], [0, 0, 1, 1], [], []>} : vector<32x64xf32>, vector<64x64xf32>, vector<32x64xf32> -> vector<32x64xf32>
    %c0_38 = arith.constant 0 : index
    %c0_39 = arith.constant 0 : index
    %c0_40 = arith.constant 0 : index
    %37 = vector.load %arg13[%c0_38, %c0_39, %c0_40] : memref<1x1x64xf32, #tpu.memory_space<vmem>>, vector<1x1x64xf32>
    %38 = vector.shape_cast %37 : vector<1x1x64xf32> to vector<1x64xf32>
    %39 = vector.broadcast %38 : vector<1x64xf32> to vector<32x64xf32>
    %40 = arith.addf %36, %39 : vector<32x64xf32>
    %41 = vector.shape_cast %26 : vector<32x64xf32> to vector<4x8x64xf32>
    %42 = vector.extract_strided_slice %41 {offsets = [0, 0, 0], sizes = [4, 8, 32], strides = [1, 1, 1]} : vector<4x8x64xf32> to vector<4x8x32xf32>
    %43 = vector.extract_strided_slice %41 {offsets = [0, 0, 32], sizes = [4, 8, 32], strides = [1, 1, 1]} : vector<4x8x64xf32> to vector<4x8x32xf32>
    %44 = tpu.concatenate %42, %43 in 0 : vector<4x8x32xf32>, vector<4x8x32xf32> -> vector<8x8x32xf32>
    %45 = vector.shape_cast %33 : vector<32x64xf32> to vector<4x8x64xf32>
    %46 = vector.extract_strided_slice %45 {offsets = [0, 0, 0], sizes = [4, 8, 32], strides = [1, 1, 1]} : vector<4x8x64xf32> to vector<4x8x32xf32>
    %47 = vector.extract_strided_slice %45 {offsets = [0, 0, 32], sizes = [4, 8, 32], strides = [1, 1, 1]} : vector<4x8x64xf32> to vector<4x8x32xf32>
    %48 = tpu.concatenate %46, %47 in 0 : vector<4x8x32xf32>, vector<4x8x32xf32> -> vector<8x8x32xf32>
    %49 = vector.shape_cast %40 : vector<32x64xf32> to vector<4x8x64xf32>
    %50 = vector.extract_strided_slice %49 {offsets = [0, 0, 0], sizes = [4, 8, 32], strides = [1, 1, 1]} : vector<4x8x64xf32> to vector<4x8x32xf32>
    %51 = vector.extract_strided_slice %49 {offsets = [0, 0, 32], sizes = [4, 8, 32], strides = [1, 1, 1]} : vector<4x8x64xf32> to vector<4x8x32xf32>
    %52 = tpu.concatenate %50, %51 in 0 : vector<4x8x32xf32>, vector<4x8x32xf32> -> vector<8x8x32xf32>
    %53 = tpu.concatenate %4, %4 in 0 : vector<4x1x8xf32>, vector<4x1x8xf32> -> vector<8x1x8xf32>
    "tpu.trace_start"() <{level = 10 : i32, message = "bqd,bkd->bqk"}> : () -> ()
    %cst_41 = arith.constant dense<0.000000e+00> : vector<8x8x8xf32>
    %54 = tpu.matmul %44, %48, %cst_41 {dimension_numbers = #tpu.dot_dimension_numbers<[2], [2], [1], [1], [0, 0, 0, 1, 1, 1], [0], [0]>} : vector<8x8x32xf32>, vector<8x8x32xf32>, vector<8x8x8xf32> -> vector<8x8x8xf32>
    "tpu.trace_stop"() : () -> ()
    %cst_42 = arith.constant 0.176776692 : f32
    %55 = vector.broadcast %cst_42 : f32 to vector<8x8x8xf32>
    %56 = arith.mulf %54, %55 : vector<8x8x8xf32>
    %57 = vector.broadcast %53 : vector<8x1x8xf32> to vector<8x8x8xf32>
    %58 = arith.addf %56, %57 : vector<8x8x8xf32>
    %cst_43 = arith.constant dense<0xFF800000> : vector<8x8xf32>
    %59 = vector.multi_reduction <maximumf>, %58, %cst_43 [2] : vector<8x8x8xf32> to vector<8x8xf32>
    %60 = vector.shape_cast %59 : vector<8x8xf32> to vector<8x8x1xf32>
    %61 = vector.broadcast %60 : vector<8x8x1xf32> to vector<8x8x8xf32>
    %62 = arith.subf %58, %61 : vector<8x8x8xf32>
    %63 = math.exp %62 : vector<8x8x8xf32>
    %cst_44 = arith.constant dense<0.000000e+00> : vector<8x8xf32>
    %64 = vector.multi_reduction <add>, %63, %cst_44 [2] : vector<8x8x8xf32> to vector<8x8xf32>
    %65 = vector.shape_cast %64 : vector<8x8xf32> to vector<8x8x1xf32>
    %66 = tpu.reciprocal %65 {approx = true} : vector<8x8x1xf32> -> vector<8x8x1xf32>
    %67 = vector.broadcast %66 : vector<8x8x1xf32> to vector<8x8x8xf32>
    %68 = arith.mulf %63, %67 : vector<8x8x8xf32>
    "tpu.trace_start"() <{level = 10 : i32, message = "bqk,bkd->bqd"}> : () -> ()
    %cst_45 = arith.constant dense<0.000000e+00> : vector<8x8x32xf32>
    %69 = tpu.matmul %68, %52, %cst_45 {dimension_numbers = #tpu.dot_dimension_numbers<[2], [1], [1], [2], [0, 0, 0, 1, 1, 2], [0], [0]>} : vector<8x8x8xf32>, vector<8x8x32xf32>, vector<8x8x32xf32> -> vector<8x8x32xf32>
    "tpu.trace_stop"() : () -> ()
    %70 = vector.extract_strided_slice %69 {offsets = [0, 0, 0], sizes = [4, 8, 32], strides = [1, 1, 1]} : vector<8x8x32xf32> to vector<4x8x32xf32>
    %71 = vector.extract_strided_slice %69 {offsets = [4, 0, 0], sizes = [4, 8, 32], strides = [1, 1, 1]} : vector<8x8x32xf32> to vector<4x8x32xf32>
    %72 = tpu.concatenate %70, %71 in 2 : vector<4x8x32xf32>, vector<4x8x32xf32> -> vector<4x8x64xf32>
    %73 = vector.shape_cast %72 : vector<4x8x64xf32> to vector<32x64xf32>
    %c0_46 = arith.constant 0 : index
    %c0_47 = arith.constant 0 : index
    %c0_48 = arith.constant 0 : index
    %74 = vector.load %arg14[%c0_46, %c0_47, %c0_48] : memref<1x64x64xf32, #tpu.memory_space<vmem>>, vector<1x64x64xf32>
    %75 = vector.shape_cast %74 : vector<1x64x64xf32> to vector<64x64xf32>
    %cst_49 = arith.constant dense<0.000000e+00> : vector<32x64xf32>
    %76 = tpu.matmul %73, %75, %cst_49 {dimension_numbers = #tpu.dot_dimension_numbers<[1], [0], [0], [1], [0, 0, 1, 1], [], []>} : vector<32x64xf32>, vector<64x64xf32>, vector<32x64xf32> -> vector<32x64xf32>
    %c0_50 = arith.constant 0 : index
    %c0_51 = arith.constant 0 : index
    %c0_52 = arith.constant 0 : index
    %77 = vector.load %arg15[%c0_50, %c0_51, %c0_52] : memref<1x1x64xf32, #tpu.memory_space<vmem>>, vector<1x1x64xf32>
    %78 = vector.shape_cast %77 : vector<1x1x64xf32> to vector<1x64xf32>
    %79 = vector.broadcast %78 : vector<1x64xf32> to vector<32x64xf32>
    %80 = arith.addf %76, %79 : vector<32x64xf32>
    %81 = arith.addf %19, %80 : vector<32x64xf32>
    %c0_53 = arith.constant 0 : index
    %c0_54 = arith.constant 0 : index
    %c0_55 = arith.constant 0 : index
    %82 = vector.load %arg16[%c0_53, %c0_54, %c0_55] : memref<1x1x64xf32, #tpu.memory_space<vmem>>, vector<1x1x64xf32>
    %83 = vector.shape_cast %82 : vector<1x1x64xf32> to vector<1x64xf32>
    %c0_56 = arith.constant 0 : index
    %c0_57 = arith.constant 0 : index
    %c0_58 = arith.constant 0 : index
    %84 = vector.load %arg17[%c0_56, %c0_57, %c0_58] : memref<1x1x64xf32, #tpu.memory_space<vmem>>, vector<1x1x64xf32>
    %85 = vector.shape_cast %84 : vector<1x1x64xf32> to vector<1x64xf32>
    %cst_59 = arith.constant dense<0.000000e+00> : vector<32xf32>
    %86 = vector.multi_reduction <add>, %81, %cst_59 [1] : vector<32x64xf32> to vector<32xf32>
    %87 = vector.shape_cast %86 : vector<32xf32> to vector<32x1xf32>
    %cst_60 = arith.constant 6.400000e+01 : f32
    %88 = vector.broadcast %cst_60 : f32 to vector<32x1xf32>
    %89 = arith.divf %87, %88 : vector<32x1xf32>
    %90 = vector.broadcast %89 : vector<32x1xf32> to vector<32x64xf32>
    %91 = arith.subf %81, %90 : vector<32x64xf32>
    %92 = arith.mulf %91, %91 : vector<32x64xf32>
    %cst_61 = arith.constant dense<0.000000e+00> : vector<32xf32>
    %93 = vector.multi_reduction <add>, %92, %cst_61 [1] : vector<32x64xf32> to vector<32xf32>
    %94 = vector.shape_cast %93 : vector<32xf32> to vector<32x1xf32>
    %cst_62 = arith.constant 6.400000e+01 : f32
    %95 = vector.broadcast %cst_62 : f32 to vector<32x1xf32>
    %96 = arith.divf %94, %95 : vector<32x1xf32>
    %97 = vector.broadcast %89 : vector<32x1xf32> to vector<32x64xf32>
    %98 = arith.subf %81, %97 : vector<32x64xf32>
    %cst_63 = arith.constant 9.99999974E-6 : f32
    %99 = vector.broadcast %cst_63 : f32 to vector<32x1xf32>
    %100 = arith.addf %96, %99 : vector<32x1xf32>
    %101 = math.rsqrt %100 : vector<32x1xf32>
    %102 = vector.broadcast %101 : vector<32x1xf32> to vector<32x64xf32>
    %103 = arith.mulf %98, %102 : vector<32x64xf32>
    %104 = vector.broadcast %83 : vector<1x64xf32> to vector<32x64xf32>
    %105 = arith.mulf %103, %104 : vector<32x64xf32>
    %106 = vector.broadcast %85 : vector<1x64xf32> to vector<32x64xf32>
    %107 = arith.addf %105, %106 : vector<32x64xf32>
    %108 = arith.truncf %107 : vector<32x64xf32> to vector<32x64xbf16>
    %c0_64 = arith.constant 0 : index
    %c0_65 = arith.constant 0 : index
    %c0_66 = arith.constant 0 : index
    %109 = vector.load %arg18[%c0_64, %c0_65, %c0_66] : memref<1x64x2048xbf16, #tpu.memory_space<vmem>>, vector<1x64x2048xbf16>
    %110 = vector.shape_cast %109 : vector<1x64x2048xbf16> to vector<64x2048xbf16>
    %cst_67 = arith.constant dense<0.000000e+00> : vector<32x2048xf32>
    %111 = tpu.matmul %108, %110, %cst_67 {dimension_numbers = #tpu.dot_dimension_numbers<[1], [0], [0], [1], [0, 0, 1, 1], [], []>} : vector<32x64xbf16>, vector<64x2048xbf16>, vector<32x2048xf32> -> vector<32x2048xf32>
    %c0_68 = arith.constant 0 : index
    %c0_69 = arith.constant 0 : index
    %c0_70 = arith.constant 0 : index
    %112 = vector.load %arg19[%c0_68, %c0_69, %c0_70] : memref<1x1x2048xf32, #tpu.memory_space<vmem>>, vector<1x1x2048xf32>
    %113 = vector.shape_cast %112 : vector<1x1x2048xf32> to vector<1x2048xf32>
    %114 = vector.broadcast %113 : vector<1x2048xf32> to vector<32x2048xf32>
    %115 = arith.addf %111, %114 : vector<32x2048xf32>
    %cst_71 = arith.constant 0.000000e+00 : f32
    %116 = vector.broadcast %cst_71 : f32 to vector<32x2048xf32>
    %117 = arith.maximumf %115, %116 : vector<32x2048xf32>
    %118 = arith.truncf %117 : vector<32x2048xf32> to vector<32x2048xbf16>
    %c0_72 = arith.constant 0 : index
    %c0_73 = arith.constant 0 : index
    %c0_74 = arith.constant 0 : index
    %119 = vector.load %arg20[%c0_72, %c0_73, %c0_74] : memref<1x2048x64xbf16, #tpu.memory_space<vmem>>, vector<1x2048x64xbf16>
    %120 = vector.shape_cast %119 : vector<1x2048x64xbf16> to vector<2048x64xbf16>
    %cst_75 = arith.constant dense<0.000000e+00> : vector<32x64xf32>
    %121 = tpu.matmul %118, %120, %cst_75 {dimension_numbers = #tpu.dot_dimension_numbers<[1], [0], [0], [1], [0, 0, 1, 1], [], []>} : vector<32x2048xbf16>, vector<2048x64xbf16>, vector<32x64xf32> -> vector<32x64xf32>
    %c0_76 = arith.constant 0 : index
    %c0_77 = arith.constant 0 : index
    %c0_78 = arith.constant 0 : index
    %122 = vector.load %arg21[%c0_76, %c0_77, %c0_78] : memref<1x1x64xf32, #tpu.memory_space<vmem>>, vector<1x1x64xf32>
    %123 = vector.shape_cast %122 : vector<1x1x64xf32> to vector<1x64xf32>
    %124 = vector.broadcast %123 : vector<1x64xf32> to vector<32x64xf32>
    %125 = arith.addf %121, %124 : vector<32x64xf32>
    %126 = arith.addf %107, %125 : vector<32x64xf32>
    %c0_79 = arith.constant 0 : index
    %c0_80 = arith.constant 0 : index
    %c0_81 = arith.constant 0 : index
    %127 = vector.load %arg22[%c0_79, %c0_80, %c0_81] : memref<1x1x64xf32, #tpu.memory_space<vmem>>, vector<1x1x64xf32>
    %128 = vector.shape_cast %127 : vector<1x1x64xf32> to vector<1x64xf32>
    %c0_82 = arith.constant 0 : index
    %c0_83 = arith.constant 0 : index
    %c0_84 = arith.constant 0 : index
    %129 = vector.load %arg23[%c0_82, %c0_83, %c0_84] : memref<1x1x64xf32, #tpu.memory_space<vmem>>, vector<1x1x64xf32>
    %130 = vector.shape_cast %129 : vector<1x1x64xf32> to vector<1x64xf32>
    %cst_85 = arith.constant dense<0.000000e+00> : vector<32xf32>
    %131 = vector.multi_reduction <add>, %126, %cst_85 [1] : vector<32x64xf32> to vector<32xf32>
    %132 = vector.shape_cast %131 : vector<32xf32> to vector<32x1xf32>
    %cst_86 = arith.constant 6.400000e+01 : f32
    %133 = vector.broadcast %cst_86 : f32 to vector<32x1xf32>
    %134 = arith.divf %132, %133 : vector<32x1xf32>
    %135 = vector.broadcast %134 : vector<32x1xf32> to vector<32x64xf32>
    %136 = arith.subf %126, %135 : vector<32x64xf32>
    %137 = arith.mulf %136, %136 : vector<32x64xf32>
    %cst_87 = arith.constant dense<0.000000e+00> : vector<32xf32>
    %138 = vector.multi_reduction <add>, %137, %cst_87 [1] : vector<32x64xf32> to vector<32xf32>
    %139 = vector.shape_cast %138 : vector<32xf32> to vector<32x1xf32>
    %cst_88 = arith.constant 6.400000e+01 : f32
    %140 = vector.broadcast %cst_88 : f32 to vector<32x1xf32>
    %141 = arith.divf %139, %140 : vector<32x1xf32>
    %142 = vector.broadcast %134 : vector<32x1xf32> to vector<32x64xf32>
    %143 = arith.subf %126, %142 : vector<32x64xf32>
    %cst_89 = arith.constant 9.99999974E-6 : f32
    %144 = vector.broadcast %cst_89 : f32 to vector<32x1xf32>
    %145 = arith.addf %141, %144 : vector<32x1xf32>
    %146 = math.rsqrt %145 : vector<32x1xf32>
    %147 = vector.broadcast %146 : vector<32x1xf32> to vector<32x64xf32>
    %148 = arith.mulf %143, %147 : vector<32x64xf32>
    %149 = vector.broadcast %128 : vector<1x64xf32> to vector<32x64xf32>
    %150 = arith.mulf %148, %149 : vector<32x64xf32>
    %151 = vector.broadcast %130 : vector<1x64xf32> to vector<32x64xf32>
    %152 = arith.addf %150, %151 : vector<32x64xf32>
    %153 = vector.shape_cast %152 : vector<32x64xf32> to vector<4x8x64xf32>
    %c0_90 = arith.constant 0 : index
    %c0_91 = arith.constant 0 : index
    %c0_92 = arith.constant 0 : index
    %c0_93 = arith.constant 0 : index
    %154 = vector.load %arg24[%c0_90, %c0_91, %c0_92, %c0_93] : memref<1x4x8x64xf32, #tpu.memory_space<vmem>>, vector<1x4x8x64xf32>
    %155 = vector.shape_cast %154 : vector<1x4x8x64xf32> to vector<4x8x64xf32>
    %156 = vector.shape_cast %153 : vector<4x8x64xf32> to vector<1x4x8x64xf32>
    tpu.vector_store %arg24[%c0_90, %c0_91, %c0_92, %c0_93], %156 {strides = array<i32>} : memref<1x4x8x64xf32, #tpu.memory_space<vmem>>, vector<1x4x8x64xf32>,
    return
  }
  func.func @transform_0(%arg0: i32, %arg1: i32) -> (i32, i32, i32, i32) {
    %c0_i32 = arith.constant 0 : i32
    %c0_i32_0 = arith.constant 0 : i32
    %c0_i32_1 = arith.constant 0 : i32
    return %arg0, %arg1, %c0_i32, %c0_i32_0 : i32, i32, i32, i32
  }
  func.func @transform_1(%arg0: i32, %arg1: i32) -> (i32, i32, i32, i32) {
    %c0_i32 = arith.constant 0 : i32
    %c0_i32_0 = arith.constant 0 : i32
    %c0_i32_1 = arith.constant 0 : i32
    return %arg0, %arg1, %c0_i32, %c0_i32_0 : i32, i32, i32, i32
  }
  func.func @transform_2(%arg0: i32, %arg1: i32) -> (i32, i32, i32) {
    %c0_i32 = arith.constant 0 : i32
    %c0_i32_0 = arith.constant 0 : i32
    %c0_i32_1 = arith.constant 0 : i32
    return %arg0, %c0_i32, %c0_i32_0 : i32, i32, i32
  }
  func.func @transform_3(%arg0: i32, %arg1: i32) -> (i32, i32, i32) {
    %c0_i32 = arith.constant 0 : i32
    %c0_i32_0 = arith.constant 0 : i32
    %c0_i32_1 = arith.constant 0 : i32
    return %arg0, %c0_i32, %c0_i32_0 : i32, i32, i32
  }
  func.func @transform_4(%arg0: i32, %arg1: i32) -> (i32, i32, i32) {
    %c0_i32 = arith.constant 0 : i32
    %c0_i32_0 = arith.constant 0 : i32
    %c0_i32_1 = arith.constant 0 : i32
    return %arg0, %c0_i32, %c0_i32_0 : i32, i32, i32
  }
  func.func @transform_5(%arg0: i32, %arg1: i32) -> (i32, i32, i32) {
    %c0_i32 = arith.constant 0 : i32
    %c0_i32_0 = arith.constant 0 : i32
    %c0_i32_1 = arith.constant 0 : i32
    return %arg0, %c0_i32, %c0_i32_0 : i32, i32, i32
  }
  func.func @transform_6(%arg0: i32, %arg1: i32) -> (i32, i32, i32) {
    %c0_i32 = arith.constant 0 : i32
    %c0_i32_0 = arith.constant 0 : i32
    %c0_i32_1 = arith.constant 0 : i32
    return %arg0, %c0_i32, %c0_i32_0 : i32, i32, i32
  }
  func.func @transform_7(%arg0: i32, %arg1: i32) -> (i32, i32, i32) {
    %c0_i32 = arith.constant 0 : i32
    %c0_i32_0 = arith.constant 0 : i32
    %c0_i32_1 = arith.constant 0 : i32
    return %arg0, %c0_i32, %c0_i32_0 : i32, i32, i32
  }
  func.func @transform_8(%arg0: i32, %arg1: i32) -> (i32, i32, i32) {
    %c0_i32 = arith.constant 0 : i32
    %c0_i32_0 = arith.constant 0 : i32
    %c0_i32_1 = arith.constant 0 : i32
    return %arg0, %c0_i32, %c0_i32_0 : i32, i32, i32
  }
  func.func @transform_9(%arg0: i32, %arg1: i32) -> (i32, i32, i32) {
    %c0_i32 = arith.constant 0 : i32
    %c0_i32_0 = arith.constant 0 : i32
    %c0_i32_1 = arith.constant 0 : i32
    return %arg0, %c0_i32, %c0_i32_0 : i32, i32, i32
  }
  func.func @transform_10(%arg0: i32, %arg1: i32) -> (i32, i32, i32) {
    %c0_i32 = arith.constant 0 : i32
    %c0_i32_0 = arith.constant 0 : i32
    %c0_i32_1 = arith.constant 0 : i32
    return %arg0, %c0_i32, %c0_i32_0 : i32, i32, i32
  }
  func.func @transform_11(%arg0: i32, %arg1: i32) -> (i32, i32, i32) {
    %c0_i32 = arith.constant 0 : i32
    %c0_i32_0 = arith.constant 0 : i32
    %c0_i32_1 = arith.constant 0 : i32
    return %arg0, %c0_i32, %c0_i32_0 : i32, i32, i32
  }
  func.func @transform_12(%arg0: i32, %arg1: i32) -> (i32, i32, i32) {
    %c0_i32 = arith.constant 0 : i32
    %c0_i32_0 = arith.constant 0 : i32
    %c0_i32_1 = arith.constant 0 : i32
    return %arg0, %c0_i32, %c0_i32_0 : i32, i32, i32
  }
  func.func @transform_13(%arg0: i32, %arg1: i32) -> (i32, i32, i32) {
    %c0_i32 = arith.constant 0 : i32
    %c0_i32_0 = arith.constant 0 : i32
    %c0_i32_1 = arith.constant 0 : i32
    return %arg0, %c0_i32, %c0_i32_0 : i32, i32, i32
  }
  func.func @transform_14(%arg0: i32, %arg1: i32) -> (i32, i32, i32) {
    %c0_i32 = arith.constant 0 : i32
    %c0_i32_0 = arith.constant 0 : i32
    %c0_i32_1 = arith.constant 0 : i32
    return %arg0, %c0_i32, %c0_i32_0 : i32, i32, i32
  }
  func.func @transform_15(%arg0: i32, %arg1: i32) -> (i32, i32, i32) {
    %c0_i32 = arith.constant 0 : i32
    %c0_i32_0 = arith.constant 0 : i32
    %c0_i32_1 = arith.constant 0 : i32
    return %arg0, %c0_i32, %c0_i32_0 : i32, i32, i32
  }
  func.func @transform_16(%arg0: i32, %arg1: i32) -> (i32, i32, i32) {
    %c0_i32 = arith.constant 0 : i32
    %c0_i32_0 = arith.constant 0 : i32
    %c0_i32_1 = arith.constant 0 : i32
    return %arg0, %c0_i32, %c0_i32_0 : i32, i32, i32
  }
  func.func @transform_17(%arg0: i32, %arg1: i32) -> (i32, i32, i32) {
    %c0_i32 = arith.constant 0 : i32
    %c0_i32_0 = arith.constant 0 : i32
    %c0_i32_1 = arith.constant 0 : i32
    return %arg0, %c0_i32, %c0_i32_0 : i32, i32, i32
  }
  func.func @transform_18(%arg0: i32, %arg1: i32) -> (i32, i32, i32) {
    %c0_i32 = arith.constant 0 : i32
    %c0_i32_0 = arith.constant 0 : i32
    %c0_i32_1 = arith.constant 0 : i32
    return %arg0, %c0_i32, %c0_i32_0 : i32, i32, i32
  }
  func.func @transform_19(%arg0: i32, %arg1: i32) -> (i32, i32, i32) {
    %c0_i32 = arith.constant 0 : i32
    %c0_i32_0 = arith.constant 0 : i32
    %c0_i32_1 = arith.constant 0 : i32
    return %arg0, %c0_i32, %c0_i32_0 : i32, i32, i32
  }
  func.func @transform_20(%arg0: i32, %arg1: i32) -> (i32, i32, i32) {
    %c0_i32 = arith.constant 0 : i32
    %c0_i32_0 = arith.constant 0 : i32
    %c0_i32_1 = arith.constant 0 : i32
    return %arg0, %c0_i32, %c0_i32_0 : i32, i32, i32
  }
  func.func @transform_21(%arg0: i32, %arg1: i32) -> (i32, i32, i32) {
    %c0_i32 = arith.constant 0 : i32
    %c0_i32_0 = arith.constant 0 : i32
    %c0_i32_1 = arith.constant 0 : i32
    return %arg0, %c0_i32, %c0_i32_0 : i32, i32, i32
  }
  func.func @transform_22(%arg0: i32, %arg1: i32) -> (i32, i32, i32, i32) {
    %c0_i32 = arith.constant 0 : i32
    %c0_i32_0 = arith.constant 0 : i32
    %c0_i32_1 = arith.constant 0 : i32
    return %arg0, %arg1, %c0_i32, %c0_i32_0 : i32, i32, i32, i32
  }
}

</mosaic_0001>

<bundles_post_ra>
// kernel: tpu_custom_call.1
= control target key start
LH: loop header
LB: loop body
LE: loop exit
PB: predicated region body
PF: predicated region fallthrough
CT: control target
= control target key end

     0   :  { %s8384_s0 = inlined_call_operand.vmem [shape: f32[2,4,8,64], index: 0, kind: input, shape index: {}]   ;;  %s8385_s1 = inlined_call_operand.vmem [shape: f32[2,4,1,8], index: 1, kind: input, shape index: {}]   ;;  %s8386_s2 = inlined_call_operand.vmem [shape: f32[2,64,128], index: 2, kind: input, shape index: {}]   ;;  %s8387_s3 = inlined_call_operand.vmem [shape: f32[2,1,128], index: 3, kind: input, shape index: {}]   ;;  %s8388_s4 = inlined_call_operand.vmem [shape: f32[2,128,64], index: 4, kind: input, shape index: {}]   ;;  %s8389_s5 = inlined_call_operand.vmem [shape: f32[2,1,64], index: 5, kind: input, shape index: {}]   ;;  %s8390_s6 = inlined_call_operand.vmem [shape: f32[2,64,64], index: 6, kind: input, shape index: {}]   ;;  %s8391_s7 = inlined_call_operand.vmem [shape: f32[2,1,64], index: 7, kind: input, shape index: {}]   ;;  %s8392_s8 = inlined_call_operand.vmem [shape: f32[2,64,64], index: 8, kind: input, shape index: {}]   ;;  %s8393_s9 = inlined_call_operand.vmem [shape: f32[2,1,64], index: 9, kind: input, shape index: {}]   ;;  %s8394_s10 = inlined_call_operand.vmem [shape: f32[2,64,64], index: 10, kind: input, shape index: {}]   ;;  %s8395_s11 = inlined_call_operand.vmem [shape: f32[2,1,64], index: 11, kind: input, shape index: {}]   ;;  %s8396_s12 = inlined_call_operand.vmem [shape: f32[2,64,64], index: 12, kind: input, shape index: {}]   ;;  %s8397_s13 = inlined_call_operand.vmem [shape: f32[2,1,64], index: 13, kind: input, shape index: {}]   ;;  %s8398_s14 = inlined_call_operand.vmem [shape: f32[2,1,64], index: 14, kind: input, shape index: {}]   ;;  %s8399_s15 = inlined_call_operand.vmem [shape: f32[2,1,64], index: 15, kind: input, shape index: {}]   ;;  %s8400_s16 = inlined_call_operand.vmem [shape: bf16[2,64,2048], index: 16, kind: input, shape index: {}]   ;;  %s8401_s17 = inlined_call_operand.vmem [shape: f32[2,1,2048], index: 17, kind: input, shape index: {}]   ;;  %s8402_s18 = inlined_call_operand.vmem [shape: bf16[2,2048,64], index: 18, kind: input, shape index: {}]   ;;  %s8403_s19 = inlined_call_operand.vmem [shape: f32[2,1,64], index: 19, kind: input, shape index: {}]   ;;  %s8404_s20 = inlined_call_operand.vmem [shape: f32[2,1,64], index: 20, kind: input, shape index: {}]   ;;  %s8405_s21 = inlined_call_operand.vmem [shape: f32[2,1,64], index: 21, kind: input, shape index: {}]   ;;  %s8406_s22 = inlined_call_operand.hbm [shape: f32[2,4,8,64], index: 22, kind: output, shape index: {}]  }
   0x1   :  { %8418 = sst [smem:[#allocation14_spill]] %s8384_s0 }
   0x2   :  { %8419 = sst [smem:[#allocation15_spill]] %s8385_s1 }
   0x3   :  { %8420 = sst [smem:[#allocation16_spill]] %s8386_s2 }
   0x4   :  { %8421 = sst [smem:[#allocation17_spill]] %s8387_s3 }
   0x5   :  { %8422 = sst [smem:[#allocation18_spill]] %s8388_s4 }
   0x6   :  { %8423 = sst [smem:[#allocation19_spill]] %s8389_s5 }
   0x7   :  { %8424 = sst [smem:[#allocation20_spill]] %s8390_s6 }
   0x8   :  { %8425 = sst [smem:[#allocation21_spill]] %s8405_s21 }
   0x9   :  { %8426 = sst [smem:[#allocation22_spill]] %s8406_s22 }
   0xa   :  { %27 = vsyncpa [#allocation3], 0 }
   0xb   :  { %29 = vsyncpa [#allocation3 + $0x1], 0  ;;  %s7431_s3 = smov 0   ;;  %s7433_s28 = smov 0  }
   0xc   :  { %s7435_s29 = smov 0   ;;  %s7437_s30 = smov 0  }
   0xd   :  { %s7439_s4 = smov 0   ;;  %s7441_s0 = smov 0  }
   0xe LB: > { %8427 = sst [smem:[#allocation5_spill]] %s7286_s3  ;;  %s5998_s23 = sadd.s32 4294967295, %s7306_s0   ;;  %s7306_s0 = sphi %s7441_s0, %s35_s0   ;;  %s7302_s4 = sphi %s7439_s4, %s8456_s4   ;;  %s7298_s30 = sphi %s7437_s30, %s8455_s30   ;;  %s7294_s29 = sphi %s7435_s29, %s8454_s29   ;;  %s7290_s28 = sphi %s7433_s28, %s8458_s28   ;;  %s7286_s3 = sphi %s7431_s3, %s8457_s3  }
   0xf   : > { %8428 = sst [smem:[#allocation6_spill]] %s7294_s29  ;;  %s5999_s1 = sadd.s32 4294967294, %s7306_s0  }
  0x10   : > { %8429 = sst [smem:[#allocation7_spill]] %s7298_s30  ;;  %s47_s5 = sadd.s32 1, %s7302_s4 }
  0x11   : > { %8430 = sst [smem:[#allocation8_spill]] %s7302_s4  ;;  %s632_s24 = sadd.s32 1, %s7294_s29 }
  0x12   : > { %8431 = sst [smem:[#allocation9_spill]] %s7306_s0  ;;  %p49_p0 = scmp.ge.s32.totalorder %s47_s5, 2 }
  0x13   : > { %p642_p1 = scmp.ne.s32.totalorder %s7294_s29, %s7290_s28  ;;  %p643_p2 = scmp.eq.s32.totalorder %s5998_s23, 1 }
  0x14   : > { %p648_p3 = scmp.ne.s32.totalorder %s7290_s28, %s7286_s3  ;;  %s8460_s5 = smov (%p49_p0, %s47_s5), 0 }
  0x15   : > { %8432 = sst [smem:[#allocation10_spill]] %s8460_s5  ;;  %p7471_p4 = por %p643_p2, %p642_p1 }
  0x16   : > { %p649_p5 = scmp.eq.s32.totalorder %s5999_s1, 1  ;;  %s627_s25 = ssub.s32 %s7302_s4, %s8460_s5 }
  0x17   : > { %s8433_s6 = scalar_select %p7471_p4, 1, 0 }
  0x18   : > { %p6002_p6 = scmp.ge.s32.totalorder %s7306_s0, 1  ;;  %p630_p7 = scmp.eq.s32.totalorder %s627_s25, 0 }
  0x19   : > { %8434 = sst [smem:[#allocation11_spill]] %s8433_s6  ;;  %p7478_p8 = por %p649_p5, %p648_p3 }
  0x1a   : > { %p829_p9 = scmp.lt.s32.totalorder %s7306_s0, 3 }
  0x1b   : > { %s8435_s26 = scalar_select %p7478_p8, 1, 0 }
  0x1c   : > { %s7484_s2 = scalar_select %p630_p7, %s7294_s29, %s632_s24  }
  0x1d   : > { %8436 = sst [smem:[#allocation12_spill]] %s8435_s26  ;;  %p830_p10 = pnand %p6002_p6, %p829_p9 }
  0x1e   : > { %8437 = sst [smem:[#allocation13_spill]] %s7484_s2  ;;  %p981_p11 = scmp.lt.s32.totalorder (!%p830_p10), %s7298_s30, 1  ;;  %vm1101_vm0 = vcmask (!%p830_p10), 523264   ;;  %vm7309_vm1 = vmmov (!%p830_p10), 0   ;;  %vm1663_vm2 = vcmask (!%p830_p10), 261120   ;;  %vm2296_vm3 = vcmask (!%p830_p10), 64512  }
  0x1f   : > { %833 = sbr.rel (%p830_p10) target bundleno = 3155 (0xc53), region = 108  ;;  %s8438_s4 = sld [smem:[#allocation16_spill]] (!%p830_p10) }
  0x20   : > { %s8439_s29 = sld [smem:[#allocation14_spill]] (!%p830_p10)  ;;  %s8445_s6 = sld [smem:[#allocation21_spill]] (!%p830_p10) }
  0x26   : > { %s7488_s27 = scalar_select %p981_p11, %s7298_s30, 1 }
  0x27   : > { %s8440_s30 = sld [smem:[#allocation18_spill]] }
  0x28   : > { %s7491_s23 = sshll.u32 %s7488_s27, 6  ;;  %s6296_s1 = sshll.u32 %s7488_s27, 5 }
  0x29   : > { %s1003_s26 = scalar_lea.vmem %s8438_s4, %s7491_s23  ;;  %s7501_s3 = scalar_lea.vmem %s8439_s29, %s6296_s1 }
  0x2a   : > { %v1086_v0 = vld [vmem:[%s1003_s26] sm:$0xff]  ;;  %v1087_v1 = vld [vmem:[%s1003_s26 + $0x8] sm:$0xff]  ;;  %v1088_v2 = vld [vmem:[%s1003_s26 + $0x10] sm:$0xff]  ;;  %s6298_s0 = sshll.u32 %s7488_s27, 7  ;;  %s8441_s29 = sld [smem:[#allocation20_spill]] }
  0x2b   : > { %v6870_v3 = vpack.c.bf16 %v1087_v1, %v1086_v0  ;;  %v1089_v4 = vld [vmem:[%s1003_s26 + $0x18] sm:$0xff]  ;;  %v1090_v6 = vld [vmem:[%s1003_s26 + $0x20] sm:$0xff]  ;;  %v1091_v7 = vld [vmem:[%s1003_s26 + $0x28] sm:$0xff]  ;;  %s7543_s5 = scalar_lea.vmem %s8394_s10, %s7491_s23  ;;  %s7569_s24 = scalar_lea.vmem %s8392_s8, %s7491_s23 }
  0x2c   : > { %v6874_v5 = vpack.c.bf16 %v1089_v4, %v1088_v2  ;;  %v1078_v8 = vld [vmem:[%s7501_s3] sm:$0xff]  ;;  %v6878_v12 = vpack.c.bf16 %v1091_v7, %v1090_v6  ;;  %v1092_v13 = vld [vmem:[%s1003_s26 + $0x30] sm:$0xff]  ;;  %v1093_v16 = vld [vmem:[%s1003_s26 + $0x38] sm:$0xff]  ;;  %s8442_s26 = sld [smem:[#allocation17_spill]]  ;;  %s6006_s22 = sshll.u32 %s7488_s27, 2 }
  0x2d   : > { %s7507_s21 = scalar_lea.vmem %s8440_s30, %s6298_s0  ;;  %6871 = vmatprep.subr.bf16.mxu0 %v6870_v3  ;;  %6658 = vmatprep.mubr.msk.f32.mxu0 %vm1101_vm0, %v1078_v8  ;;  %v6882_v20 = vpack.c.bf16 %v1093_v16, %v1092_v13  ;;  %v1079_v25 = vld [vmem:[%s7501_s3 + $0x8] sm:$0xff]  ;;  %v1080_v26 = vld [vmem:[%s7501_s3 + $0x10] sm:$0xff]  ;;  %v1081_v27 = vld [vmem:[%s7501_s3 + $0x18] sm:$0xff]  ;;  %s6303_s1 = sshll.u32 %s7488_s27, 9 }
  0x2e   : > { %6873 = vmatpush3.bf16.msra.mxu0 %v6870_v3  ;;  %v1203_v9 = vld [vmem:[%s7507_s21] sm:$0xff]  ;;  %v1204_v10 = vld [vmem:[%s7507_s21 + $0x8] sm:$0xff]  ;;  %v1205_v11 = vld [vmem:[%s7507_s21 + $0x10] sm:$0xff]  ;;  %s6304_s3 = sshll.u32 %s7488_s27, 10  ;;  %s1072_s0 = scalar_lea.vmem %s8404_s20, %s7488_s27 }
  0x2f   : > { %6875 = vmatprep.subr.bf16.mxu0 %v6874_v5  ;;  %v6886_v14 = vpack.c.bf16 %v1204_v10, %v1203_v9  ;;  %v1206_v15 = vld [vmem:[%s7507_s21 + $0x18] sm:$0xff]  ;;  %v1207_v18 = vld [vmem:[%s7507_s21 + $0x20] sm:$0xff]  ;;  %v1208_v19 = vld [vmem:[%s7507_s21 + $0x28] sm:$0xff] }
  0x30   : > { %v6890_v17 = vpack.c.bf16 %v1206_v15, %v1205_v11  ;;  %v6894_v21 = vpack.c.bf16 %v1208_v19, %v1207_v18  ;;  %v1209_v22 = vld [vmem:[%s7507_s21 + $0x30] sm:$0xff]  ;;  %v1210_v23 = vld [vmem:[%s7507_s21 + $0x38] sm:$0xff]  ;;  %v1211_v28 = vld [vmem:[%s7507_s21 + $0x40] sm:$0xff]  ;;  %s7537_s30 = scalar_lea.vmem %s8441_s29, %s7491_s23  ;;  %s8443_s29 = sld [smem:[#allocation19_spill]] }
  0x31   : > { %6887 = vmatprep.subr.bf16.mxu1 %v6886_v14  ;;  %v6898_v24 = vpack.c.bf16 %v1210_v23, %v1209_v22  ;;  %v1212_v29 = vld [vmem:[%s7507_s21 + $0x48] sm:$0xff]  ;;  %v1213_v31 = vld [vmem:[%s7507_s21 + $0x50] sm:$0xff]  ;;  %v1214_v32 = vld [vmem:[%s7507_s21 + $0x58] sm:$0xff] }
  0x32   : > { %6877 = vmatpush3.bf16.msra.mxu0 %v6874_v5  ;;  %6889 = vmatpush3.bf16.msra.mxu1 %v6886_v14  ;;  %v6902_v30 = vpack.c.bf16 %v1212_v29, %v1211_v28  ;;  %v6906_v33 = vpack.c.bf16 %v1214_v32, %v1213_v31  ;;  %v1215_v34 = vld [vmem:[%s7507_s21 + $0x60] sm:$0xff]  ;;  %v1216_v35 = vld [vmem:[%s7507_s21 + $0x68] sm:$0xff]  ;;  %v1217_v37 = vld [vmem:[%s7507_s21 + $0x70] sm:$0xff]  ;;  %s1006_s2 = scalar_lea.vmem %s8442_s26, %s7488_s27  ;;  %s1038_s26 = scalar_lea.vmem %s8395_s11, %s7488_s27 }
  0x33   : > { %6879 = vmatprep.subr.bf16.mxu0 %v6878_v12  ;;  %6891 = vmatprep.subr.bf16.mxu1 %v6890_v17  ;;  %v6910_v36 = vpack.c.bf16 %v1216_v35, %v1215_v34  ;;  %v1218_v38 = vld [vmem:[%s7507_s21 + $0x78] sm:$0xff]  ;;  %v1311_v40 = vld [vmem:[%s7537_s30] sm:$0xff]  ;;  %v1312_v41 = vld [vmem:[%s7537_s30 + $0x8] sm:$0xff]  ;;  %v7308_v34 = vmov 0.0   ;;  %s1043_s21 = scalar_lea.vmem %s8396_s12, %s7491_s23  ;;  %s7311_s23 = smov 32  }
  0x34   : > { %v6914_v39 = vpack.c.bf16 %v1218_v38, %v1217_v37  ;;  %v1523_v42 = vld [vmem:[%s7543_s5] sm:$0xff]  ;;  %v6918_v43 = vpack.c.bf16 %v1312_v41, %v1311_v40  ;;  %v1524_v44 = vld [vmem:[%s7543_s5 + $0x8] sm:$0xff]  ;;  %v1313_v45 = vld [vmem:[%s7537_s30 + $0x10] sm:$0xff] }
  0x35   : > { %v1314_v46 = vld [vmem:[%s7537_s30 + $0x18] sm:$0xff]  ;;  %v6950_v47 = vpack.c.bf16 %v1524_v44, %v1523_v42  ;;  %v1315_v49 = vld [vmem:[%s7537_s30 + $0x20] sm:$0xff]  ;;  %v1316_v50 = vld [vmem:[%s7537_s30 + $0x28] sm:$0xff] }
  0x36   : > { %6881 = vmatpush3.bf16.msra.mxu0 %v6878_v12  ;;  %6893 = vmatpush3.bf16.msra.mxu1 %v6890_v17  ;;  %v6922_v48 = vpack.c.bf16 %v1314_v46, %v1313_v45  ;;  %v6926_v51 = vpack.c.bf16 %v1316_v50, %v1315_v49  ;;  %v6024_v52 = vld [vmem:[%s1006_s2] ss:$0 sm:$0xff]  ;;  %v1525_v61 = vld [vmem:[%s7543_s5 + $0x10] sm:$0xff]  ;;  %v1526_v62 = vld [vmem:[%s7543_s5 + $0x18] sm:$0xff]  ;;  %s7310_s2 = smov 96  }
  0x37   : > { %6883 = vmatprep.subr.bf16.mxu0 %v6882_v20  ;;  %6895 = vmatprep.subr.bf16.mxu1 %v6894_v21  ;;  %v6954_v0 = vpack.c.bf16 %v1526_v62, %v1525_v61  ;;  %v1527_v2 = vld [vmem:[%s7543_s5 + $0x20] sm:$0xff]  ;;  %v1528_v3 = vld [vmem:[%s7543_s5 + $0x28] sm:$0xff]  ;;  %v1317_v7 = vld [vmem:[%s7537_s30 + $0x30] sm:$0xff] }
  0x38   : > { %v6958_v6 = vpack.c.bf16 %v1528_v3, %v1527_v2  ;;  %v1318_v8 = vld [vmem:[%s7537_s30 + $0x38] sm:$0xff]  ;;  %v1529_v10 = vld [vmem:[%s7543_s5 + $0x30] sm:$0xff]  ;;  %v1423_v13 = vld [vmem:[%s7569_s24] sm:$0xff]  ;;  %s1014_s30 = scalar_lea.vmem %s8443_s29, %s7488_s27  ;;  %s1069_s29 = scalar_lea.vmem %s8403_s19, %s7488_s27 }
  0x39   : > { %v6930_v9 = vpack.c.bf16 %v1318_v8, %v1317_v7  ;;  %v1530_v11 = vld [vmem:[%s7543_s5 + $0x38] sm:$0xff]  ;;  %v1424_v14 = vld [vmem:[%s7569_s24 + $0x8] sm:$0xff]  ;;  %v6029_v16 = vld [vmem:[%s1014_s30] ss:$0 sm:$0xff]  ;;  %s1022_s5 = scalar_lea.vmem %s8391_s7, %s7488_s27  ;;  %s8444_s30 = sld [smem:[#allocation15_spill]] }
  0x3a   : > { %6885 = vmatpush3.bf16.msra.mxu0 %v6882_v20  ;;  %6897 = vmatpush3.bf16.msra.mxu1 %v6894_v21  ;;  %v6962_v12 = vpack.c.bf16 %v1530_v11, %v1529_v10  ;;  %v6934_v15 = vpack.c.bf16 %v1424_v14, %v1423_v13  ;;  %v1425_v18 = vld [vmem:[%s7569_s24 + $0x10] sm:$0xff]  ;;  %v1426_v19 = vld [vmem:[%s7569_s24 + $0x18] sm:$0xff]  ;;  %v6030_v35 = vld [vmem:[%s1022_s5] ss:$0 sm:$0xff]  ;;  %s977_s5 = sand.u32 1, %s7290_s28  }
  0x3b   : > { %6899 = vmatprep.subr.bf16.mxu1 %v6898_v24  ;;  %6919 = vmatprep.subr.bf16.mxu0 %v6918_v43  ;;  %v6938_v23 = vpack.c.bf16 %v1426_v19, %v1425_v18  ;;  %v1429_v31 = vld [vmem:[%s7569_s24 + $0x30] sm:$0xff]  ;;  %v1430_v32 = vld [vmem:[%s7569_s24 + $0x38] sm:$0xff]  ;;  %v7633_v41 = vld [vmem:[%s1038_s26] ss:$0 sm:$0xff]  ;;  %s1052_s26 = scalar_lea.vmem %s8399_s15, %s7488_s27 }
  0x3d   : > { %6659 = vmatmul.mubr.msk.f32.vlgmr.msra.gmra.mrb[0].mxu0 %vm1101_vm0, %v1079_v25  ;;  %v1427_v25 = vld [vmem:[%s7569_s24 + $0x20] sm:$0xff] }
  0x3e   : > { %6661 = vmatprep.mubr.msk.f32.mxu0 %vm1101_vm0, %v1080_v26  ;;  %6901 = vmatpush3.bf16.msra.mxu1 %v6898_v24  ;;  %v1428_v26 = vld [vmem:[%s7569_s24 + $0x28] sm:$0xff]  ;;  %s1030_s24 = scalar_lea.vmem %s8393_s9, %s7488_s27 }
  0x3f   : > { %6903 = vmatprep.subr.bf16.mxu1 %v6902_v30  ;;  %6921 = vmatpush3.bf16.msra.mxu0 %v6918_v43  ;;  %v6035_v49 = vld [vmem:[%s1030_s24] ss:$0 sm:$0xff]  ;;  %s997_s4 = scalar_lea.vmem %s8444_s30, %s6006_s22  ;;  %s7807_s22 = scalar_lea.vmem %s8400_s16, %s6303_s1 }
  0x40   : > { %6923 = vmatprep.subr.bf16.mxu0 %v6922_v48  ;;  %v6061_v7 = vld [vmem:[%s997_s4] ss:$0 sm:$0xff]  ;;  %v6063_v18 = vld [vmem:[%s997_s4 + $0x2] ss:$0 sm:$0xff]  ;;  %s8446_s1 = sld [smem:[#allocation7_spill]]  ;;  %s8448_s30 = sld [smem:[#allocation22_spill]] }
  0x41   : > { %6662 = vmatmul.mubr.msk.f32.gmra.mrb[2].mxu0 %vm1101_vm0, %v1081_v27 }
  0x42   : > { %6905 = vmatpush3.bf16.msra.mxu1 %v6902_v30  ;;  %v6942_v30 = vpack.c.bf16 %v1428_v26, %v1427_v25  ;;  %v6064_v26 = vld [vmem:[%s997_s4 + $0x3] ss:$0 sm:$0xff] }
  0x43   : > { %6907 = vmatprep.subr.bf16.mxu1 %v6906_v33  ;;  %6925 = vmatpush3.bf16.msra.mxu0 %v6922_v48 }
  0x44   : > { %6927 = vmatprep.subr.bf16.mxu0 %v6926_v51 }
  0x46   : > { %6909 = vmatpush3.bf16.msra.mxu1 %v6906_v33  ;;  %v6946_v33 = vpack.c.bf16 %v1430_v32, %v1429_v31 }
  0x47   : > { %6911 = vmatprep.subr.bf16.mxu1 %v6910_v36  ;;  %6929 = vmatpush3.bf16.msra.mxu0 %v6926_v51 }
  0x48   : > { %6931 = vmatprep.subr.bf16.mxu0 %v6930_v9 }
  0x4a   : > { %6913 = vmatpush3.bf16.msra.mxu1 %v6910_v36 }
  0x4b   : > { %6915 = vmatprep.subr.bf16.mxu1 %v6914_v39  ;;  %6933 = vmatpush3.bf16.msra.mxu0 %v6930_v9 }
  0x4c   : > { %6935 = vmatprep.subr.bf16.mxu0 %v6934_v15 }
  0x4e   : > { %6917 = vmatpush3.bf16.msra.mxu1 %v6914_v39 }
  0x4f   : > { %6951 = vmatprep.subr.bf16.mxu1 %v6950_v47 }
 0x110   : > { %v6660_v53 = vpop.f32.mrb[0].mxu0 }
 0x111   : > { %v1186_v54 = vadd.f32 %v6660_v53, %v6024_v52  ;;  %v1180_v55 = vpop.f32.mrb[1].mxu0 }
 0x112   : > { %v1181_v56 = vadd.f32 %v6024_v52, %v1180_v55 }
 0x114   : > { %7172 = vtanh.f32 %v1181_v56  ;;  %v6663_v57 = vpop.f32.mrb[2].mxu0 }
 0x115   : > { %7174 = vtanh.f32 %v1186_v54  ;;  %v1196_v58 = vadd.f32 %v6663_v57, %v6024_v52  ;;  %v1190_v59 = vpop.f32.mrb[3].mxu0 }
 0x116   : > { %v1191_v60 = vadd.f32 %v6024_v52, %v1190_v59 }
 0x117   : > { %7176 = vtanh.f32 %v1196_v58 }
 0x118   : > { %7178 = vtanh.f32 %v1191_v60 }
 0x11e   : > { %v7173_v63 = vpop.eup %7172 }
 0x11f   : > { %v7175_v1 = vpop.eup %7174  ;;  %6696 = vmatprep.mubr.f32.mxu1 %v7173_v63 }
 0x120   : > { %6697 = vmatmul.mubr.f32.vlgmr.msra.gmra.mrb[0].mxu1 %v7175_v1 }
 0x121   : > { %v7177_v4 = vpop.eup %7176  ;;  %6953 = vmatpush3.bf16.msra.mxu1 %v6950_v47 }
 0x122   : > { %v7179_v5 = vpop.eup %7178  ;;  %6955 = vmatprep.subr.bf16.mxu1 %v6954_v0 }
 0x123   : > { %6699 = vmatprep.mubr.f32.mxu1 %v7179_v5 }
 0x124   : > { %6700 = vmatmul.mubr.f32.gmra.mrb[2].mxu1 %v7177_v4 }
 0x125   : > { %6957 = vmatpush3.bf16.msra.mxu1 %v6954_v0 }
 0x126   : > { %6959 = vmatprep.subr.bf16.mxu1 %v6958_v6 }
 0x129   : > { %6961 = vmatpush3.bf16.msra.mxu1 %v6958_v6 }
 0x12a   : > { %6963 = vmatprep.subr.bf16.mxu1 %v6962_v12 }
 0x12d   : > { %6965 = vmatpush3.bf16.msra.mxu1 %v6962_v12  ;;  %v6062_v12 = vld [vmem:[%s997_s4 + $0x1] ss:$0 sm:$0xff]  ;;  %s7847_s4 = scalar_lea.vmem %s8402_s18, %s6304_s3 }
 0x12e   : > { %6768 = vmatprep.subr.mxu1 %v7308_v34 }
 0x1f3   : > { %v6698_v17 = vpop.f32.mrb[0].mxu1 }
 0x1f4   : > { %v1292_v20 = vpop.f32.mrb[1].mxu1  ;;  %v7581_v22 = vadd.f32 %v6698_v17, %v6029_v16 }
 0x1f5   : > { %v7579_v21 = vadd.f32 %v6029_v16, %v1292_v20 }
 0x1f7   : > { %v6701_v24 = vpop.f32.mrb[2].mxu1  ;;  %6718 = vmatprep.mubr.msk.f32.mxu0 %vm1101_vm0, %v7579_v21  ;;  %6762 = vmatprep.mubr.msk.f32.mxu1 %vm1101_vm0, %v7579_v21 }
 0x1f8   : > { %v7589_v27 = vadd.f32 %v6701_v24, %v6029_v16  ;;  %v1302_v28 = vpop.f32.mrb[3].mxu1  ;;  %6719 = vmatmul.mubr.msk.f32.vlgmr.msra.gmra.mrb[4].mxu0 %vm1101_vm0, %v7581_v22  ;;  %6763 = vmatmul.mubr.msk.f32.vlgmr.msra.gmra.mrb[4].mxu1 %vm1101_vm0, %v7581_v22 }
 0x1f9   : > { %v7595_v29 = vadd.f32 %v6029_v16, %v1302_v28  ;;  %6937 = vmatpush3.bf16.msra.mxu0 %v6934_v15 }
 0x1fa   : > { %6939 = vmatprep.subr.bf16.mxu0 %v6938_v23 }
 0x1fb   : > { %6721 = vmatprep.mubr.msk.f32.mxu0 %vm1101_vm0, %v7595_v29  ;;  %6765 = vmatprep.mubr.msk.f32.mxu1 %vm1101_vm0, %v7595_v29 }
 0x1fc   : > { %6722 = vmatmul.mubr.msk.f32.gmra.mrb[6].mxu0 %vm1101_vm0, %v7589_v27  ;;  %6766 = vmatmul.mubr.msk.f32.gmra.mrb[6].mxu1 %vm1101_vm0, %v7589_v27 }
 0x1fd   : > { %6941 = vmatpush3.bf16.msra.mxu0 %v6938_v23  ;;  %6740 = vmatprep.mubr.msk.f32.mxu0 %vm1101_vm0, %v7579_v21 }
 0x1fe   : > { %6943 = vmatprep.subr.bf16.mxu0 %v6942_v30  ;;  %6770 = vmatprep.mubr.msk.f32.mxu1 %vm7309_vm1, %v7308_v34 }
 0x201   : > { %6945 = vmatpush3.bf16.msra.mxu0 %v6942_v30 }
 0x202   : > { %6947 = vmatprep.subr.bf16.mxu0 %v6946_v33 }
 0x205   : > { %6949 = vmatpush3.bf16.msra.mxu0 %v6946_v33 }
 0x206   : > { %6788 = vmatprep.subr.mxu0 %v7308_v34 }
 0x208   : > { %6741 = vmatmul.mubr.msk.f32.vlgmr.msra.gmra.mrb[8].mxu0 %vm1101_vm0, %v7581_v22 }
 0x209   : > { %6743 = vmatprep.mubr.msk.f32.mxu0 %vm1101_vm0, %v7595_v29 }
 0x20c   : > { %6744 = vmatmul.mubr.msk.f32.gmra.mrb[10].mxu0 %vm1101_vm0, %v7589_v27 }
 0x20d   : > { %6790 = vmatprep.mubr.msk.f32.mxu0 %vm7309_vm1, %v7308_v34 }
 0x2cb   : > { %v6720_v36 = vpop.f32.mrb[4].mxu0  ;;  %v7625_v37 = vpop.f32.mrb[4].mxu1 }
 0x2cc   : > { %v1404_v38 = vpop.f32.mrb[5].mxu0  ;;  %v7631_v39 = vpop.f32.mrb[5].mxu1  ;;  %v1410_v47 = vadd.f32 %v6720_v36, %v6030_v35  ;;  %v7688_v2 = vadd.f32 %v7625_v37, %v7633_v41 }
 0x2cd   : > { %v1405_v40 = vadd.f32 %v6030_v35, %v1404_v38  ;;  %v7693_v4 = vadd.f32 %v7633_v41, %v7631_v39 }
 0x2cf   : > { %1627 = vrot.lane.b32.xlu1 %v1405_v40, %s7310_s2  ;;  %v6723_v42 = vpop.f32.mrb[6].mxu0  ;;  %v6767_v43 = vpop.f32.mrb[6].mxu1 }
 0x2d0   : > { %v7637_v44 = vadd.f32 %v6767_v43, %v7633_v41  ;;  %v1414_v45 = vpop.f32.mrb[7].mxu0  ;;  %v1614_v46 = vpop.f32.mrb[7].mxu1  ;;  %v1420_v57 = vadd.f32 %v6723_v42, %v6030_v35 }
 0x2d1   : > { %v7640_v48 = vadd.f32 %v7633_v41, %v1614_v46  ;;  %v1415_v59 = vadd.f32 %v6030_v35, %v1414_v45 }
 0x2d3   : > { %1629 = vrot.lane.b32.xlu1 %v1410_v47, %s7310_s2 }
 0x2db   : > { %v6742_v50 = vpop.f32.mrb[8].mxu0 }
 0x2dc   : > { %v1504_v51 = vpop.f32.mrb[9].mxu0  ;;  %v1510_v56 = vadd.f32 %v6742_v50, %v6035_v49 }
 0x2dd   : > { %v1505_v52 = vadd.f32 %v6035_v49, %v1504_v51 }
 0x2df   : > { %v6745_v53 = vpop.f32.mrb[10].mxu0  ;;  %1639 = vrot.lane.b32.xlu0 %v1505_v52, %s7310_s2  ;;  %6769 = vmatpush3.xpose.msk.msra.mxu1 %vm1663_vm2, %v1505_v52 }
 0x2e0   : > { %v1520_v54 = vadd.f32 %v6745_v53, %v6035_v49  ;;  %v1514_v55 = vpop.f32.mrb[11].mxu0  ;;  %6773 = vmatprep.subr.mxu1 %v7308_v34 }
 0x2e1   : > { %v1515_v58 = vadd.f32 %v6035_v49, %v1514_v55 }
 0x2e2   : > { %1645 = vrot.lane.b32.xlu1 %v1520_v54, %s7310_s2  ;;  %6771 = vmatmul.mubr.msk.f32.vlgmr.msra.gmra.mrb[8].mxu1 %vm1663_vm2, %v1405_v40 }
 0x2e3   : > { %1641 = vrot.lane.b32.xlu0 %v1510_v56, %s7310_s2  ;;  %6774 = vmatpush3.xpose.msk.msra.mxu1 %vm1663_vm2, %v1510_v56 }
 0x2e4   : > { %6775 = vmatprep.mubr.msk.f32.mxu1 %vm7309_vm1, %v7308_v34  ;;  %6778 = vmatprep.subr.mxu1 %v7308_v34 }
 0x2e6   : > { %1633 = vrot.lane.b32.xlu1 %v1420_v57, %s7310_s2  ;;  %6776 = vmatmul.mubr.msk.f32.vlgmr.msra.gmra.mrb[10].mxu1 %vm1663_vm2, %v1410_v47 }
 0x2e7   : > { %1643 = vrot.lane.b32.xlu0 %v1515_v58, %s7310_s2  ;;  %6779 = vmatpush3.xpose.msk.msra.mxu1 %vm1663_vm2, %v1515_v58 }
 0x2e8   : > { %6780 = vmatprep.mubr.msk.f32.mxu1 %vm7309_vm1, %v7308_v34  ;;  %6783 = vmatprep.subr.mxu1 %v7308_v34 }
 0x2ea   : > { %6781 = vmatmul.mubr.msk.f32.vlgmr.msra.gmra.mrb[12].mxu1 %vm1663_vm2, %v1415_v59 }
 0x2eb   : > { %1631 = vrot.lane.b32.xlu0 %v1415_v59, %s7310_s2  ;;  %6784 = vmatpush3.xpose.msk.msra.mxu1 %vm1663_vm2, %v1520_v54 }
 0x2ec   : > { %6785 = vmatprep.mubr.msk.f32.mxu1 %vm7309_vm1, %v7308_v34  ;;  %6793 = vmatprep.subr.mxu1 %v7308_v34 }
 0x2ee   : > { %6786 = vmatmul.mubr.msk.f32.vlgmr.msra.gmra.mrb[14].mxu1 %vm1663_vm2, %v1420_v57 }
 0x2ef   : > { %6795 = vmatprep.mubr.msk.f32.mxu1 %vm7309_vm1, %v7308_v34 }
 0x341   : > { %v1628_v60 = vpop.permute.xlu1 %1627 }
 0x345   : > { %v1630_v62 = vpop.permute.xlu1 %1629 }
 0x351   : > { %v1640_v61 = vpop.permute.xlu0 %1639 }
 0x352   : > { %6789 = vmatpush3.xpose.msk.msra.mxu0 %vm1663_vm2, %v1640_v61 }
 0x353   : > { %6798 = vmatprep.subr.mxu0 %v7308_v34 }
 0x354   : > { %v1646_v0 = vpop.permute.xlu1 %1645 }
 0x355   : > { %v1642_v63 = vpop.permute.xlu0 %1641  ;;  %6791 = vmatmul.mubr.msk.f32.vlgmr.msra.gmra.mrb[12].mxu0 %vm1663_vm2, %v1628_v60 }
 0x356   : > { %6794 = vmatpush3.xpose.msk.msra.mxu1 %vm1663_vm2, %v1642_v63  ;;  %6800 = vmatprep.mubr.msk.f32.mxu0 %vm7309_vm1, %v7308_v34 }
 0x357   : > { %6803 = vmatprep.subr.mxu1 %v7308_v34 }
 0x358   : > { %v1634_v3 = vpop.permute.xlu1 %1633 }
 0x359   : > { %v1644_v1 = vpop.permute.xlu0 %1643  ;;  %6796 = vmatmul.mubr.msk.f32.vlgmr.msra.gmra.mrb[16].mxu1 %vm1663_vm2, %v1630_v62 }
 0x35a   : > { %6799 = vmatpush3.xpose.msk.msra.mxu0 %vm1663_vm2, %v1644_v1  ;;  %6804 = vmatpush3.xpose.msk.msra.mxu1 %vm1663_vm2, %v1646_v0 }
 0x35b   : > { %6805 = vmatprep.mubr.msk.f32.mxu1 %vm7309_vm1, %v7308_v34  ;;  %6808 = vmatprep.subr.mxu0 %v7308_v34 }
 0x35c   : > { %6813 = vmatprep.subr.mxu1 %v7308_v34 }
 0x35d   : > { %v1632_v5 = vpop.permute.xlu0 %1631  ;;  %6806 = vmatmul.mubr.msk.f32.vlgmr.msra.gmra.mrb[18].mxu1 %vm1663_vm2, %v1634_v3 }
 0x35e   : > { %6801 = vmatmul.mubr.msk.f32.vlgmr.msra.gmra.mrb[14].mxu0 %vm1663_vm2, %v1632_v5  ;;  %6814 = vmatpush3.msra.mxu1 %v7688_v2 }
 0x35f   : > { %6809 = vmatpush3.msra.mxu0 %v7693_v4  ;;  %6815 = vmatprep.mubr.msk.f32.mxu1 %vm7309_vm1, %v7308_v34 }
 0x360   : > { %6823 = vmatprep.subr.mxu1 %v7308_v34  ;;  %6810 = vmatprep.mubr.msk.f32.mxu0 %vm7309_vm1, %v7308_v34 }
 0x361   : > { %6818 = vmatprep.subr.mxu0 %v7308_v34 }
 0x3b5   : > { %v1734_v6 = vpop.f32.mrb[8].mxu1 }
 0x3b6   : > { %v2256_v8 = vmul.f32 0.17677669, %v1734_v6  ;;  %v6772_v9 = vpop.f32.mrb[9].mxu1 }
 0x3b8   : > { %v2288_v10 = vadd.f32 %v6061_v7, %v2256_v8 }
 0x3b9   : > { %v1808_v11 = vpop.f32.mrb[10].mxu1 }
 0x3ba   : > { %v2257_v13 = vmul.f32 0.17677669, %v1808_v11  ;;  %v6777_v14 = vpop.f32.mrb[11].mxu1  ;;  %v2297_v15 = vsel %vm2296_vm3, %v2288_v10, -inf }
 0x3bb   : > { %2298 = vmax.xlane.f32.xlu0 %v2297_v15 }
 0x3bc   : > { %v2289_v16 = vadd.f32 %v6062_v12, %v2257_v13 }
 0x3bd   : > { %v1882_v17 = vpop.f32.mrb[12].mxu1 }
 0x3be   : > { %v2258_v19 = vmul.f32 0.17677669, %v1882_v17  ;;  %v6782_v20 = vpop.f32.mrb[13].mxu1  ;;  %v2300_v23 = vsel %vm2296_vm3, %v2289_v16, -inf }
 0x3bf   : > { %2301 = vmax.xlane.f32.xlu1 %v2300_v23 }
 0x3c0   : > { %v2290_v24 = vadd.f32 %v6063_v18, %v2258_v19 }
 0x3c1   : > { %v1956_v25 = vpop.f32.mrb[14].mxu1 }
 0x3c2   : > { %v2259_v28 = vmul.f32 0.17677669, %v1956_v25  ;;  %v6787_v30 = vpop.f32.mrb[15].mxu1  ;;  %v2303_v31 = vsel %vm2296_vm3, %v2290_v24, -inf }
 0x3c3   : > { %2304 = vmax.xlane.f32.xlu0 %v2303_v31 }
 0x3c4   : > { %v2291_v32 = vadd.f32 %v6064_v26, %v2259_v28 }
 0x3c6   : > { %v2306_v33 = vsel %vm2296_vm3, %v2291_v32, -inf }
 0x3c7   : > { %2307 = vmax.xlane.f32.xlu0 %v2306_v33 }
 0x428   : > { %v2030_v35 = vpop.f32.mrb[12].mxu0 }
 0x429   : > { %v2260_v36 = vmul.f32 0.17677669, %v2030_v35  ;;  %v6792_v37 = vpop.f32.mrb[13].mxu0 }
 0x42b   : > { %v2292_v38 = vadd.f32 %v6061_v7, %v2260_v36 }
 0x42c   : > { %v2104_v39 = vpop.f32.mrb[16].mxu1 }
 0x42d   : > { %v2261_v40 = vmul.f32 0.17677669, %v2104_v39  ;;  %v6797_v41 = vpop.f32.mrb[17].mxu1  ;;  %v2309_v42 = vsel %vm2296_vm3, %v2292_v38, -inf }
 0x42e   : > { %2310 = vmax.xlane.f32.xlu1 %v2309_v42 }
 0x42f   : > { %v2293_v43 = vadd.f32 %v6062_v12, %v2261_v40 }
 0x430   : > { %v2252_v45 = vpop.f32.mrb[18].mxu1 }
 0x431   : > { %v2263_v46 = vmul.f32 0.17677669, %v2252_v45  ;;  %v2178_v47 = vpop.f32.mrb[14].mxu0  ;;  %v6807_v49 = vpop.f32.mrb[19].mxu1  ;;  %v2312_v50 = vsel %vm2296_vm3, %v2293_v43, -inf }
 0x432   : > { %v2262_v51 = vmul.f32 0.17677669, %v2178_v47  ;;  %v6802_v52 = vpop.f32.mrb[15].mxu0  ;;  %2313 = vmax.xlane.f32.xlu0 %v2312_v50 }
 0x433   : > { %v2295_v53 = vadd.f32 %v6064_v26, %v2263_v46 }
 0x434   : > { %v2294_v54 = vadd.f32 %v6063_v18, %v2262_v51 }
 0x435   : > { %v2318_v55 = vsel %vm2296_vm3, %v2295_v53, -inf }
 0x436   : > { %2319 = vmax.xlane.f32.xlu0 %v2318_v55  ;;  %v2315_v56 = vsel %vm2296_vm3, %v2294_v54, -inf }
 0x437   : > { %2316 = vmax.xlane.f32.xlu1 %v2315_v56 }
 0x448   : > { %1651 = vrot.lane.b32.xlu1 %v7693_v4, %s7310_s2  ;;  %v2299_v57 = vpop.xlane.xlu0 %2298 }
 0x449   : > { %v2321_v0 = vsub.f32 %v2288_v10, %v2299_v57 }
 0x44b   : > { %v2329_v3 = vmul.f32 1.442695, %v2321_v0 }
 0x44c   : > { %v2302_v58 = vpop.xlane.xlu1 %2301 }
 0x44d   : > { %v2322_v59 = vsub.f32 %v2289_v16, %v2302_v58 }
 0x44f   : > { %v2331_v60 = vmul.f32 1.442695, %v2322_v59 }
 0x450   : > { %v2305_v61 = vpop.xlane.xlu0 %2304 }
 0x451   : > { %7180 = vpow2.f32 %v2331_v60  ;;  %v2323_v5 = vsub.f32 %v2290_v24, %v2305_v61 }
 0x453   : > { %v2333_v8 = vmul.f32 1.442695, %v2323_v5 }
 0x454   : > { %v2308_v62 = vpop.xlane.xlu0 %2307 }
 0x455   : > { %v2324_v63 = vsub.f32 %v2291_v32, %v2308_v62 }
 0x457   : > { %v2335_v1 = vmul.f32 1.442695, %v2324_v63 }
 0x459   : > { %7182 = vpow2.f32 %v2335_v1 }
 0x45a   : > { %7184 = vpow2.f32 %v2329_v3 }
 0x45b   : > { %v7181_v6 = vpop.eup %7180  ;;  %7186 = vpow2.f32 %v2333_v8 }
 0x45c   : > { %v2348_v7 = vsel %vm2296_vm3, %v7181_v6, 0.0 }
 0x45d   : > { %2349 = vadd.xlane.f32.xlu0 %v2348_v7 }
 0x463   : > { %v7183_v4 = vpop.eup %7182 }
 0x464   : > { %v2354_v9 = vsel %vm2296_vm3, %v7183_v4, 0.0  ;;  %v7185_v11 = vpop.eup %7184 }
 0x465   : > { %2355 = vadd.xlane.f32.xlu0 %v2354_v9  ;;  %v2345_v12 = vsel %vm2296_vm3, %v7185_v11, 0.0  ;;  %v7187_v13 = vpop.eup %7186 }
 0x466   : > { %v2351_v10 = vsel %vm2296_vm3, %v7187_v13, 0.0 }
 0x46c   : > { %2346 = vadd.xlane.f32.xlu1 %v2345_v12  ;;  %v2990_v12 = vld [vmem:[%s1043_s21 + $0x8] sm:$0xff] }
 0x470   : > { %2352 = vadd.xlane.f32.xlu1 %v2351_v10 }
 0x4bb   : > { %v2311_v14 = vpop.xlane.xlu1 %2310 }
 0x4bc   : > { %v2325_v15 = vsub.f32 %v2292_v38, %v2311_v14  ;;  %v2992_v14 = vld [vmem:[%s1043_s21 + $0x18] sm:$0xff] }
 0x4be   : > { %v2337_v16 = vmul.f32 1.442695, %v2325_v15 }
 0x4bf   : > { %v2314_v17 = vpop.xlane.xlu0 %2313 }
 0x4c0   : > { %7188 = vpow2.f32 %v2337_v16  ;;  %v2326_v18 = vsub.f32 %v2293_v43, %v2314_v17  ;;  %v2993_v16 = vld [vmem:[%s1043_s21 + $0x20] sm:$0xff]  ;;  %v2994_v17 = vld [vmem:[%s1043_s21 + $0x28] sm:$0xff] }
 0x4c2   : > { %v2339_v19 = vmul.f32 1.442695, %v2326_v18  ;;  %v6974_v18 = vpack.c.bf16 %v2994_v17, %v2993_v16  ;;  %v3214_v17 = vld [vmem:[%s7807_s22 + $0x100] sm:$0xff] }
 0x4c3   : > { %v2320_v20 = vpop.xlane.xlu0 %2319 }
 0x4c4   : > { %7190 = vpow2.f32 %v2339_v19  ;;  %v2328_v23 = vsub.f32 %v2295_v53, %v2320_v20  ;;  %v2317_v33 = vpop.xlane.xlu1 %2316  ;;  %v2995_v19 = vld [vmem:[%s1043_s21 + $0x30] sm:$0xff]  ;;  %v2996_v20 = vld [vmem:[%s1043_s21 + $0x38] sm:$0xff] }
 0x4c5   : > { %v2327_v35 = vsub.f32 %v2294_v54, %v2317_v33 }
 0x4c6   : > { %v2343_v24 = vmul.f32 1.442695, %v2328_v23  ;;  %v6978_v23 = vpack.c.bf16 %v2996_v20, %v2995_v19  ;;  %v3215_v19 = vld [vmem:[%s7807_s22 + $0x108] sm:$0xff] }
 0x4c7   : > { %v2341_v37 = vmul.f32 1.442695, %v2327_v35 }
 0x4c8   : > { %7192 = vpow2.f32 %v2343_v24  ;;  %v1652_v40 = vpop.permute.xlu1 %1651 }
 0x4ca   : > { %v7189_v25 = vpop.eup %7188 }
 0x4cb   : > { %v2357_v26 = vsel %vm2296_vm3, %v7189_v25, 0.0 }
 0x4cc   : > { %2358 = vadd.xlane.f32.xlu1 %v2357_v26 }
 0x4ce   : > { %v7191_v28 = vpop.eup %7190 }
 0x4cf   : > { %v2360_v30 = vsel %vm2296_vm3, %v7191_v28, 0.0 }
 0x4d0   : > { %2361 = vadd.xlane.f32.xlu0 %v2360_v30 }
 0x4d2   : > { %v7725_v31 = vpop.eup %7192 }
 0x4d3   : > { %v2366_v32 = vsel %vm2296_vm3, %v7725_v31, 0.0 }
 0x4d4   : > { %2367 = vadd.xlane.f32.xlu0 %v2366_v32 }
 0x4dd   : > { %1655 = vrot.lane.b32.xlu1 %v7640_v48, %s7310_s2 }
 0x4ea   : > { %1653 = vrot.lane.b32.xlu0 %v7688_v2, %s7310_s2  ;;  %v2350_v36 = vpop.xlane.xlu0 %2349 }
 0x4eb   : > { %7194 = vrcp.f32 %v2350_v36 }
 0x4ec   : > { %7196 = vpow2.f32 %v2341_v37 }
 0x4f2   : > { %v2356_v38 = vpop.xlane.xlu0 %2355 }
 0x4f3   : > { %7198 = vrcp.f32 %v2356_v38 }
 0x4f5   : > { %v7195_v39 = vpop.eup %7194 }
 0x4f6   : > { %v2378_v41 = vmul.f32 %v7195_v39, %v7181_v6  ;;  %v7197_v2 = vpop.eup %7196 }
 0x4f7   : > { %v2363_v47 = vsel %vm2296_vm3, %v7197_v2, 0.0 }
 0x4f8   : > { %6816 = vmatmul.mubr.msk.f32.vlgmr.msra.gmra.mrb[20].mxu1 %vm2296_vm3, %v2378_v41 }
 0x4f9   : > { %6824 = vmatpush3.msra.mxu1 %v7637_v44  ;;  %v2347_v42 = vpop.xlane.xlu1 %2346  ;;  %6825 = vmatprep.mubr.msk.f32.mxu1 %vm7309_vm1, %v7308_v34 }
 0x4fa   : > { %7200 = vrcp.f32 %v2347_v42  ;;  %6833 = vmatprep.subr.mxu1 %v7308_v34 }
 0x4fd   : > { %v7199_v43 = vpop.eup %7198  ;;  %v2353_v45 = vpop.xlane.xlu1 %2352 }
 0x4fe   : > { %v2380_v46 = vmul.f32 %v7199_v43, %v7183_v4  ;;  %7202 = vrcp.f32 %v2353_v45 }
 0x500   : > { %6826 = vmatmul.mubr.msk.f32.vlgmr.msra.gmra.mrb[22].mxu1 %vm2296_vm3, %v2380_v46 }
 0x501   : > { %2364 = vadd.xlane.f32.xlu1 %v2363_v47  ;;  %6835 = vmatprep.mubr.msk.f32.mxu1 %vm7309_vm1, %v7308_v34 }
 0x504   : > { %v7201_v49 = vpop.eup %7200 }
 0x505   : > { %v2377_v50 = vmul.f32 %v7201_v49, %v7185_v11  ;;  %v2989_v11 = vld [vmem:[%s1043_s21] sm:$0xff] }
 0x506   : > { %v6966_v10 = vpack.c.bf16 %v2990_v12, %v2989_v11  ;;  %v3206_v11 = vld [vmem:[%s7807_s22 + $0xc0] sm:$0xff]  ;;  %v3199_v12 = vld [vmem:[%s7807_s22 + $0x88] sm:$0xff] }
 0x507   : > { %6811 = vmatmul.mubr.msk.f32.vlgmr.msra.gmra.mrb[16].mxu0 %vm2296_vm3, %v2377_v50 }
 0x508   : > { %v7203_v51 = vpop.eup %7202  ;;  %6819 = vmatpush3.msra.mxu0 %v7640_v48  ;;  %6820 = vmatprep.mubr.msk.f32.mxu0 %vm7309_vm1, %v7308_v34 }
 0x509   : > { %v2379_v52 = vmul.f32 %v7203_v51, %v7187_v13  ;;  %6828 = vmatprep.subr.mxu0 %v7308_v34  ;;  %v2991_v13 = vld [vmem:[%s1043_s21 + $0x10] sm:$0xff]  ;;  %s1049_s21 = scalar_lea.vmem %s8398_s14, %s7488_s27 }
 0x50a   : > { %v6970_v15 = vpack.c.bf16 %v2992_v14, %v2991_v13 }
 0x50b   : > { %6821 = vmatmul.mubr.msk.f32.vlgmr.msra.gmra.mrb[18].mxu0 %vm2296_vm3, %v2379_v52 }
 0x50c   : > { %6829 = vmatpush3.msra.mxu0 %v1652_v40  ;;  %6830 = vmatprep.mubr.msk.f32.mxu0 %vm7309_vm1, %v7308_v34 }
 0x50d   : > { %6838 = vmatprep.subr.mxu0 %v7308_v34 }
 0x512   : > { %1657 = vrot.lane.b32.xlu1 %v7637_v44, %s7310_s2  ;;  %s1046_s2 = scalar_lea.vmem %s8397_s13, %s7488_s27 }
 0x559   : > { %v2359_v53 = vpop.xlane.xlu1 %2358 }
 0x55a   : > { %7204 = vrcp.f32 %v2359_v53 }
 0x55d   : > { %v2362_v48 = vpop.xlane.xlu0 %2361  ;;  %v1656_v58 = vpop.permute.xlu1 %1655 }
 0x55e   : > { %7206 = vrcp.f32 %v2362_v48 }
 0x561   : > { %v2368_v54 = vpop.xlane.xlu0 %2367 }
 0x562   : > { %7208 = vrcp.f32 %v2368_v54 }
 0x564   : > { %v7205_v55 = vpop.eup %7204 }
 0x565   : > { %v2381_v56 = vmul.f32 %v7205_v55, %v7189_v25  ;;  %v1654_v57 = vpop.permute.xlu0 %1653 }
 0x566   : > { %6834 = vmatpush3.msra.mxu1 %v1654_v57 }
 0x567   : > { %6831 = vmatmul.mubr.msk.f32.vlgmr.msra.gmra.mrb[20].mxu0 %vm2296_vm3, %v2381_v56  ;;  %6843 = vmatprep.subr.mxu1 %v7308_v34 }
 0x568   : > { %v7207_v59 = vpop.eup %7206  ;;  %6839 = vmatpush3.msra.mxu0 %v1656_v58  ;;  %6840 = vmatprep.mubr.msk.f32.mxu0 %vm7309_vm1, %v7308_v34 }
 0x569   : > { %v2382_v44 = vmul.f32 %v7207_v59, %v7191_v28  ;;  %6967 = vmatprep.subr.bf16.mxu0 %v6966_v10 }
 0x56b   : > { %6836 = vmatmul.mubr.msk.f32.vlgmr.msra.gmra.mrb[24].mxu1 %vm2296_vm3, %v2382_v44 }
 0x56c   : > { %6845 = vmatprep.mubr.msk.f32.mxu1 %vm7309_vm1, %v7308_v34  ;;  %v7209_v61 = vpop.eup %7208 }
 0x56d   : > { %v2384_v62 = vmul.f32 %v7209_v61, %v7725_v31 }
 0x58e   : > { %v2365_v60 = vpop.xlane.xlu1 %2364 }
 0x58f   : > { %7210 = vrcp.f32 %v2365_v60 }
 0x592   : > { %v1658_v63 = vpop.permute.xlu1 %1657 }
 0x593   : > { %6844 = vmatpush3.msra.mxu1 %v1658_v63 }
 0x594   : > { %6846 = vmatmul.mubr.msk.f32.vlgmr.msra.gmra.mrb[26].mxu1 %vm2296_vm3, %v2384_v62 }
 0x599   : > { %v7211_v0 = vpop.eup %7210 }
 0x59a   : > { %v2383_v1 = vmul.f32 %v7211_v0, %v7197_v2  ;;  %v6073_v2 = vld [vmem:[%s1046_s2] ss:$0 sm:$0xff]  ;;  %s6021_s2 = sshll.u32 %s7488_s27, 4 }
 0x59b   : > { %s8019_s24 = scalar_lea.vmem %s8401_s17, %s6021_s2  ;;  %s6003_s2 = sshll.u32 %s977_s5, 5 }
 0x59c   : > { %6841 = vmatmul.mubr.msk.f32.vlgmr.msra.gmra.mrb[22].mxu0 %vm2296_vm3, %v2383_v1  ;;  %v3182_v1 = vld [vmem:[%s7807_s22] sm:$0xff]  ;;  %s979_s25 = scalar_lea.vmem [#allocation2], %s6003_s2 }
 0x59d   : > { %6969 = vmatpush3.bf16.msra.mxu0 %v6966_v10  ;;  %v3207_v10 = vld [vmem:[%s7807_s22 + $0xc8] sm:$0xff] }
 0x59e   : > { %6971 = vmatprep.subr.bf16.mxu0 %v6970_v15  ;;  %v6099_v16 = vcombine.high %v3199_v12, %v3207_v10 }
 0x5a1   : > { %6973 = vmatpush3.bf16.msra.mxu0 %v6970_v15  ;;  %v6098_v15 = vcombine.low %v3199_v12, %v3207_v10  ;;  %v3217_v10 = vld [vmem:[%s7807_s22 + $0x118] sm:$0xff] }
 0x5a2   : > { %6975 = vmatprep.subr.bf16.mxu0 %v6974_v18 }
 0x5a5   : > { %6977 = vmatpush3.bf16.msra.mxu0 %v6974_v18  ;;  %v3222_v18 = vld [vmem:[%s7807_s22 + $0x140] sm:$0xff] }
 0x5a6   : > { %6979 = vmatprep.subr.bf16.mxu0 %v6978_v23  ;;  %v6113_v20 = vcombine.high %v3214_v17, %v3222_v18 }
 0x5a9   : > { %6981 = vmatpush3.bf16.msra.mxu0 %v6978_v23  ;;  %v3223_v23 = vld [vmem:[%s7807_s22 + $0x148] sm:$0xff] }
 0x5cb   : > { %v2527_v3 = vpop.f32.mrb[20].mxu1 }
 0x5cc   : > { %v6817_v5 = vpop.f32.mrb[21].mxu1 }
 0x5cd   : > { %v3183_v5 = vld [vmem:[%s7807_s22 + $0x8] sm:$0xff] }
 0x5d3   : > { %v2673_v6 = vpop.f32.mrb[22].mxu1 }
 0x5d4   : > { %v6827_v7 = vpop.f32.mrb[23].mxu1 }
 0x5d5   : > { %v3191_v7 = vld [vmem:[%s7807_s22 + $0x48] sm:$0xff] }
 0x5da   : > { %v2454_v34 = vpop.f32.mrb[16].mxu0 }
 0x5db   : > { %v6812_v8 = vpop.f32.mrb[17].mxu0 }
 0x5dc   : > { %v6082_v8 = vcombine.low %v3183_v5, %v3191_v7 }
 0x5de   : > { %v2600_v4 = vpop.f32.mrb[18].mxu0 }
 0x5df   : > { %v6822_v9 = vpop.f32.mrb[19].mxu0 }
 0x5e0   : > { %v3198_v9 = vld [vmem:[%s7807_s22 + $0x80] sm:$0xff] }
 0x5e1   : > { %v6097_v13 = vcombine.high %v3198_v9, %v3206_v11  ;;  %v6096_v14 = vcombine.low %v3198_v9, %v3206_v11  ;;  %v3216_v9 = vld [vmem:[%s7807_s22 + $0x110] sm:$0xff] }
 0x63a   : > { %v2746_v24 = vpop.f32.mrb[20].mxu0 }
 0x63b   : > { %v6832_v25 = vpop.f32.mrb[21].mxu0  ;;  %2973 = vrot.lane.b32.xlu0 %v2746_v24, %s7311_s23  ;;  %v6112_v24 = vcombine.low %v3214_v17, %v3222_v18  ;;  %v3232_v17 = vld [vmem:[%s7807_s22 + $0x190] sm:$0xff] }
 0x63c   : > { %v6114_v25 = vcombine.low %v3215_v19, %v3223_v23  ;;  %v3240_v18 = vld [vmem:[%s7807_s22 + $0x1d0] sm:$0xff] }
 0x63e   : > { %v2819_v26 = vpop.f32.mrb[24].mxu1 }
 0x63f   : > { %2975 = vrot.lane.b32.xlu1 %v2819_v26, %s7311_s23  ;;  %v6837_v28 = vpop.f32.mrb[25].mxu1  ;;  %v6115_v26 = vcombine.high %v3215_v19, %v3223_v23  ;;  %v3233_v19 = vld [vmem:[%s7807_s22 + $0x198] sm:$0xff] }
 0x640   : > { %v3230_v28 = vld [vmem:[%s7807_s22 + $0x180] sm:$0xff] }
 0x667   : > { %v2965_v30 = vpop.f32.mrb[26].mxu1 }
 0x668   : > { %2979 = vrot.lane.b32.xlu1 %v2965_v30, %s7311_s23  ;;  %v6847_v31 = vpop.f32.mrb[27].mxu1  ;;  %v3238_v30 = vld [vmem:[%s7807_s22 + $0x1c0] sm:$0xff] }
 0x669   : > { %v3231_v31 = vld [vmem:[%s7807_s22 + $0x188] sm:$0xff] }
 0x66f   : > { %v2892_v32 = vpop.f32.mrb[22].mxu0 }
 0x670   : > { %v6842_v33 = vpop.f32.mrb[23].mxu0  ;;  %2977 = vrot.lane.b32.xlu0 %v2892_v32, %s7311_s23  ;;  %v6129_v32 = vcombine.high %v3230_v28, %v3238_v30 }
 0x671   : > { %v3239_v33 = vld [vmem:[%s7807_s22 + $0x1c8] sm:$0xff] }
 0x6ad   : > { %v2974_v35 = vpop.permute.xlu0 %2973 }
 0x6ae   : > { %v2985_v36 = vsel %vm1663_vm2, %v2454_v34, %v2974_v35  ;;  %v6128_v35 = vcombine.low %v3230_v28, %v3238_v30  ;;  %v3186_v28 = vld [vmem:[%s7807_s22 + $0x20] sm:$0xff] }
 0x6af   : > { %6864 = vmatprep.mubr.msk.f32.mxu0 %vm1101_vm0, %v2985_v36  ;;  %v6130_v36 = vcombine.low %v3231_v31, %v3239_v33  ;;  %v3194_v30 = vld [vmem:[%s7807_s22 + $0x60] sm:$0xff] }
 0x6b1   : > { %v2976_v37 = vpop.permute.xlu1 %2975 }
 0x6b2   : > { %v2986_v38 = vsel %vm1663_vm2, %v2527_v3, %v2976_v37  ;;  %v3190_v3 = vld [vmem:[%s7807_s22 + $0x40] sm:$0xff]  ;;  %v6131_v37 = vcombine.high %v3231_v31, %v3239_v33  ;;  %v3187_v31 = vld [vmem:[%s7807_s22 + $0x28] sm:$0xff]  ;;  %v6133_v33 = vcombine.high %v3232_v17, %v3240_v18 }
 0x6b3   : > { %6865 = vmatmul.mubr.msk.f32.vlgmr.msra.gmra.mrb[24].mxu0 %vm1101_vm0, %v2986_v38  ;;  %v6080_v34 = vcombine.low %v3182_v1, %v3190_v3  ;;  %v7312_v38 = vmov 0  }
 0x6b4   : > { %3688 = vmatprep.mubr.bf16.mxu1 %v7312_v38 }
 0x6da   : > { %v2980_v39 = vpop.permute.xlu1 %2979 }
 0x6db   : > { %v2988_v42 = vsel %vm1663_vm2, %v2673_v6, %v2980_v39  ;;  %v6081_v6 = vcombine.high %v3182_v1, %v3190_v3 }
 0x6dd   : > { %3656 = vmatprep.subr.bf16.mxu1 %v6081_v6  ;;  %v3208_v6 = vld [vmem:[%s7807_s22 + $0xd0] sm:$0xff] }
 0x6de   : > { %3657 = vmatpush1.bf16.msra.mxu1 %v6080_v34  ;;  %v3201_v34 = vld [vmem:[%s7807_s22 + $0x98] sm:$0xff] }
 0x6df   : > { %3658 = vmatprep.subr.bf16.mxu1 %v6097_v13 }
 0x6e2   : > { %v2978_v40 = vpop.permute.xlu0 %2977  ;;  %3659 = vmatpush1.bf16.msra.mxu1 %v6096_v14  ;;  %v3225_v14 = vld [vmem:[%s7807_s22 + $0x158] sm:$0xff] }
 0x6e3   : > { %v2987_v41 = vsel %vm1663_vm2, %v2600_v4, %v2978_v40  ;;  %v6083_v4 = vcombine.high %v3183_v5, %v3191_v7  ;;  %3660 = vmatprep.subr.bf16.mxu1 %v6113_v20  ;;  %v3200_v5 = vld [vmem:[%s7807_s22 + $0x90] sm:$0xff]  ;;  %v3241_v20 = vld [vmem:[%s7807_s22 + $0x1d8] sm:$0xff] }
 0x6e4   : > { %6867 = vmatprep.mubr.msk.f32.mxu0 %vm1101_vm0, %v2987_v41  ;;  %v6101_v12 = vcombine.high %v3200_v5, %v3208_v6 }
 0x6e5   : > { %6868 = vmatmul.mubr.msk.f32.gmra.mrb[26].mxu0 %vm1101_vm0, %v2988_v42  ;;  %3709 = vmatprep.subr.bf16.mxu0 %v6083_v4  ;;  %v3209_v4 = vld [vmem:[%s7807_s22 + $0xd8] sm:$0xff] }
 0x6e6   : > { %3710 = vmatpush1.bf16.msra.mxu0 %v6082_v8  ;;  %3661 = vmatpush1.bf16.msra.mxu1 %v6112_v24  ;;  %v6103_v13 = vcombine.high %v3201_v34, %v3209_v4  ;;  %v6119_v24 = vcombine.high %v3217_v10, %v3225_v14 }
 0x6e7   : > { %3711 = vmatprep.subr.bf16.mxu0 %v6099_v16  ;;  %3662 = vmatprep.subr.bf16.mxu1 %v6129_v32  ;;  %v6102_v16 = vcombine.low %v3201_v34, %v3209_v4  ;;  %v3195_v32 = vld [vmem:[%s7807_s22 + $0x68] sm:$0xff] }
 0x6e8   : > { %3741 = vmatprep.mubr.bf16.mxu0 %v7312_v38  ;;  %v3243_v34 = vld [vmem:[%s7807_s22 + $0x1e8] sm:$0xff] }
 0x6ea   : > { %3712 = vmatpush1.bf16.msra.mxu0 %v6098_v15  ;;  %3663 = vmatpush1.bf16.msra.mxu1 %v6128_v35  ;;  %v6100_v15 = vcombine.low %v3200_v5, %v3208_v6  ;;  %v6135_v35 = vcombine.high %v3233_v19, %v3241_v20  ;;  %v3234_v5 = vld [vmem:[%s7807_s22 + $0x1a0] sm:$0xff] }
 0x6eb   : > { %3713 = vmatprep.subr.bf16.mxu0 %v6115_v26  ;;  %v6118_v26 = vcombine.low %v3217_v10, %v3225_v14  ;;  %v3242_v6 = vld [vmem:[%s7807_s22 + $0x1e0] sm:$0xff]  ;;  %v3196_v10 = vld [vmem:[%s7807_s22 + $0x70] sm:$0xff]  ;;  %v3189_v14 = vld [vmem:[%s7807_s22 + $0x38] sm:$0xff] }
 0x6ee   : > { %3714 = vmatpush1.bf16.msra.mxu0 %v6114_v25 }
 0x6ef   : > { %3715 = vmatprep.subr.bf16.mxu0 %v6131_v37  ;;  %v6134_v37 = vcombine.low %v3233_v19, %v3241_v20 }
 0x6f2   : > { %3716 = vmatpush1.bf16.msra.mxu0 %v6130_v36  ;;  %v6132_v36 = vcombine.low %v3232_v17, %v3240_v18  ;;  %v6136_v18 = vcombine.low %v3234_v5, %v3242_v6 }
 0x786   : > { %v6866_v43 = vpop.f32.mrb[24].mxu0 }
 0x787   : > { %v3088_v45 = vadd.f32 %v6866_v43, %v6073_v2  ;;  %v3082_v46 = vpop.f32.mrb[25].mxu0 }
 0x788   : > { %v3083_v47 = vadd.f32 %v6073_v2, %v3082_v46 }
 0x789   : > { %v3102_v49 = vadd.f32 %v3088_v45, %v7581_v22 }
 0x78a   : > { %v3101_v50 = vadd.f32 %v3083_v47, %v7579_v21 }
 0x78b   : > { %v3110_v51 = vsel %vm1101_vm0, %v3102_v49, 0.0 }
 0x78c   : > { %3111 = vadd.xlane.f32.xlu1 %v3110_v51  ;;  %v3107_v52 = vsel %vm1101_vm0, %v3101_v50, 0.0  ;;  %v3192_v51 = vld [vmem:[%s7807_s22 + $0x50] sm:$0xff] }
 0x78d   : > { %3108 = vadd.xlane.f32.xlu0 %v3107_v52  ;;  %v3185_v52 = vld [vmem:[%s7807_s22 + $0x18] sm:$0xff] }
 0x7b8   : > { %v6869_v53 = vpop.f32.mrb[26].mxu0 }
 0x7b9   : > { %v3092_v48 = vpop.f32.mrb[27].mxu0  ;;  %v3098_v54 = vadd.f32 %v6869_v53, %v6073_v2 }
 0x7ba   : > { %v3093_v55 = vadd.f32 %v6073_v2, %v3092_v48  ;;  %v3193_v48 = vld [vmem:[%s7807_s22 + $0x58] sm:$0xff] }
 0x7bb   : > { %v7789_v22 = vadd.f32 %v3098_v54, %v7589_v27 }
 0x7bc   : > { %v7784_v56 = vadd.f32 %v3093_v55, %v7595_v29  ;;  %v6086_v55 = vcombine.low %v3185_v52, %v3193_v48 }
 0x7bd   : > { %v3116_v21 = vsel %vm1101_vm0, %v7789_v22, 0.0 }
 0x7be   : > { %v3113_v57 = vsel %vm1101_vm0, %v7784_v56, 0.0 }
 0x7bf   : > { %3114 = vadd.xlane.f32.xlu0 %v3113_v57 }
 0x7c3   : > { %3117 = vadd.xlane.f32.xlu0 %v3116_v21 }
 0x819   : > { %v3112_v58 = vpop.xlane.xlu1 %3111 }
 0x81a   : > { %v3121_v59 = vmul.f32 0.015625, %v3112_v58  ;;  %v3109_v44 = vpop.xlane.xlu0 %3108 }
 0x81b   : > { %v3120_v60 = vmul.f32 0.015625, %v3109_v44 }
 0x81c   : > { %v7793_v61 = vsub.f32 %v3102_v49, %v3121_v59 }
 0x81d   : > { %v7795_v29 = vsub.f32 %v3101_v50, %v3120_v60  ;;  %v3184_v50 = vld [vmem:[%s7807_s22 + $0x10] sm:$0xff] }
 0x81e   : > { %v3129_v62 = vmul.f32 %v7793_v61, %v7793_v61  ;;  %v6085_v53 = vcombine.high %v3184_v50, %v3192_v51  ;;  %v6084_v54 = vcombine.low %v3184_v50, %v3192_v51 }
 0x81f   : > { %v3128_v27 = vmul.f32 %v7795_v29, %v7795_v29 }
 0x820   : > { %v3135_v63 = vsel %vm1101_vm0, %v3129_v62, 0.0  ;;  %3762 = vmatprep.subr.bf16.mxu1 %v6085_v53  ;;  %v7857_v62 = vld [vmem:[%s1049_s21] ss:$0 sm:$0xff]  ;;  %s8449_s21 = smov %s8448_s30 }
 0x821   : > { %3136 = vadd.xlane.f32.xlu0 %v3135_v63  ;;  %v3132_v0 = vsel %vm1101_vm0, %v3128_v27, 0.0 }
 0x822   : > { %3133 = vadd.xlane.f32.xlu1 %v3132_v0  ;;  %v7860_v0 = vld [vmem:[%s1052_s26] ss:$0 sm:$0xff]  ;;  %s1075_s26 = scalar_lea.vmem %s8445_s6, %s7488_s27  ;;  %s7313_s6 = smov [#allocation2]  }
 0x84c   : > { %v3115_v39 = vpop.xlane.xlu0 %3114 }
 0x84d   : > { %v3122_v40 = vmul.f32 0.015625, %v3115_v39  ;;  %v6089_v39 = vcombine.high %v3186_v28, %v3194_v30 }
 0x84f   : > { %v7828_v41 = vsub.f32 %v7784_v56, %v3122_v40  ;;  %v6087_v56 = vcombine.high %v3185_v52, %v3193_v48  ;;  %v6091_v40 = vcombine.high %v3187_v31, %v3195_v32 }
 0x850   : > { %v3118_v42 = vpop.xlane.xlu0 %3117 }
 0x851   : > { %v3123_v2 = vmul.f32 0.015625, %v3118_v42  ;;  %v3130_v43 = vmul.f32 %v7828_v41, %v7828_v41  ;;  %3815 = vmatprep.subr.bf16.mxu0 %v6087_v56 }
 0x853   : > { %v7833_v45 = vsub.f32 %v7789_v22, %v3123_v2  ;;  %v3138_v46 = vsel %vm1101_vm0, %v3130_v43, 0.0 }
 0x854   : > { %3139 = vadd.xlane.f32.xlu1 %v3138_v46 }
 0x855   : > { %v3131_v47 = vmul.f32 %v7833_v45, %v7833_v45 }
 0x857   : > { %v3141_v49 = vsel %vm1101_vm0, %v3131_v47, 0.0 }
 0x858   : > { %3142 = vadd.xlane.f32.xlu0 %v3141_v49 }
 0x8ae   : > { %v3137_v57 = vpop.xlane.xlu0 %3136 }
 0x8af   : > { %v3145_v22 = vmul.f32 0.015625, %v3137_v57  ;;  %v3134_v21 = vpop.xlane.xlu1 %3133  ;;  %v3210_v57 = vld [vmem:[%s7807_s22 + $0xe0] sm:$0xff] }
 0x8b0   : > { %v3144_v58 = vmul.f32 0.015625, %v3134_v21  ;;  %v3211_v21 = vld [vmem:[%s7807_s22 + $0xe8] sm:$0xff] }
 0x8b1   : > { %v3149_v59 = vadd.f32 1e-05, %v3145_v22  ;;  %v3203_v22 = vld [vmem:[%s7807_s22 + $0xa8] sm:$0xff] }
 0x8b2   : > { %v3148_v44 = vadd.f32 1e-05, %v3144_v58  ;;  %v6088_v58 = vcombine.low %v3186_v28, %v3194_v30  ;;  %v3213_v28 = vld [vmem:[%s7807_s22 + $0xf8] sm:$0xff] }
 0x8b3   : > { %7212 = vrsqrt.f32 %v3149_v59  ;;  %v6090_v59 = vcombine.low %v3187_v31, %v3195_v32 }
 0x8b4   : > { %7214 = vrsqrt.f32 %v3148_v44  ;;  %v3218_v44 = vld [vmem:[%s7807_s22 + $0x120] sm:$0xff] }
 0x8bd   : > { %v7213_v60 = vpop.eup %7212 }
 0x8be   : > { %v7215_v27 = vpop.eup %7214  ;;  %v3157_v63 = vmul.f32 %v7213_v60, %v7793_v61  ;;  %v3226_v60 = vld [vmem:[%s7807_s22 + $0x160] sm:$0xff] }
 0x8bf   : > { %v3156_v1 = vmul.f32 %v7215_v27, %v7795_v29  ;;  %v3224_v29 = vld [vmem:[%s7807_s22 + $0x150] sm:$0xff]  ;;  %v3227_v27 = vld [vmem:[%s7807_s22 + $0x168] sm:$0xff]  ;;  %v6121_v4 = vcombine.high %v3218_v44, %v3226_v60 }
 0x8c0   : > { %v3167_v3 = vmul.f32 %v7857_v62, %v3157_v63  ;;  %v6117_v23 = vcombine.high %v3216_v9, %v3224_v29  ;;  %v6116_v25 = vcombine.low %v3216_v9, %v3224_v29  ;;  %v6120_v29 = vcombine.low %v3218_v44, %v3226_v60  ;;  %v7049_v44 = vld [vmem:[%s7847_s4 + $0xc8] sm:$0xff]  }
 0x8c1   : > { %v3166_v7 = vmul.f32 %v7857_v62, %v3156_v1  ;;  %v7050_v60 = vld [vmem:[%s7847_s4 + $0x8] sm:$0xff]  }
 0x8c2   : > { %v7869_v8 = vadd.f32 %v7860_v0, %v3167_v3  ;;  %v6106_v3 = vcombine.low %v3203_v22, %v3211_v21 }
 0x8c3   : > { %v7873_v61 = vadd.f32 %v7860_v0, %v3166_v7  ;;  %v3235_v7 = vld [vmem:[%s7807_s22 + $0x1a8] sm:$0xff] }
 0x8c4   : > { %v6139_v17 = vcombine.high %v3235_v7, %v3243_v34  ;;  %v6138_v19 = vcombine.low %v3235_v7, %v3243_v34  ;;  %v7061_v7 = vld [vmem:[%s7847_s4 + $0xe0] sm:$0xff]  }
 0x8c5   : > { %v7879_v11 = vpack.c.bf16 %v7869_v8, %v7873_v61  ;;  %v7062_v34 = vld [vmem:[%s7847_s4 + $0x20] sm:$0xff]  }
 0x8c7   : > { %6144 = vmatmul.mubr.msk.bf16.vlgmr.msra.gmra.mrb[28].mxu1 %vm1101_vm0, %v7879_v11  ;;  %6146 = vmatmul.mubr.msk.bf16.vlgmr.msra.gmra.mrb[28].mxu0 %vm1101_vm0, %v7879_v11 }
 0x8c8   : > { %3763 = vmatpush1.bf16.msra.mxu1 %v6084_v54  ;;  %3816 = vmatpush1.bf16.msra.mxu0 %v6086_v55 }
 0x8c9   : > { %3764 = vmatprep.subr.bf16.mxu1 %v6101_v12  ;;  %3817 = vmatprep.subr.bf16.mxu0 %v6103_v13  ;;  %v3188_v13 = vld [vmem:[%s7807_s22 + $0x30] sm:$0xff] }
 0x8ca   : > { %3698 = vmatprep.mubr.bf16.mxu1 %v7312_v38  ;;  %3751 = vmatprep.mubr.bf16.mxu0 %v7312_v38  ;;  %v6093_v20 = vcombine.high %v3188_v13, %v3196_v10  ;;  %v6092_v30 = vcombine.low %v3188_v13, %v3196_v10  ;;  %v7068_v13 = vld [vmem:[%s7847_s4 + $0x70] sm:$0xff]  }
 0x8cb   : > { %v7069_v10 = vld [vmem:[%s7847_s4 + $0xf0] sm:$0xff]  }
 0x8cc   : > { %3765 = vmatpush1.bf16.msra.mxu1 %v6100_v15  ;;  %3818 = vmatpush1.bf16.msra.mxu0 %v6102_v16  ;;  %v3197_v15 = vld [vmem:[%s7807_s22 + $0x78] sm:$0xff]  ;;  %v6137_v16 = vcombine.high %v3234_v5, %v3242_v6  ;;  %v7060_v6 = vld [vmem:[%s7847_s4 + $0x60] sm:$0xff]  }
 0x8cd   : > { %3766 = vmatprep.subr.bf16.mxu1 %v6117_v23  ;;  %3819 = vmatprep.subr.bf16.mxu0 %v6119_v24  ;;  %v6095_v23 = vcombine.high %v3189_v14, %v3197_v15  ;;  %v3204_v24 = vld [vmem:[%s7807_s22 + $0xb0] sm:$0xff]  ;;  %v6094_v31 = vcombine.low %v3189_v14, %v3197_v15  ;;  %v7059_v5 = vld [vmem:[%s7847_s4 + $0x98] sm:$0xff]  }
 0x8ce   : > { %v7070_v14 = vld [vmem:[%s7847_s4 + $0x30] sm:$0xff]  }
 0x8cf   : > { %v7071_v15 = vld [vmem:[%s7847_s4 + $0xb0] sm:$0xff]  }
 0x8d0   : > { %3767 = vmatpush1.bf16.msra.mxu1 %v6116_v25  ;;  %3820 = vmatpush1.bf16.msra.mxu0 %v6118_v26  ;;  %v3212_v25 = vld [vmem:[%s7807_s22 + $0xf0] sm:$0xff]  ;;  %v3205_v26 = vld [vmem:[%s7807_s22 + $0xb8] sm:$0xff] }
 0x8d1   : > { %3768 = vmatprep.subr.bf16.mxu1 %v6133_v33  ;;  %3821 = vmatprep.subr.bf16.mxu0 %v6135_v35  ;;  %v6109_v32 = vcombine.high %v3204_v24, %v3212_v25  ;;  %v6111_v33 = vcombine.high %v3205_v26, %v3213_v28  ;;  %v3220_v35 = vld [vmem:[%s7807_s22 + $0x130] sm:$0xff] }
 0x8d4   : > { %3769 = vmatpush1.bf16.msra.mxu1 %v6132_v36  ;;  %3822 = vmatpush1.bf16.msra.mxu0 %v6134_v37  ;;  %v3228_v36 = vld [vmem:[%s7807_s22 + $0x170] sm:$0xff]  ;;  %v3221_v37 = vld [vmem:[%s7807_s22 + $0x138] sm:$0xff] }
 0x8d5   : > { %3868 = vmatprep.subr.bf16.mxu1 %v6089_v39  ;;  %3921 = vmatprep.subr.bf16.mxu0 %v6091_v40  ;;  %v3229_v39 = vld [vmem:[%s7807_s22 + $0x178] sm:$0xff]  ;;  %v6108_v40 = vcombine.low %v3204_v24, %v3212_v25  ;;  %v3250_v24 = vlaneseq }
 0x8d7   : > { %v8014_v25 = vshrl.u32 %v3250_v24, 7  ;;  %v7099_v24 = vld [vmem:[%s7847_s4 + $0x1a8] sm:$0xff]  }
 0x8e1   : > { %v3140_v42 = vpop.xlane.xlu1 %3139 }
 0x8e2   : > { %v3146_v2 = vmul.f32 0.015625, %v3140_v42  ;;  %v6110_v42 = vcombine.low %v3205_v26, %v3213_v28  ;;  %v3252_v26 = vsub.s32 0, %v8014_v25  ;;  %v3260_v28 = vsub.s32 2, %v8014_v25 }
 0x8e4   : > { %v3150_v43 = vadd.f32 1e-05, %v3146_v2  ;;  %v6125_v2 = vcombine.high %v3220_v35, %v3228_v36 }
 0x8e5   : > { %v3143_v46 = vpop.xlane.xlu0 %3142 }
 0x8e6   : > { %7216 = vrsqrt.f32 %v3150_v43  ;;  %v3147_v47 = vmul.f32 0.015625, %v3143_v46  ;;  %v6127_v43 = vcombine.high %v3221_v37, %v3229_v39  ;;  %v3236_v46 = vld [vmem:[%s7807_s22 + $0x1b0] sm:$0xff] }
 0x8e8   : > { %v3151_v49 = vadd.f32 1e-05, %v3147_v47  ;;  %v3244_v47 = vld [vmem:[%s7807_s22 + $0x1f0] sm:$0xff] }
 0x8ea   : > { %7218 = vrsqrt.f32 %v3151_v49  ;;  %v3237_v49 = vld [vmem:[%s7807_s22 + $0x1b8] sm:$0xff] }
 0x8f0   : > { %v7217_v50 = vpop.eup %7216 }
 0x8f1   : > { %v3158_v51 = vmul.f32 %v7217_v50, %v7828_v41  ;;  %v3245_v50 = vld [vmem:[%s7807_s22 + $0x1f8] sm:$0xff] }
 0x8f3   : > { %v3168_v53 = vmul.f32 %v7857_v62, %v3158_v51  ;;  %v6124_v51 = vcombine.low %v3220_v35, %v3228_v36 }
 0x8f4   : > { %v7219_v52 = vpop.eup %7218 }
 0x8f5   : > { %v3159_v48 = vmul.f32 %v7219_v52, %v7833_v45  ;;  %v7902_v55 = vadd.f32 %v7860_v0, %v3168_v53  ;;  %v3202_v45 = vld [vmem:[%s7807_s22 + $0xa0] sm:$0xff]  ;;  %v6126_v52 = vcombine.low %v3221_v37, %v3229_v39  ;;  %v6141_v53 = vcombine.high %v3236_v46, %v3244_v47 }
 0x8f6   : > { %v6105_v63 = vcombine.high %v3202_v45, %v3210_v57  ;;  %v6104_v1 = vcombine.low %v3202_v45, %v3210_v57  ;;  %v6142_v45 = vcombine.low %v3237_v49, %v3245_v50  ;;  %v7044_v57 = vld [vmem:[%s7847_s4 + $0x40] sm:$0xff]  }
 0x8f7   : > { %v3169_v54 = vmul.f32 %v7857_v62, %v3159_v48  ;;  %v3219_v62 = vld [vmem:[%s7807_s22 + $0x128] sm:$0xff]  ;;  %v6143_v48 = vcombine.high %v3237_v49, %v3245_v50  ;;  %s5697_s22 = sshll.u32 %s979_s25, 4  ;;  %s8332_s22 = int_to_ptr.vmem [resolvable:$true] %s5697_s22 }
 0x8f8   : > { %v6123_v9 = vcombine.high %v3219_v62, %v3227_v27  ;;  %v6122_v12 = vcombine.low %v3219_v62, %v3227_v27  ;;  %v7051_v62 = vld [vmem:[%s7847_s4 + $0x88] sm:$0xff]   ;;  %v7052_v27 = vld [vmem:[%s7847_s4 + $0x50] sm:$0xff]   ;;  %s7228_s23 = scalar_lea.vmem %s8332_s22, 512 }
 0x8f9   : > { %v7905_v56 = vadd.f32 %v7860_v0, %v3169_v54  ;;  %v6107_v0 = vcombine.high %v3203_v22, %v3211_v21  ;;  %v6140_v54 = vcombine.low %v3236_v46, %v3244_v47  ;;  %v7045_v22 = vld [vmem:[%s7847_s4 + $0xc0] sm:$0xff]   ;;  %p7229_p12 = scmp.ne.s32.totalorder %s8332_s22, %s7228_s23 }
 0x8fa   : > { %v7046_v21 = vld [vmem:[%s7847_s4] sm:$0xff]  }
 0x8fb   : > { %v7909_v41 = vpack.c.bf16 %v7905_v56, %v7902_v55  ;;  %p7230_p13 = pnand %p7229_p12, %p7471_p4 }
 0x8fd   : > { %6145 = vmatmul.mubr.msk.bf16.gmra.mrb[32].mxu1 %vm1101_vm0, %v7909_v41  ;;  %6147 = vmatmul.mubr.msk.bf16.gmra.mrb[32].mxu0 %vm1101_vm0, %v7909_v41  ;;  %p7231_p0 = pneg %p7230_p13 }
 0x8fe   : > { %3794 = vmatprep.mubr.bf16.mxu1 %v7312_v38  ;;  %3847 = vmatprep.mubr.bf16.mxu0 %v7312_v38 }
 0x905   : > { %6148 = vmatmul.mubr.msk.bf16.vlgmr.msra.gmra.mrb[36].mxu1 %vm1101_vm0, %v7879_v11  ;;  %6150 = vmatmul.mubr.msk.bf16.vlgmr.msra.gmra.mrb[36].mxu0 %vm1101_vm0, %v7879_v11 }
 0x906   : > { %3869 = vmatpush1.bf16.msra.mxu1 %v6088_v58  ;;  %3922 = vmatpush1.bf16.msra.mxu0 %v6090_v59  ;;  %v7047_v58 = vld [vmem:[%s7847_s4 + $0x80] sm:$0xff]   ;;  %v7048_v59 = vld [vmem:[%s7847_s4 + $0x48] sm:$0xff]  }
 0x907   : > { %3870 = vmatprep.subr.bf16.mxu1 %v6105_v63  ;;  %3923 = vmatprep.subr.bf16.mxu0 %v6107_v0  ;;  %v7053_v63 = vld [vmem:[%s7847_s4 + $0xd0] sm:$0xff]  }
 0x908   : > { %3804 = vmatprep.mubr.bf16.mxu1 %v7312_v38  ;;  %3857 = vmatprep.mubr.bf16.mxu0 %v7312_v38  ;;  %v7055_v0 = vld [vmem:[%s7847_s4 + $0x90] sm:$0xff]  }
 0x90a   : > { %3871 = vmatpush1.bf16.msra.mxu1 %v6104_v1  ;;  %3924 = vmatpush1.bf16.msra.mxu0 %v6106_v3  ;;  %v7057_v1 = vld [vmem:[%s7847_s4 + $0xd8] sm:$0xff]  }
 0x90b   : > { %3872 = vmatprep.subr.bf16.mxu1 %v6121_v4  ;;  %3925 = vmatprep.subr.bf16.mxu0 %v6123_v9  ;;  %v7058_v3 = vld [vmem:[%s7847_s4 + $0x18] sm:$0xff]   ;;  %v7063_v4 = vld [vmem:[%s7847_s4 + $0xa0] sm:$0xff]   ;;  %v7065_v9 = vld [vmem:[%s7847_s4 + $0xe8] sm:$0xff]  }
 0x90d   : > { %6149 = vmatmul.mubr.msk.bf16.gmra.mrb[40].mxu1 %vm1101_vm0, %v7909_v41  ;;  %6151 = vmatmul.mubr.msk.bf16.gmra.mrb[40].mxu0 %vm1101_vm0, %v7909_v41 }
 0x90e   : > { %3873 = vmatpush1.bf16.msra.mxu1 %v6120_v29  ;;  %3926 = vmatpush1.bf16.msra.mxu0 %v6122_v12  ;;  %v7066_v29 = vld [vmem:[%s7847_s4 + $0x28] sm:$0xff]  }
 0x90f   : > { %3874 = vmatprep.subr.bf16.mxu1 %v6137_v16  ;;  %3927 = vmatprep.subr.bf16.mxu0 %v6139_v17  ;;  %v7067_v12 = vld [vmem:[%s7847_s4 + $0xa8] sm:$0xff]   ;;  %v7072_v16 = vld [vmem:[%s7847_s4 + $0x78] sm:$0xff]  }
 0x910   : > { %3900 = vmatprep.mubr.bf16.mxu1 %v7312_v38  ;;  %3953 = vmatprep.mubr.bf16.mxu0 %v7312_v38  ;;  %v7073_v17 = vld [vmem:[%s7847_s4 + $0xf8] sm:$0xff]  }
 0x912   : > { %3875 = vmatpush1.bf16.msra.mxu1 %v6136_v18  ;;  %3928 = vmatpush1.bf16.msra.mxu0 %v6138_v19  ;;  %v7074_v18 = vld [vmem:[%s7847_s4 + $0x38] sm:$0xff]  }
 0x913   : > { %3974 = vmatprep.subr.bf16.mxu1 %v6093_v20  ;;  %4027 = vmatprep.subr.bf16.mxu0 %v6095_v23  ;;  %v7075_v19 = vld [vmem:[%s7847_s4 + $0xb8] sm:$0xff]   ;;  %v7076_v20 = vld [vmem:[%s7847_s4 + $0x140] sm:$0xff]  }
 0x914   : > { %v7077_v23 = vld [vmem:[%s7847_s4 + $0x1c0] sm:$0xff]  }
 0x915   : > { %6152 = vmatmul.mubr.msk.bf16.vlgmr.msra.gmra.mrb[44].mxu1 %vm1101_vm0, %v7879_v11  ;;  %6154 = vmatmul.mubr.msk.bf16.vlgmr.msra.gmra.mrb[44].mxu0 %vm1101_vm0, %v7879_v11 }
 0x916   : > { %3975 = vmatpush1.bf16.msra.mxu1 %v6092_v30  ;;  %4028 = vmatpush1.bf16.msra.mxu0 %v6094_v31  ;;  %v8024_v30 = vld [vmem:[%s8019_s24] sm:$0xff]  ;;  %v3256_v31 = vsub.s32 1, %v8014_v25 }
 0x917   : > { %3976 = vmatprep.subr.bf16.mxu1 %v6109_v32  ;;  %4029 = vmatprep.subr.bf16.mxu0 %v6111_v33  ;;  %v3264_v32 = vsub.s32 3, %v8014_v25  ;;  %v8031_v33 = vrot.slane %v8024_v30, %v3252_v26  ;;  %v8036_v35 = vrot.slane %v8024_v30, %v3260_v28 }
 0x918   : > { %3910 = vmatprep.mubr.bf16.mxu1 %v7312_v38  ;;  %3963 = vmatprep.mubr.bf16.mxu0 %v7312_v38  ;;  %v8041_v36 = vrot.slane %v8024_v30, %v3256_v31 }
 0x919   : > { %v8046_v37 = vrot.slane %v8024_v30, %v3264_v32 }
 0x91a   : > { %3977 = vmatpush1.bf16.msra.mxu1 %v6108_v40  ;;  %4030 = vmatpush1.bf16.msra.mxu0 %v6110_v42 }
 0x91b   : > { %3978 = vmatprep.subr.bf16.mxu1 %v6125_v2  ;;  %4031 = vmatprep.subr.bf16.mxu0 %v6127_v43 }
 0x91d   : > { %6153 = vmatmul.mubr.msk.bf16.gmra.mrb[48].mxu1 %vm1101_vm0, %v7909_v41  ;;  %6155 = vmatmul.mubr.msk.bf16.gmra.mrb[48].mxu0 %vm1101_vm0, %v7909_v41 }
 0x91e   : > { %3979 = vmatpush1.bf16.msra.mxu1 %v6124_v51  ;;  %4032 = vmatpush1.bf16.msra.mxu0 %v6126_v52 }
 0x91f   : > { %3980 = vmatprep.subr.bf16.mxu1 %v6141_v53  ;;  %4033 = vmatprep.subr.bf16.mxu0 %v6143_v48 }
 0x920   : > { %4006 = vmatprep.mubr.bf16.mxu1 %v7312_v38  ;;  %4059 = vmatprep.mubr.bf16.mxu0 %v7312_v38 }
 0x922   : > { %3981 = vmatpush1.bf16.msra.mxu1 %v6140_v54  ;;  %4034 = vmatpush1.bf16.msra.mxu0 %v6142_v45 }
 0x923   : > { %6418 = vmatprep.subr.bf16.mxu1 %v7044_v57  ;;  %6446 = vmatprep.subr.bf16.mxu0 %v7045_v22 }
 0x925   : > { %6156 = vmatmul.mubr.msk.bf16.vlgmr.msra.gmra.mrb[52].mxu1 %vm1101_vm0, %v7879_v11  ;;  %6158 = vmatmul.mubr.msk.bf16.vlgmr.msra.gmra.mrb[52].mxu0 %vm1101_vm0, %v7879_v11  ;;  %v7054_v11 = vld [vmem:[%s7847_s4 + $0x10] sm:$0xff]  }
 0x926   : > { %4016 = vmatprep.mubr.bf16.mxu1 %v7312_v38  ;;  %4069 = vmatprep.mubr.bf16.mxu0 %v7312_v38  ;;  %v7056_v38 = vld [vmem:[%s7847_s4 + $0x58] sm:$0xff]  }
 0x927   : > { %6419 = vmatpush3.bf16.msra.mxu1 %v7046_v21  ;;  %6447 = vmatpush3.bf16.msra.mxu0 %v7047_v58 }
 0x928   : > { %6420 = vmatprep.subr.bf16.mxu1 %v7048_v59  ;;  %6448 = vmatprep.subr.bf16.mxu0 %v7049_v44 }
 0x92b   : > { %6421 = vmatpush3.bf16.msra.mxu1 %v7050_v60  ;;  %6449 = vmatpush3.bf16.msra.mxu0 %v7051_v62 }
 0x92c   : > { %6422 = vmatprep.subr.bf16.mxu1 %v7052_v27  ;;  %6450 = vmatprep.subr.bf16.mxu0 %v7053_v63 }
 0x92d   : > { %6157 = vmatmul.mubr.msk.bf16.gmra.mrb[56].mxu1 %vm1101_vm0, %v7909_v41  ;;  %6159 = vmatmul.mubr.msk.bf16.gmra.mrb[56].mxu0 %vm1101_vm0, %v7909_v41  ;;  %v7064_v41 = vld [vmem:[%s7847_s4 + $0x68] sm:$0xff]  }
 0x92f   : > { %6423 = vmatpush3.bf16.msra.mxu1 %v7054_v11  ;;  %6451 = vmatpush3.bf16.msra.mxu0 %v7055_v0 }
 0x930   : > { %6424 = vmatprep.subr.bf16.mxu1 %v7056_v38  ;;  %6452 = vmatprep.subr.bf16.mxu0 %v7057_v1  ;;  %v7078_v1 = vld [vmem:[%s7847_s4 + $0x100] sm:$0xff]  }
 0x933   : > { %6425 = vmatpush3.bf16.msra.mxu1 %v7058_v3  ;;  %6453 = vmatpush3.bf16.msra.mxu0 %v7059_v5  ;;  %v7079_v3 = vld [vmem:[%s7847_s4 + $0x180] sm:$0xff]   ;;  %v7080_v5 = vld [vmem:[%s7847_s4 + $0x148] sm:$0xff]  }
 0x934   : > { %6426 = vmatprep.subr.bf16.mxu1 %v7060_v6  ;;  %6454 = vmatprep.subr.bf16.mxu0 %v7061_v7  ;;  %v7081_v6 = vld [vmem:[%s7847_s4 + $0x1c8] sm:$0xff]  }
 0x935   : > { %v7082_v7 = vld [vmem:[%s7847_s4 + $0x108] sm:$0xff]  }
 0x937   : > { %6427 = vmatpush3.bf16.msra.mxu1 %v7062_v34  ;;  %6455 = vmatpush3.bf16.msra.mxu0 %v7063_v4  ;;  %v7083_v34 = vld [vmem:[%s7847_s4 + $0x188] sm:$0xff]   ;;  %v7084_v4 = vld [vmem:[%s7847_s4 + $0x150] sm:$0xff]  }
 0x938   : > { %6428 = vmatprep.subr.bf16.mxu1 %v7064_v41  ;;  %6456 = vmatprep.subr.bf16.mxu0 %v7065_v9  ;;  %v7085_v41 = vld [vmem:[%s7847_s4 + $0x1d0] sm:$0xff]  }
 0x939   : > { %v7086_v9 = vld [vmem:[%s7847_s4 + $0x110] sm:$0xff]  }
 0x93b   : > { %6429 = vmatpush3.bf16.msra.mxu1 %v7066_v29  ;;  %6457 = vmatpush3.bf16.msra.mxu0 %v7067_v12  ;;  %v7087_v29 = vld [vmem:[%s7847_s4 + $0x190] sm:$0xff]   ;;  %v7088_v12 = vld [vmem:[%s7847_s4 + $0x158] sm:$0xff]  }
 0x93c   : > { %6430 = vmatprep.subr.bf16.mxu1 %v7068_v13  ;;  %6458 = vmatprep.subr.bf16.mxu0 %v7069_v10  ;;  %v7089_v13 = vld [vmem:[%s7847_s4 + $0x1d8] sm:$0xff]  }
 0x93d   : > { %v7090_v10 = vld [vmem:[%s7847_s4 + $0x118] sm:$0xff]  }
 0x93f   : > { %6431 = vmatpush3.bf16.msra.mxu1 %v7070_v14  ;;  %6459 = vmatpush3.bf16.msra.mxu0 %v7071_v15  ;;  %v7091_v14 = vld [vmem:[%s7847_s4 + $0x198] sm:$0xff]   ;;  %v7092_v15 = vld [vmem:[%s7847_s4 + $0x160] sm:$0xff]  }
 0x940   : > { %6432 = vmatprep.subr.bf16.mxu1 %v7072_v16  ;;  %6460 = vmatprep.subr.bf16.mxu0 %v7073_v17  ;;  %v7093_v16 = vld [vmem:[%s7847_s4 + $0x1e0] sm:$0xff]  }
 0x941   : > { %v7094_v17 = vld [vmem:[%s7847_s4 + $0x120] sm:$0xff]  }
 0x943   : > { %6433 = vmatpush3.bf16.msra.mxu1 %v7074_v18  ;;  %6461 = vmatpush3.bf16.msra.mxu0 %v7075_v19  ;;  %v7095_v18 = vld [vmem:[%s7847_s4 + $0x1a0] sm:$0xff]   ;;  %v7096_v19 = vld [vmem:[%s7847_s4 + $0x168] sm:$0xff]  }
 0x944   : > { %6474 = vmatprep.subr.bf16.mxu1 %v7076_v20  ;;  %6502 = vmatprep.subr.bf16.mxu0 %v7077_v23  ;;  %v7097_v20 = vld [vmem:[%s7847_s4 + $0x1e8] sm:$0xff]  }
 0x945   : > { %v7098_v23 = vld [vmem:[%s7847_s4 + $0x128] sm:$0xff]  }
 0x99a   : > { %v3690_v39 = vpop.f32.mrb[28].mxu1  ;;  %v3743_v40 = vpop.f32.mrb[28].mxu0 }
 0x99b   : > { %v3691_v42 = vadd.f32 %v3690_v39, %v8031_v33  ;;  %v3744_v2 = vadd.f32 %v3743_v40, %v8036_v35  ;;  %v3692_v43 = vpop.f32.mrb[29].mxu1  ;;  %v3745_v46 = vpop.f32.mrb[29].mxu0  ;;  %v7100_v39 = vld [vmem:[%s7847_s4 + $0x170] sm:$0xff]  }
 0x99c   : > { %v3693_v47 = vadd.f32 %v3692_v43, %v8041_v36  ;;  %v3746_v49 = vadd.f32 %v3745_v46, %v8046_v37  ;;  %v3694_v50 = vpop.f32.mrb[30].mxu1  ;;  %v3747_v51 = vpop.f32.mrb[30].mxu0  ;;  %v7101_v40 = vld [vmem:[%s7847_s4 + $0x1f0] sm:$0xff]   ;;  %v7104_v43 = vld [vmem:[%s7847_s4 + $0x178] sm:$0xff]  }
 0x99d   : > { %v3695_v52 = vadd.f32 %v3694_v50, %v8031_v33  ;;  %v3748_v53 = vadd.f32 %v3747_v51, %v8036_v35  ;;  %v3696_v48 = vpop.f32.mrb[31].mxu1  ;;  %v3749_v54 = vpop.f32.mrb[31].mxu0  ;;  %v4080_v22 = vmax.f32 %v3691_v42, 0.0  ;;  %v4082_v21 = vmax.f32 %v3744_v2, 0.0  ;;  %v7102_v42 = vld [vmem:[%s7847_s4 + $0x130] sm:$0xff]   ;;  %v7105_v46 = vld [vmem:[%s7847_s4 + $0x1f8] sm:$0xff]  }
 0x99e   : > { %v3697_v45 = vadd.f32 %v3696_v48, %v8041_v36  ;;  %v3750_v57 = vadd.f32 %v3749_v54, %v8046_v37  ;;  %v4081_v44 = vmax.f32 %v3693_v47, 0.0  ;;  %v4083_v60 = vmax.f32 %v3746_v49, 0.0  ;;  %v7103_v2 = vld [vmem:[%s7847_s4 + $0x1b0] sm:$0xff]   ;;  %v7106_v47 = vld [vmem:[%s7847_s4 + $0x138] sm:$0xff]   ;;  %v7108_v50 = vld [vmem:[%s7847_s4 + $0x240] sm:$0xff]  }
 0x99f   : > { %v4096_v58 = vmax.f32 %v3695_v52, 0.0  ;;  %v4098_v59 = vmax.f32 %v3748_v53, 0.0  ;;  %v7107_v49 = vld [vmem:[%s7847_s4 + $0x1b8] sm:$0xff]   ;;  %v7109_v51 = vld [vmem:[%s7847_s4 + $0x2c0] sm:$0xff]   ;;  %v3268_v52 = vsub.s32 4, %v8014_v25  ;;  %v3276_v53 = vsub.s32 6, %v8014_v25 }
 0x9a0   : > { %v4097_v62 = vmax.f32 %v3697_v45, 0.0  ;;  %v4099_v27 = vmax.f32 %v3750_v57, 0.0  ;;  %v3272_v45 = vsub.s32 5, %v8014_v25  ;;  %v3280_v57 = vsub.s32 7, %v8014_v25 }
 0x9a1   : > { %v4144_v63 = vpack.c.bf16 %v4096_v58, %v4080_v22  ;;  %v4146_v11 = vpack.c.bf16 %v4098_v59, %v4082_v21 }
 0x9a2   : > { %v4145_v0 = vpack.c.bf16 %v4097_v62, %v4081_v44  ;;  %v4147_v38 = vpack.c.bf16 %v4099_v27, %v4083_v60 }
 0x9a4   : > { %5239 = vmatprep.mubr.bf16.mxu1 %v4145_v0  ;;  %5288 = vmatprep.mubr.bf16.mxu0 %v4147_v38 }
 0x9a5   : > { %5240 = vmatmul.mubr.bf16.vlgmr.msra.gmra.mrb[60].mxu1 %v4144_v63  ;;  %5289 = vmatmul.mubr.bf16.vlgmr.msra.gmra.mrb[60].mxu0 %v4146_v11 }
 0x9a6   : > { %6475 = vmatpush3.bf16.msra.mxu1 %v7078_v1  ;;  %6503 = vmatpush3.bf16.msra.mxu0 %v7079_v3  ;;  %v8101_v1 = vrot.slane %v8024_v30, %v3268_v52  ;;  %v8106_v3 = vrot.slane %v8024_v30, %v3276_v53 }
 0x9a7   : > { %6476 = vmatprep.subr.bf16.mxu1 %v7080_v5  ;;  %6504 = vmatprep.subr.bf16.mxu0 %v7081_v6 }
 0x9aa   : > { %6477 = vmatpush3.bf16.msra.mxu1 %v7082_v7  ;;  %6505 = vmatpush3.bf16.msra.mxu0 %v7083_v34 }
 0x9ab   : > { %6478 = vmatprep.subr.bf16.mxu1 %v7084_v4  ;;  %6506 = vmatprep.subr.bf16.mxu0 %v7085_v41 }
 0x9ae   : > { %6479 = vmatpush3.bf16.msra.mxu1 %v7086_v9  ;;  %6507 = vmatpush3.bf16.msra.mxu0 %v7087_v29 }
 0x9af   : > { %6480 = vmatprep.subr.bf16.mxu1 %v7088_v12  ;;  %6508 = vmatprep.subr.bf16.mxu0 %v7089_v13 }
 0x9b2   : > { %6481 = vmatpush3.bf16.msra.mxu1 %v7090_v10  ;;  %6509 = vmatpush3.bf16.msra.mxu0 %v7091_v14 }
 0x9b3   : > { %6482 = vmatprep.subr.bf16.mxu1 %v7092_v15  ;;  %6510 = vmatprep.subr.bf16.mxu0 %v7093_v16 }
 0x9b6   : > { %6483 = vmatpush3.bf16.msra.mxu1 %v7094_v17  ;;  %6511 = vmatpush3.bf16.msra.mxu0 %v7095_v18 }
 0x9b7   : > { %6484 = vmatprep.subr.bf16.mxu1 %v7096_v19  ;;  %6512 = vmatprep.subr.bf16.mxu0 %v7097_v20 }
 0x9ba   : > { %6485 = vmatpush3.bf16.msra.mxu1 %v7098_v23  ;;  %6513 = vmatpush3.bf16.msra.mxu0 %v7099_v24 }
 0x9bb   : > { %6486 = vmatprep.subr.bf16.mxu1 %v7100_v39  ;;  %6514 = vmatprep.subr.bf16.mxu0 %v7101_v40 }
 0x9be   : > { %6487 = vmatpush3.bf16.msra.mxu1 %v7102_v42  ;;  %6515 = vmatpush3.bf16.msra.mxu0 %v7103_v2 }
 0x9bf   : > { %6488 = vmatprep.subr.bf16.mxu1 %v7104_v43  ;;  %6516 = vmatprep.subr.bf16.mxu0 %v7105_v46 }
 0x9c2   : > { %6489 = vmatpush3.bf16.msra.mxu1 %v7106_v47  ;;  %6517 = vmatpush3.bf16.msra.mxu0 %v7107_v49 }
 0x9c3   : > { %6530 = vmatprep.subr.bf16.mxu1 %v7108_v50  ;;  %6558 = vmatprep.subr.bf16.mxu0 %v7109_v51 }
 0x9d0   : > { %v3700_v48 = vpop.f32.mrb[32].mxu1  ;;  %v3753_v54 = vpop.f32.mrb[32].mxu0 }
 0x9d1   : > { %v3701_v22 = vadd.f32 %v3700_v48, %v8031_v33  ;;  %v3754_v21 = vadd.f32 %v3753_v54, %v8036_v35  ;;  %v3702_v58 = vpop.f32.mrb[33].mxu1  ;;  %v3755_v59 = vpop.f32.mrb[33].mxu0 }
 0x9d2   : > { %v3703_v44 = vadd.f32 %v3702_v58, %v8041_v36  ;;  %v3756_v60 = vadd.f32 %v3755_v59, %v8046_v37  ;;  %v3704_v62 = vpop.f32.mrb[34].mxu1  ;;  %v3757_v27 = vpop.f32.mrb[34].mxu0  ;;  %v8129_v59 = vld [vmem:[%s8019_s24 + $0x8] sm:$0xff]  ;;  %s6305_s24 = sshll.u32 %s8446_s1, 9 }
 0x9d3   : > { %v3705_v63 = vadd.f32 %v3704_v62, %v8031_v33  ;;  %v3758_v11 = vadd.f32 %v3757_v27, %v8036_v35  ;;  %v3706_v0 = vpop.f32.mrb[35].mxu1  ;;  %v3759_v38 = vpop.f32.mrb[35].mxu0  ;;  %v8113_v33 = vrot.slane %v8024_v30, %v3272_v45  ;;  %v8118_v35 = vrot.slane %v8024_v30, %v3280_v57 }
 0x9d4   : > { %v3707_v5 = vadd.f32 %v3706_v0, %v8041_v36  ;;  %v3760_v6 = vadd.f32 %v3759_v38, %v8046_v37  ;;  %v4112_v7 = vmax.f32 %v3701_v22, 0.0  ;;  %v4114_v34 = vmax.f32 %v3754_v21, 0.0  ;;  %v7110_v0 = vld [vmem:[%s7847_s4 + $0x200] sm:$0xff]  }
 0x9d5   : > { %v4128_v4 = vmax.f32 %v3705_v63, 0.0  ;;  %v4130_v41 = vmax.f32 %v3758_v11, 0.0  ;;  %v4113_v9 = vmax.f32 %v3703_v44, 0.0  ;;  %v4115_v29 = vmax.f32 %v3756_v60, 0.0  ;;  %v7111_v38 = vld [vmem:[%s7847_s4 + $0x280] sm:$0xff]  }
 0x9d6   : > { %v4129_v12 = vmax.f32 %v3707_v5, 0.0  ;;  %v4131_v36 = vmax.f32 %v3760_v6, 0.0 }
 0x9d7   : > { %v4160_v13 = vpack.c.bf16 %v4128_v4, %v4112_v7  ;;  %v4162_v37 = vpack.c.bf16 %v4130_v41, %v4114_v34  ;;  %v7112_v4 = vld [vmem:[%s7847_s4 + $0x248] sm:$0xff]  }
 0x9d8   : > { %v4161_v10 = vpack.c.bf16 %v4129_v12, %v4113_v9  ;;  %v4163_v14 = vpack.c.bf16 %v4131_v36, %v4115_v29  ;;  %v3796_v15 = vpop.f32.mrb[36].mxu1  ;;  %v3849_v16 = vpop.f32.mrb[36].mxu0  ;;  %v7113_v41 = vld [vmem:[%s7847_s4 + $0x2c8] sm:$0xff]   ;;  %v8140_v9 = vrot.slane %v8129_v59, %v3252_v26 }
 0x9d9   : > { %v3797_v17 = vadd.f32 %v3796_v15, %v8101_v1  ;;  %v3850_v18 = vadd.f32 %v3849_v16, %v8106_v3  ;;  %v3798_v30 = vpop.f32.mrb[37].mxu1  ;;  %v3851_v19 = vpop.f32.mrb[37].mxu0  ;;  %v8154_v16 = vrot.slane %v8129_v59, %v3256_v31  ;;  %v7116_v31 = vld [vmem:[%s7847_s4 + $0x250] sm:$0xff]  }
 0x9da   : > { %v3799_v20 = vadd.f32 %v3798_v30, %v8113_v33  ;;  %v3852_v23 = vadd.f32 %v3851_v19, %v8118_v35  ;;  %v3800_v24 = vpop.f32.mrb[38].mxu1  ;;  %v3853_v39 = vpop.f32.mrb[38].mxu0  ;;  %5247 = vmatprep.mubr.bf16.mxu1 %v4161_v10  ;;  %5296 = vmatprep.mubr.bf16.mxu0 %v4163_v14 }
 0x9db   : > { %v3801_v40 = vadd.f32 %v3800_v24, %v8101_v1  ;;  %v3854_v42 = vadd.f32 %v3853_v39, %v8106_v3  ;;  %v3802_v2 = vpop.f32.mrb[39].mxu1  ;;  %v3855_v43 = vpop.f32.mrb[39].mxu0  ;;  %5248 = vmatmul.mubr.bf16.gmra.mrb[64].mxu1 %v4160_v13  ;;  %5297 = vmatmul.mubr.bf16.gmra.mrb[64].mxu0 %v4162_v37  ;;  %v4084_v49 = vmax.f32 %v3797_v17, 0.0  ;;  %v4086_v50 = vmax.f32 %v3850_v18, 0.0  ;;  %v7115_v18 = vld [vmem:[%s7847_s4 + $0x288] sm:$0xff]  }
 0x9dc   : > { %v3803_v46 = vadd.f32 %v3802_v2, %v8113_v33  ;;  %v3856_v47 = vadd.f32 %v3855_v43, %v8118_v35  ;;  %v4085_v54 = vmax.f32 %v3799_v20, 0.0  ;;  %v4087_v22 = vmax.f32 %v3852_v23, 0.0 }
 0x9dd   : > { %v4100_v51 = vmax.f32 %v3801_v40, 0.0  ;;  %v4102_v48 = vmax.f32 %v3854_v42, 0.0  ;;  %v8147_v37 = vrot.slane %v8129_v59, %v3260_v28 }
 0x9de   : > { %v4101_v21 = vmax.f32 %v3803_v46, 0.0  ;;  %v4103_v58 = vmax.f32 %v3856_v47, 0.0 }
 0x9df   : > { %v4148_v44 = vpack.c.bf16 %v4100_v51, %v4084_v49  ;;  %v4150_v60 = vpack.c.bf16 %v4102_v48, %v4086_v50  ;;  %v7118_v49 = vld [vmem:[%s7847_s4 + $0x210] sm:$0xff]  }
 0x9e0   : > { %v4149_v62 = vpack.c.bf16 %v4101_v21, %v4085_v54  ;;  %v4151_v27 = vpack.c.bf16 %v4103_v58, %v4087_v22  ;;  %v3806_v63 = vpop.f32.mrb[40].mxu1  ;;  %v3859_v11 = vpop.f32.mrb[40].mxu0  ;;  %v7119_v50 = vld [vmem:[%s7847_s4 + $0x290] sm:$0xff]   ;;  %v7120_v21 = vld [vmem:[%s7847_s4 + $0x258] sm:$0xff]  }
 0x9e1   : > { %v3807_v5 = vadd.f32 %v3806_v63, %v8101_v1  ;;  %v3860_v6 = vadd.f32 %v3859_v11, %v8106_v3  ;;  %v3808_v7 = vpop.f32.mrb[41].mxu1  ;;  %v3861_v34 = vpop.f32.mrb[41].mxu0  ;;  %v7121_v58 = vld [vmem:[%s7847_s4 + $0x2d8] sm:$0xff]  }
 0x9e2   : > { %v3809_v29 = vadd.f32 %v3808_v7, %v8113_v33  ;;  %v3862_v12 = vadd.f32 %v3861_v34, %v8118_v35  ;;  %v3810_v36 = vpop.f32.mrb[42].mxu1  ;;  %v3863_v13 = vpop.f32.mrb[42].mxu0  ;;  %5337 = vmatprep.mubr.bf16.mxu1 %v4149_v62  ;;  %5386 = vmatprep.mubr.bf16.mxu0 %v4151_v27  ;;  %v7122_v7 = vld [vmem:[%s7847_s4 + $0x218] sm:$0xff]  }
 0x9e3   : > { %v3811_v10 = vadd.f32 %v3810_v36, %v8101_v1  ;;  %v3864_v26 = vadd.f32 %v3863_v13, %v8106_v3  ;;  %v3812_v14 = vpop.f32.mrb[43].mxu1  ;;  %v3865_v15 = vpop.f32.mrb[43].mxu0  ;;  %5338 = vmatmul.mubr.bf16.vlgmr.msra.gmra.mrb[68].mxu1 %v4148_v44  ;;  %5387 = vmatmul.mubr.bf16.vlgmr.msra.gmra.mrb[68].mxu0 %v4150_v60  ;;  %v7114_v1 = vld [vmem:[%s7847_s4 + $0x208] sm:$0xff]   ;;  %v8163_v3 = vrot.slane %v8129_v59, %v3264_v32  ;;  %v4116_v30 = vmax.f32 %v3807_v5, 0.0  ;;  %v7123_v34 = vld [vmem:[%s7847_s4 + $0x298] sm:$0xff]   ;;  %v7124_v36 = vld [vmem:[%s7847_s4 + $0x260] sm:$0xff]  }
 0x9e4   : > { %v3813_v17 = vadd.f32 %v3812_v14, %v8113_v33  ;;  %v3866_v28 = vadd.f32 %v3865_v15, %v8118_v35  ;;  %6531 = vmatpush3.bf16.msra.mxu1 %v7110_v0  ;;  %6559 = vmatpush3.bf16.msra.mxu0 %v7111_v38  ;;  %v4118_v19 = vmax.f32 %v3860_v6, 0.0  ;;  %v7117_v33 = vld [vmem:[%s7847_s4 + $0x2d0] sm:$0xff]   ;;  %v4117_v35 = vmax.f32 %v3809_v29, 0.0  ;;  %v7125_v13 = vld [vmem:[%s7847_s4 + $0x2e0] sm:$0xff]  }
 0x9e5   : > { %v4132_v20 = vmax.f32 %v3811_v10, 0.0  ;;  %v4134_v23 = vmax.f32 %v3864_v26, 0.0  ;;  %6532 = vmatprep.subr.bf16.mxu1 %v7112_v4  ;;  %6560 = vmatprep.subr.bf16.mxu0 %v7113_v41  ;;  %v4119_v24 = vmax.f32 %v3862_v12, 0.0 }
 0x9e6   : > { %v4133_v39 = vmax.f32 %v3813_v17, 0.0  ;;  %v4135_v40 = vmax.f32 %v3866_v28, 0.0 }
 0x9e7   : > { %v4164_v42 = vpack.c.bf16 %v4132_v20, %v4116_v30  ;;  %v4166_v2 = vpack.c.bf16 %v4134_v23, %v4118_v19  ;;  %v7126_v20 = vld [vmem:[%s7847_s4 + $0x220] sm:$0xff]  }
 0x9e8   : > { %v4165_v32 = vpack.c.bf16 %v4133_v39, %v4117_v35  ;;  %v4167_v43 = vpack.c.bf16 %v4135_v40, %v4119_v24  ;;  %6533 = vmatpush3.bf16.msra.mxu1 %v7114_v1  ;;  %6561 = vmatpush3.bf16.msra.mxu0 %v7115_v18  ;;  %v3902_v46 = vpop.f32.mrb[44].mxu1  ;;  %v3955_v47 = vpop.f32.mrb[44].mxu0  ;;  %v7127_v23 = vld [vmem:[%s7847_s4 + $0x2a0] sm:$0xff]   ;;  %v7128_v39 = vld [vmem:[%s7847_s4 + $0x268] sm:$0xff]  }
 0x9e9   : > { %v3903_v51 = vadd.f32 %v3902_v46, %v8140_v9  ;;  %v3956_v48 = vadd.f32 %v3955_v47, %v8147_v37  ;;  %v3904_v54 = vpop.f32.mrb[45].mxu1  ;;  %v3957_v22 = vpop.f32.mrb[45].mxu0  ;;  %6534 = vmatprep.subr.bf16.mxu1 %v7116_v31  ;;  %6562 = vmatprep.subr.bf16.mxu0 %v7117_v33  ;;  %v7129_v40 = vld [vmem:[%s7847_s4 + $0x2e8] sm:$0xff]   ;;  %v8198_v46 = vrot.slane %v8129_v59, %v3268_v52 }
 0x9ea   : > { %v3905_v44 = vadd.f32 %v3904_v54, %v8154_v16  ;;  %v3958_v60 = vadd.f32 %v3957_v22, %v8163_v3  ;;  %v3906_v62 = vpop.f32.mrb[46].mxu1  ;;  %v3959_v27 = vpop.f32.mrb[46].mxu0  ;;  %5345 = vmatprep.mubr.bf16.mxu1 %v4165_v32  ;;  %5394 = vmatprep.mubr.bf16.mxu0 %v4167_v43  ;;  %v8210_v54 = vrot.slane %v8129_v59, %v3272_v45  ;;  %v7131_v22 = vld [vmem:[%s7847_s4 + $0x2a8] sm:$0xff]   ;;  %v7132_v45 = vld [vmem:[%s7847_s4 + $0x270] sm:$0xff]  }
 0x9eb   : > { %v3907_v63 = vadd.f32 %v3906_v62, %v8140_v9  ;;  %v3960_v11 = vadd.f32 %v3959_v27, %v8147_v37  ;;  %v3908_v0 = vpop.f32.mrb[47].mxu1  ;;  %v3961_v38 = vpop.f32.mrb[47].mxu0  ;;  %5346 = vmatmul.mubr.bf16.gmra.mrb[72].mxu1 %v4164_v42  ;;  %5395 = vmatmul.mubr.bf16.gmra.mrb[72].mxu0 %v4166_v2  ;;  %v4088_v4 = vmax.f32 %v3903_v51, 0.0  ;;  %v4090_v41 = vmax.f32 %v3956_v48, 0.0 }
 0x9ec   : > { %v3909_v5 = vadd.f32 %v3908_v0, %v8154_v16  ;;  %v3962_v6 = vadd.f32 %v3961_v38, %v8163_v3  ;;  %6535 = vmatpush3.bf16.msra.mxu1 %v7118_v49  ;;  %6563 = vmatpush3.bf16.msra.mxu0 %v7119_v50  ;;  %v4089_v10 = vmax.f32 %v3905_v44, 0.0  ;;  %v4091_v26 = vmax.f32 %v3958_v60, 0.0 }
 0x9ed   : > { %v4104_v29 = vmax.f32 %v3907_v63, 0.0  ;;  %v4106_v12 = vmax.f32 %v3960_v11, 0.0  ;;  %6536 = vmatprep.subr.bf16.mxu1 %v7120_v21  ;;  %6564 = vmatprep.subr.bf16.mxu0 %v7121_v58  ;;  %v8205_v48 = vrot.slane %v8129_v59, %v3276_v53  ;;  %v8219_v21 = vrot.slane %v8129_v59, %v3280_v57 }
 0x9ee   : > { %v4105_v14 = vmax.f32 %v3909_v5, 0.0  ;;  %v4107_v15 = vmax.f32 %v3962_v6, 0.0  ;;  %v7134_v5 = vld [vmem:[%s7847_s4 + $0x230] sm:$0xff]  }
 0x9ef   : > { %v8183_v17 = vpack.c.bf16 %v4104_v29, %v4088_v4  ;;  %v8185_v28 = vpack.c.bf16 %v4106_v12, %v4090_v41  ;;  %v7135_v6 = vld [vmem:[%s7847_s4 + $0x2b0] sm:$0xff]   ;;  %v7136_v29 = vld [vmem:[%s7847_s4 + $0x278] sm:$0xff]  }
 0x9f0   : > { %v4153_v1 = vpack.c.bf16 %v4105_v14, %v4089_v10  ;;  %v4155_v18 = vpack.c.bf16 %v4107_v15, %v4091_v26  ;;  %6537 = vmatpush3.bf16.msra.mxu1 %v7122_v7  ;;  %6565 = vmatpush3.bf16.msra.mxu0 %v7123_v34  ;;  %v3912_v30 = vpop.f32.mrb[48].mxu1  ;;  %v3965_v19 = vpop.f32.mrb[48].mxu0  ;;  %v7137_v12 = vld [vmem:[%s7847_s4 + $0x2f8] sm:$0xff]  }
 0x9f1   : > { %v3913_v31 = vadd.f32 %v3912_v30, %v8140_v9  ;;  %v3966_v33 = vadd.f32 %v3965_v19, %v8147_v37  ;;  %v3914_v35 = vpop.f32.mrb[49].mxu1  ;;  %v3967_v24 = vpop.f32.mrb[49].mxu0  ;;  %6538 = vmatprep.subr.bf16.mxu1 %v7124_v36  ;;  %6566 = vmatprep.subr.bf16.mxu0 %v7125_v13 }
 0x9f2   : > { %v3915_v42 = vadd.f32 %v3914_v35, %v8154_v16  ;;  %v3968_v2 = vadd.f32 %v3967_v24, %v8163_v3  ;;  %v3916_v32 = vpop.f32.mrb[50].mxu1  ;;  %v3969_v43 = vpop.f32.mrb[50].mxu0  ;;  %5435 = vmatprep.mubr.bf16.mxu1 %v4153_v1  ;;  %5484 = vmatprep.mubr.bf16.mxu0 %v4155_v18 }
 0x9f3   : > { %v3917_v47 = vadd.f32 %v3916_v32, %v8140_v9  ;;  %v3970_v49 = vadd.f32 %v3969_v43, %v8147_v37  ;;  %v3918_v50 = vpop.f32.mrb[51].mxu1  ;;  %v3971_v51 = vpop.f32.mrb[51].mxu0  ;;  %v7130_v37 = vld [vmem:[%s7847_s4 + $0x228] sm:$0xff]   ;;  %v4120_v53 = vmax.f32 %v3913_v31, 0.0  ;;  %v4122_v58 = vmax.f32 %v3966_v33, 0.0 }
 0x9f4   : > { %v3919_v52 = vadd.f32 %v3918_v50, %v8154_v16  ;;  %v3972_v9 = vadd.f32 %v3971_v51, %v8163_v3  ;;  %6539 = vmatpush3.bf16.msra.mxu1 %v7126_v20  ;;  %6567 = vmatpush3.bf16.msra.mxu0 %v7127_v23  ;;  %v7133_v16 = vld [vmem:[%s7847_s4 + $0x2f0] sm:$0xff]   ;;  %v4121_v3 = vmax.f32 %v3915_v42, 0.0  ;;  %v4123_v62 = vmax.f32 %v3968_v2, 0.0  ;;  %v7138_v20 = vld [vmem:[%s7847_s4 + $0x238] sm:$0xff]  }
 0x9f5   : > { %v4136_v44 = vmax.f32 %v3917_v47, 0.0  ;;  %v4138_v60 = vmax.f32 %v3970_v49, 0.0  ;;  %6540 = vmatprep.subr.bf16.mxu1 %v7128_v39  ;;  %6568 = vmatprep.subr.bf16.mxu0 %v7129_v40  ;;  %v7139_v23 = vld [vmem:[%s7847_s4 + $0x2b8] sm:$0xff]   ;;  %v7140_v39 = vld [vmem:[%s7847_s4 + $0x340] sm:$0xff]  }
 0x9f6   : > { %v4137_v27 = vmax.f32 %v3919_v52, 0.0  ;;  %v4139_v63 = vmax.f32 %v3972_v9, 0.0  ;;  %v7141_v40 = vld [vmem:[%s7847_s4 + $0x3c0] sm:$0xff]  }
 0x9f7   : > { %v8223_v11 = vpack.c.bf16 %v4136_v44, %v4120_v53  ;;  %v8225_v25 = vpack.c.bf16 %v4138_v60, %v4122_v58  ;;  %v7142_v44 = vld [vmem:[%s7847_s4 + $0x300] sm:$0xff]  }
 0x9f8   : > { %v8227_v57 = vpack.c.bf16 %v4137_v27, %v4121_v3  ;;  %v8229_v59 = vpack.c.bf16 %v4139_v63, %v4123_v62  ;;  %6541 = vmatpush3.bf16.msra.mxu1 %v7130_v37  ;;  %6569 = vmatpush3.bf16.msra.mxu0 %v7131_v22  ;;  %v4008_v0 = vpop.f32.mrb[52].mxu1  ;;  %v4061_v38 = vpop.f32.mrb[52].mxu0  ;;  %v7143_v60 = vld [vmem:[%s7847_s4 + $0x380] sm:$0xff]   ;;  %v7144_v27 = vld [vmem:[%s7847_s4 + $0x348] sm:$0xff]  }
 0x9f9   : > { %v4009_v7 = vadd.f32 %v4008_v0, %v8198_v46  ;;  %v4062_v34 = vadd.f32 %v4061_v38, %v8205_v48  ;;  %v4010_v4 = vpop.f32.mrb[53].mxu1  ;;  %v4063_v41 = vpop.f32.mrb[53].mxu0  ;;  %6542 = vmatprep.subr.bf16.mxu1 %v7132_v45  ;;  %6570 = vmatprep.subr.bf16.mxu0 %v7133_v16  ;;  %v7145_v63 = vld [vmem:[%s7847_s4 + $0x3c8] sm:$0xff]  }
 0x9fa   : > { %v4011_v36 = vadd.f32 %v4010_v4, %v8210_v54  ;;  %v4064_v13 = vadd.f32 %v4063_v41, %v8219_v21  ;;  %v4012_v10 = vpop.f32.mrb[54].mxu1  ;;  %v4065_v26 = vpop.f32.mrb[54].mxu0 }
 0x9fb   : > { %v4013_v14 = vadd.f32 %v4012_v10, %v8198_v46  ;;  %v4066_v15 = vadd.f32 %v4065_v26, %v8205_v48  ;;  %v4014_v1 = vpop.f32.mrb[55].mxu1  ;;  %v4067_v18 = vpop.f32.mrb[55].mxu0  ;;  %v4092_v31 = vmax.f32 %v4009_v7, 0.0  ;;  %v4094_v33 = vmax.f32 %v4062_v34, 0.0 }
 0x9fc   : > { %v4015_v30 = vadd.f32 %v4014_v1, %v8210_v54  ;;  %v4068_v19 = vadd.f32 %v4067_v18, %v8219_v21  ;;  %6543 = vmatpush3.bf16.msra.mxu1 %v7134_v5  ;;  %6571 = vmatpush3.bf16.msra.mxu0 %v7135_v6  ;;  %v4093_v42 = vmax.f32 %v4011_v36, 0.0  ;;  %v4095_v2 = vmax.f32 %v4064_v13, 0.0  ;;  %v7152_v1 = vld [vmem:[%s7847_s4 + $0x358] sm:$0xff]  }
 0x9fd   : > { %v4108_v35 = vmax.f32 %v4013_v14, 0.0  ;;  %v4110_v24 = vmax.f32 %v4066_v15, 0.0  ;;  %6544 = vmatprep.subr.bf16.mxu1 %v7136_v29  ;;  %6572 = vmatprep.subr.bf16.mxu0 %v7137_v12  ;;  %v7150_v14 = vld [vmem:[%s7847_s4 + $0x310] sm:$0xff]   ;;  %v7153_v18 = vld [vmem:[%s7847_s4 + $0x3d8] sm:$0xff]  }
 0x9fe   : > { %v4109_v32 = vmax.f32 %v4015_v30, 0.0  ;;  %v4111_v43 = vmax.f32 %v4068_v19, 0.0  ;;  %v7151_v15 = vld [vmem:[%s7847_s4 + $0x390] sm:$0xff]   ;;  %v7154_v30 = vld [vmem:[%s7847_s4 + $0x318] sm:$0xff]  }
 0x9ff   : > { %v8247_v47 = vpack.c.bf16 %v4108_v35, %v4092_v31  ;;  %v8249_v49 = vpack.c.bf16 %v4110_v24, %v4094_v33  ;;  %v7155_v19 = vld [vmem:[%s7847_s4 + $0x398] sm:$0xff]   ;;  %v7160_v31 = vld [vmem:[%s7847_s4 + $0x368] sm:$0xff]  }
 0xa00   : > { %v4157_v50 = vpack.c.bf16 %v4109_v32, %v4093_v42  ;;  %v4159_v51 = vpack.c.bf16 %v4111_v43, %v4095_v2  ;;  %6545 = vmatpush3.bf16.msra.mxu1 %v7138_v20  ;;  %6573 = vmatpush3.bf16.msra.mxu0 %v7139_v23  ;;  %v4018_v52 = vpop.f32.mrb[56].mxu1  ;;  %v4071_v9 = vpop.f32.mrb[56].mxu0  ;;  %v7156_v20 = vld [vmem:[%s7847_s4 + $0x360] sm:$0xff]   ;;  %v7161_v33 = vld [vmem:[%s7847_s4 + $0x3e8] sm:$0xff]   ;;  %v7166_v42 = vld [vmem:[%s7847_s4 + $0x330] sm:$0xff]  }
 0xa01   : > { %v4019_v37 = vadd.f32 %v4018_v52, %v8198_v46  ;;  %v4072_v22 = vadd.f32 %v4071_v9, %v8205_v48  ;;  %v4020_v53 = vpop.f32.mrb[57].mxu1  ;;  %v4073_v58 = vpop.f32.mrb[57].mxu0  ;;  %6586 = vmatprep.subr.bf16.mxu1 %v7140_v39  ;;  %6614 = vmatprep.subr.bf16.mxu0 %v7141_v40  ;;  %v7157_v23 = vld [vmem:[%s7847_s4 + $0x3e0] sm:$0xff]   ;;  %v7162_v35 = vld [vmem:[%s7847_s4 + $0x328] sm:$0xff]   ;;  %v7164_v39 = vld [vmem:[%s7847_s4 + $0x370] sm:$0xff]  }
 0xa02   : > { %v4021_v45 = vadd.f32 %v4020_v53, %v8210_v54  ;;  %v4074_v16 = vadd.f32 %v4073_v58, %v8219_v21  ;;  %v4022_v3 = vpop.f32.mrb[58].mxu1  ;;  %v4075_v62 = vpop.f32.mrb[58].mxu0  ;;  %v7163_v24 = vld [vmem:[%s7847_s4 + $0x3a8] sm:$0xff]   ;;  %v7165_v40 = vld [vmem:[%s7847_s4 + $0x3f0] sm:$0xff]   ;;  %v7168_v32 = vld [vmem:[%s7847_s4 + $0x378] sm:$0xff]  }
 0xa03   : > { %v4023_v0 = vadd.f32 %v4022_v3, %v8198_v46  ;;  %v4076_v38 = vadd.f32 %v4075_v62, %v8205_v48  ;;  %5436 = vmatmul.mubr.bf16.vlgmr.msra.gmra.mrb[76].mxu1 %v8183_v17  ;;  %5485 = vmatmul.mubr.bf16.vlgmr.msra.gmra.mrb[76].mxu0 %v8185_v28  ;;  %v4024_v5 = vpop.f32.mrb[59].mxu1  ;;  %v4077_v6 = vpop.f32.mrb[59].mxu0  ;;  %v4124_v46 = vmax.f32 %v4019_v37, 0.0  ;;  %v4126_v4 = vmax.f32 %v4072_v22, 0.0  ;;  %v7146_v17 = vld [vmem:[%s7847_s4 + $0x308] sm:$0xff]   ;;  %v7167_v2 = vld [vmem:[%s7847_s4 + $0x3b0] sm:$0xff]  }
 0xa04   : > { %v4025_v7 = vadd.f32 %v4024_v5, %v8210_v54  ;;  %v4078_v34 = vadd.f32 %v4077_v6, %v8219_v21  ;;  %5443 = vmatprep.mubr.bf16.mxu1 %v8227_v57  ;;  %5492 = vmatprep.mubr.bf16.mxu0 %v8229_v59  ;;  %v7147_v28 = vld [vmem:[%s7847_s4 + $0x388] sm:$0xff]   ;;  %v4125_v29 = vmax.f32 %v4021_v45, 0.0  ;;  %v4127_v54 = vmax.f32 %v4074_v16, 0.0  ;;  %v7148_v57 = vld [vmem:[%s7847_s4 + $0x350] sm:$0xff]   ;;  %v7169_v43 = vld [vmem:[%s7847_s4 + $0x3f8] sm:$0xff]  }
 0xa05   : > { %v4140_v48 = vmax.f32 %v4023_v0, 0.0  ;;  %v4142_v41 = vmax.f32 %v4076_v38, 0.0  ;;  %6587 = vmatpush3.bf16.msra.mxu1 %v7142_v44  ;;  %6615 = vmatpush3.bf16.msra.mxu0 %v7143_v60  ;;  %v7149_v59 = vld [vmem:[%s7847_s4 + $0x3d0] sm:$0xff]   ;;  %v6160_v37 = vld [vmem:[%s1069_s29] ss:$0 sm:$0xff] }
 0xa06   : > { %v4141_v12 = vmax.f32 %v4025_v7, 0.0  ;;  %v4143_v21 = vmax.f32 %v4078_v34, 0.0  ;;  %6588 = vmatprep.subr.bf16.mxu1 %v7144_v27  ;;  %6616 = vmatprep.subr.bf16.mxu0 %v7145_v63 }
 0xa07   : > { %v4172_v36 = vpack.c.bf16 %v4140_v48, %v4124_v46  ;;  %v4174_v13 = vpack.c.bf16 %v4142_v41, %v4126_v4 }
 0xa08   : > { %v4173_v10 = vpack.c.bf16 %v4141_v12, %v4125_v29  ;;  %v4175_v26 = vpack.c.bf16 %v4143_v21, %v4127_v54 }
 0xa09   : > { %6589 = vmatpush3.bf16.msra.mxu1 %v7146_v17  ;;  %6617 = vmatpush3.bf16.msra.mxu0 %v7147_v28 }
 0xa0a   : > { %6590 = vmatprep.subr.bf16.mxu1 %v7148_v57  ;;  %6618 = vmatprep.subr.bf16.mxu0 %v7149_v59 }
 0xa0b   : > { %5444 = vmatmul.mubr.bf16.gmra.mrb[80].mxu1 %v8223_v11  ;;  %5493 = vmatmul.mubr.bf16.gmra.mrb[80].mxu0 %v8225_v25  ;;  %v7158_v11 = vld [vmem:[%s7847_s4 + $0x320] sm:$0xff]  }
 0xa0c   : > { %5533 = vmatprep.mubr.bf16.mxu1 %v4157_v50  ;;  %5582 = vmatprep.mubr.bf16.mxu0 %v4159_v51  ;;  %v7159_v25 = vld [vmem:[%s7847_s4 + $0x3a0] sm:$0xff]   ;;  %v7170_v50 = vld [vmem:[%s7847_s4 + $0x338] sm:$0xff]  }
 0xa0d   : > { %6591 = vmatpush3.bf16.msra.mxu1 %v7150_v14  ;;  %6619 = vmatpush3.bf16.msra.mxu0 %v7151_v15  ;;  %v7171_v51 = vld [vmem:[%s7847_s4 + $0x3b8] sm:$0xff]   ;;  %s8330_s4 = scalar_lea.hbm %s8448_s30, %s6305_s24 }
 0xa0e   : > { %6592 = vmatprep.subr.bf16.mxu1 %v7152_v1  ;;  %6620 = vmatprep.subr.bf16.mxu0 %v7153_v18 }
 0xa11   : > { %6593 = vmatpush3.bf16.msra.mxu1 %v7154_v30  ;;  %6621 = vmatpush3.bf16.msra.mxu0 %v7155_v19 }
 0xa12   : > { %6594 = vmatprep.subr.bf16.mxu1 %v7156_v20  ;;  %6622 = vmatprep.subr.bf16.mxu0 %v7157_v23 }
 0xa15   : > { %6595 = vmatpush3.bf16.msra.mxu1 %v7158_v11  ;;  %6623 = vmatpush3.bf16.msra.mxu0 %v7159_v25 }
 0xa16   : > { %6596 = vmatprep.subr.bf16.mxu1 %v7160_v31  ;;  %6624 = vmatprep.subr.bf16.mxu0 %v7161_v33 }
 0xa19   : > { %6597 = vmatpush3.bf16.msra.mxu1 %v7162_v35  ;;  %6625 = vmatpush3.bf16.msra.mxu0 %v7163_v24 }
 0xa1a   : > { %6598 = vmatprep.subr.bf16.mxu1 %v7164_v39  ;;  %6626 = vmatprep.subr.bf16.mxu0 %v7165_v40 }
 0xa1d   : > { %6599 = vmatpush3.bf16.msra.mxu1 %v7166_v42  ;;  %6627 = vmatpush3.bf16.msra.mxu0 %v7167_v2 }
 0xa1e   : > { %6600 = vmatprep.subr.bf16.mxu1 %v7168_v32  ;;  %6628 = vmatprep.subr.bf16.mxu0 %v7169_v43 }
 0xa21   : > { %6601 = vmatpush3.bf16.msra.mxu1 %v7170_v50  ;;  %6629 = vmatpush3.bf16.msra.mxu0 %v7171_v51 }
 0xa24   : > { %5534 = vmatmul.mubr.bf16.vlgmr.msra.gmra.mrb[84].mxu1 %v8247_v47  ;;  %5583 = vmatmul.mubr.bf16.vlgmr.msra.gmra.mrb[84].mxu0 %v8249_v49 }
 0xa25   : > { %5541 = vmatprep.mubr.bf16.mxu1 %v4173_v10  ;;  %5590 = vmatprep.mubr.bf16.mxu0 %v4175_v26 }
 0xa2c   : > { %5542 = vmatmul.mubr.bf16.gmra.mrb[88].mxu1 %v4172_v36  ;;  %5591 = vmatmul.mubr.bf16.gmra.mrb[88].mxu0 %v4174_v13 }
 0xa78   : > { %v6434_v52 = vpop.f32.mrb[60].mxu1  ;;  %v6462_v9 = vpop.f32.mrb[60].mxu0 }
 0xa79   : > { %v6435_v22 = vpop.f32.mrb[61].mxu1  ;;  %v6463_v53 = vpop.f32.mrb[61].mxu0 }
 0xa7a   : > { %v6436_v58 = vadd.f32 %v6435_v22, %v6434_v52  ;;  %v6464_v44 = vadd.f32 %v6463_v53, %v6462_v9  ;;  %v6437_v60 = vpop.f32.mrb[62].mxu1  ;;  %v6465_v45 = vpop.f32.mrb[62].mxu0 }
 0xa7b   : > { %v6438_v47 = vpop.f32.mrb[63].mxu1  ;;  %v6466_v16 = vpop.f32.mrb[63].mxu0 }
 0xa7c   : > { %v5242_v49 = vadd.f32 %v6436_v58, %v6160_v37  ;;  %v6439_v3 = vadd.f32 %v6438_v47, %v6437_v60  ;;  %v6467_v62 = vadd.f32 %v6466_v16, %v6465_v45 }
 0xa7e   : > { %v5291_v27 = vadd.f32 %v6464_v44, %v5242_v49  ;;  %v5245_v63 = vadd.f32 %v6439_v3, %v6160_v37 }
 0xa80   : > { %v5294_v0 = vadd.f32 %v6467_v62, %v5245_v63 }
 0xaae   : > { %v6440_v38 = vpop.f32.mrb[64].mxu1  ;;  %v6468_v5 = vpop.f32.mrb[64].mxu0 }
 0xaaf   : > { %v6441_v6 = vpop.f32.mrb[65].mxu1  ;;  %v6469_v7 = vpop.f32.mrb[65].mxu0 }
 0xab0   : > { %v6442_v34 = vadd.f32 %v6441_v6, %v6440_v38  ;;  %v6470_v46 = vadd.f32 %v6469_v7, %v6468_v5  ;;  %v6443_v4 = vpop.f32.mrb[66].mxu1  ;;  %v6471_v48 = vpop.f32.mrb[66].mxu0 }
 0xab1   : > { %v6444_v41 = vpop.f32.mrb[67].mxu1  ;;  %v6472_v17 = vpop.f32.mrb[67].mxu0 }
 0xab2   : > { %v5250_v28 = vadd.f32 %v6442_v34, %v6160_v37  ;;  %v6445_v29 = vadd.f32 %v6444_v41, %v6443_v4  ;;  %v6473_v54 = vadd.f32 %v6472_v17, %v6471_v48 }
 0xab4   : > { %v5299_v12 = vadd.f32 %v6470_v46, %v5250_v28  ;;  %v5253_v21 = vadd.f32 %v6445_v29, %v6160_v37 }
 0xab6   : > { %v5302_v57 = vadd.f32 %v6473_v54, %v5253_v21  ;;  %v6490_v59 = vpop.f32.mrb[68].mxu1  ;;  %v6518_v36 = vpop.f32.mrb[68].mxu0 }
 0xab7   : > { %v6491_v13 = vpop.f32.mrb[69].mxu1  ;;  %v6519_v10 = vpop.f32.mrb[69].mxu0 }
 0xab8   : > { %v6492_v26 = vadd.f32 %v6491_v13, %v6490_v59  ;;  %v6520_v14 = vadd.f32 %v6519_v10, %v6518_v36  ;;  %v6493_v15 = vpop.f32.mrb[70].mxu1  ;;  %v6521_v1 = vpop.f32.mrb[70].mxu0 }
 0xab9   : > { %v6494_v18 = vpop.f32.mrb[71].mxu1  ;;  %v6522_v30 = vpop.f32.mrb[71].mxu0 }
 0xaba   : > { %v5340_v19 = vadd.f32 %v6492_v26, %v5291_v27  ;;  %v6495_v20 = vadd.f32 %v6494_v18, %v6493_v15  ;;  %v6523_v23 = vadd.f32 %v6522_v30, %v6521_v1 }
 0xabc   : > { %v5389_v11 = vadd.f32 %v6520_v14, %v5340_v19  ;;  %v5343_v25 = vadd.f32 %v6495_v20, %v5294_v0 }
 0xabe   : > { %v5392_v31 = vadd.f32 %v6523_v23, %v5343_v25  ;;  %v6496_v33 = vpop.f32.mrb[72].mxu1  ;;  %v6524_v35 = vpop.f32.mrb[72].mxu0 }
 0xabf   : > { %v6497_v24 = vpop.f32.mrb[73].mxu1  ;;  %v6525_v39 = vpop.f32.mrb[73].mxu0 }
 0xac0   : > { %v6498_v40 = vadd.f32 %v6497_v24, %v6496_v33  ;;  %v6526_v42 = vadd.f32 %v6525_v39, %v6524_v35  ;;  %v6499_v2 = vpop.f32.mrb[74].mxu1  ;;  %v6527_v32 = vpop.f32.mrb[74].mxu0 }
 0xac1   : > { %v6500_v43 = vpop.f32.mrb[75].mxu1  ;;  %v6528_v50 = vpop.f32.mrb[75].mxu0 }
 0xac2   : > { %v5348_v51 = vadd.f32 %v6498_v40, %v5299_v12  ;;  %v6501_v52 = vadd.f32 %v6500_v43, %v6499_v2  ;;  %v6529_v9 = vadd.f32 %v6528_v50, %v6527_v32 }
 0xac4   : > { %v5397_v37 = vadd.f32 %v6526_v42, %v5348_v51  ;;  %v5351_v22 = vadd.f32 %v6501_v52, %v5302_v57 }
 0xac6   : > { %v5400_v53 = vadd.f32 %v6529_v9, %v5351_v22 }
 0xad6   : > { %v6546_v58 = vpop.f32.mrb[76].mxu1  ;;  %v6574_v44 = vpop.f32.mrb[76].mxu0 }
 0xad7   : > { %v6547_v60 = vpop.f32.mrb[77].mxu1  ;;  %v6575_v45 = vpop.f32.mrb[77].mxu0 }
 0xad8   : > { %v6548_v47 = vadd.f32 %v6547_v60, %v6546_v58  ;;  %v6576_v16 = vadd.f32 %v6575_v45, %v6574_v44  ;;  %v6549_v49 = vpop.f32.mrb[78].mxu1  ;;  %v6577_v3 = vpop.f32.mrb[78].mxu0 }
 0xad9   : > { %v6550_v62 = vpop.f32.mrb[79].mxu1  ;;  %v6578_v27 = vpop.f32.mrb[79].mxu0 }
 0xada   : > { %v5438_v63 = vadd.f32 %v6548_v47, %v5389_v11  ;;  %v6551_v0 = vadd.f32 %v6550_v62, %v6549_v49  ;;  %v6579_v38 = vadd.f32 %v6578_v27, %v6577_v3 }
 0xadc   : > { %v5487_v5 = vadd.f32 %v6576_v16, %v5438_v63  ;;  %v5441_v6 = vadd.f32 %v6551_v0, %v5392_v31 }
 0xade   : > { %v5490_v7 = vadd.f32 %v6579_v38, %v5441_v6  ;;  %v6552_v34 = vpop.f32.mrb[80].mxu1  ;;  %v6580_v46 = vpop.f32.mrb[80].mxu0 }
 0xadf   : > { %v6553_v4 = vpop.f32.mrb[81].mxu1  ;;  %v6581_v48 = vpop.f32.mrb[81].mxu0 }
 0xae0   : > { %v6554_v41 = vadd.f32 %v6553_v4, %v6552_v34  ;;  %v6582_v17 = vadd.f32 %v6581_v48, %v6580_v46  ;;  %v6555_v28 = vpop.f32.mrb[82].mxu1  ;;  %v6583_v29 = vpop.f32.mrb[82].mxu0 }
 0xae1   : > { %v6556_v54 = vpop.f32.mrb[83].mxu1  ;;  %v6584_v12 = vpop.f32.mrb[83].mxu0 }
 0xae2   : > { %v5446_v21 = vadd.f32 %v6554_v41, %v5397_v37  ;;  %v6557_v57 = vadd.f32 %v6556_v54, %v6555_v28  ;;  %v6585_v59 = vadd.f32 %v6584_v12, %v6583_v29 }
 0xae4   : > { %v5495_v36 = vadd.f32 %v6582_v17, %v5446_v21  ;;  %v5449_v13 = vadd.f32 %v6557_v57, %v5400_v53 }
 0xae6   : > { %v5498_v10 = vadd.f32 %v6585_v59, %v5449_v13 }
 0xaf7   : > { %v6602_v26 = vpop.f32.mrb[84].mxu1  ;;  %v6630_v14 = vpop.f32.mrb[84].mxu0 }
 0xaf8   : > { %v6603_v15 = vpop.f32.mrb[85].mxu1  ;;  %v6631_v1 = vpop.f32.mrb[85].mxu0 }
 0xaf9   : > { %v6604_v18 = vadd.f32 %v6603_v15, %v6602_v26  ;;  %v6632_v30 = vadd.f32 %v6631_v1, %v6630_v14  ;;  %v6605_v19 = vpop.f32.mrb[86].mxu1  ;;  %v6633_v20 = vpop.f32.mrb[86].mxu0 }
 0xafa   : > { %v6606_v23 = vpop.f32.mrb[87].mxu1  ;;  %v6634_v11 = vpop.f32.mrb[87].mxu0 }
 0xafb   : > { %v5536_v25 = vadd.f32 %v6604_v18, %v5487_v5  ;;  %v6607_v31 = vadd.f32 %v6606_v23, %v6605_v19  ;;  %v6635_v33 = vadd.f32 %v6634_v11, %v6633_v20  ;;  %v6289_v11 = vld [vmem:[%s1072_s0] ss:$0 sm:$0xff]  ;;  %s8338_s0 = scalar_lea.sflag [#allocation3], %s977_s5 }
 0xafd   : > { %v5585_v35 = vadd.f32 %v6632_v30, %v5536_v25  ;;  %v5539_v24 = vadd.f32 %v6607_v31, %v5490_v7 }
 0xaff   : > { %v5588_v39 = vadd.f32 %v6635_v33, %v5539_v24  ;;  %v6608_v40 = vpop.f32.mrb[88].mxu1  ;;  %v6636_v42 = vpop.f32.mrb[88].mxu0  ;;  %v5599_v2 = vadd.f32 %v5585_v35, %v7873_v61  ;;  %v6290_v33 = vld [vmem:[%s1075_s26] ss:$0 sm:$0xff]  ;;  %s7232_s26 = sshll.u32 %s7313_s6, 4  ;;  %s7233_s26 = int_to_ptr.vmem [resolvable:$false] %s7232_s26 }
 0xb00   : > { %v6609_v32 = vpop.f32.mrb[89].mxu1  ;;  %v6637_v43 = vpop.f32.mrb[89].mxu0  ;;  %s7234_s2 = scalar_lea.vmem %s7233_s26, 1024  ;;  %p7235_p1 = scmp.lt.s32.totalorder %s8332_s22, %s7233_s26 }
 0xb01   : > { %v6610_v50 = vadd.f32 %v6609_v32, %v6608_v40  ;;  %v6638_v51 = vadd.f32 %v6637_v43, %v6636_v42  ;;  %v6611_v52 = vpop.f32.mrb[90].mxu1  ;;  %v6639_v9 = vpop.f32.mrb[90].mxu0  ;;  %v5605_v37 = vsel %vm1101_vm0, %v5599_v2, 0.0  ;;  %v5600_v22 = vadd.f32 %v5588_v39, %v7869_v8  ;;  %p7236_p2 = scmp.lt.s32.totalorder %s7234_s2, %s7228_s23 }
 0xb02   : > { %v6612_v53 = vpop.f32.mrb[91].mxu1  ;;  %v6640_v58 = vpop.f32.mrb[91].mxu0  ;;  %5606 = vadd.xlane.f32.xlu1 %v5605_v37 }
 0xb03   : > { %v5544_v44 = vadd.f32 %v6610_v50, %v5495_v36  ;;  %v6613_v60 = vadd.f32 %v6612_v53, %v6611_v52  ;;  %v6641_v45 = vadd.f32 %v6640_v58, %v6639_v9  ;;  %v5608_v47 = vsel %vm1101_vm0, %v5600_v22, 0.0  ;;  %p7237_p3 = por %p7236_p2, %p7235_p1 }
 0xb04   : > { %5609 = vadd.xlane.f32.xlu0 %v5608_v47 }
 0xb05   : > { %v5593_v61 = vadd.f32 %v6638_v51, %v5544_v44  ;;  %v5547_v16 = vadd.f32 %v6613_v60, %v5498_v10  ;;  %p7238_p5 = pnand %p7237_p3, %p7231_p0 }
 0xb07   : > { %v5596_v49 = vadd.f32 %v6641_v45, %v5547_v16  ;;  %v5601_v3 = vadd.f32 %v5593_v61, %v7902_v55 }
 0xb09   : > { %v5611_v62 = vsel %vm1101_vm0, %v5601_v3, 0.0  ;;  %v5602_v27 = vadd.f32 %v5596_v49, %v7905_v56 }
 0xb0a   : > { %5612 = vadd.xlane.f32.xlu1 %v5611_v62 }
 0xb0b   : > { %v5614_v8 = vsel %vm1101_vm0, %v5602_v27, 0.0 }
 0xb0c   : > { %5615 = vadd.xlane.f32.xlu0 %v5614_v8 }
 0xb8f   : > { %v5607_v63 = vpop.xlane.xlu1 %5606 }
 0xb90   : > { %v5617_v0 = vmul.f32 0.015625, %v5607_v63 }
 0xb91   : > { %v5610_v38 = vpop.xlane.xlu0 %5609 }
 0xb92   : > { %v5621_v5 = vsub.f32 %v5599_v2, %v5617_v0  ;;  %v5618_v6 = vmul.f32 0.015625, %v5610_v38 }
 0xb94   : > { %v5622_v7 = vsub.f32 %v5600_v22, %v5618_v6  ;;  %v5625_v34 = vmul.f32 %v5621_v5, %v5621_v5 }
 0xb96   : > { %v5629_v46 = vsel %vm1101_vm0, %v5625_v34, 0.0  ;;  %v5626_v4 = vmul.f32 %v5622_v7, %v5622_v7 }
 0xb97   : > { %5630 = vadd.xlane.f32.xlu1 %v5629_v46  ;;  %v5613_v55 = vpop.xlane.xlu1 %5612 }
 0xb98   : > { %v5619_v48 = vmul.f32 0.015625, %v5613_v55  ;;  %v5632_v41 = vsel %vm1101_vm0, %v5626_v4, 0.0 }
 0xb99   : > { %5633 = vadd.xlane.f32.xlu0 %v5632_v41  ;;  %v5616_v56 = vpop.xlane.xlu0 %5615 }
 0xb9a   : > { %v5623_v17 = vsub.f32 %v5601_v3, %v5619_v48  ;;  %v5620_v28 = vmul.f32 0.015625, %v5616_v56 }
 0xb9c   : > { %v5624_v29 = vsub.f32 %v5602_v27, %v5620_v28  ;;  %v5627_v54 = vmul.f32 %v5623_v17, %v5623_v17 }
 0xb9e   : > { %v5635_v12 = vsel %vm1101_vm0, %v5627_v54, 0.0  ;;  %v5628_v21 = vmul.f32 %v5624_v29, %v5624_v29 }
 0xb9f   : > { %5636 = vadd.xlane.f32.xlu1 %v5635_v12 }
 0xba0   : > { %v5638_v57 = vsel %vm1101_vm0, %v5628_v21, 0.0 }
 0xba1   : > { %5639 = vadd.xlane.f32.xlu0 %v5638_v57 }
 0xc24   : > { %v5631_v59 = vpop.xlane.xlu1 %5630 }
 0xc25   : > { %v5641_v36 = vmul.f32 0.015625, %v5631_v59 }
 0xc26   : > { %v5634_v13 = vpop.xlane.xlu0 %5633 }
 0xc27   : > { %v5645_v10 = vadd.f32 1e-05, %v5641_v36  ;;  %v5642_v26 = vmul.f32 0.015625, %v5634_v13 }
 0xc29   : > { %7220 = vrsqrt.f32 %v5645_v10  ;;  %v5646_v14 = vadd.f32 1e-05, %v5642_v26 }
 0xc2b   : > { %7222 = vrsqrt.f32 %v5646_v14 }
 0xc2c   : > { %v5637_v15 = vpop.xlane.xlu1 %5636 }
 0xc2d   : > { %v5643_v1 = vmul.f32 0.015625, %v5637_v15 }
 0xc2e   : > { %v5640_v18 = vpop.xlane.xlu0 %5639 }
 0xc2f   : > { %v5647_v30 = vadd.f32 1e-05, %v5643_v1  ;;  %v5644_v19 = vmul.f32 0.015625, %v5640_v18 }
 0xc31   : > { %7224 = vrsqrt.f32 %v5647_v30  ;;  %v5648_v20 = vadd.f32 1e-05, %v5644_v19 }
 0xc33   : > { %v7221_v23 = vpop.eup %7220  ;;  %7226 = vrsqrt.f32 %v5648_v20 }
 0xc34   : > { %v5653_v25 = vmul.f32 %v7221_v23, %v5621_v5 }
 0xc35   : > { %v7223_v31 = vpop.eup %7222 }
 0xc36   : > { %v5663_v35 = vmul.f32 %v6289_v11, %v5653_v25  ;;  %v5654_v24 = vmul.f32 %v7223_v31, %v5622_v7 }
 0xc38   : > { %v5673_v39 = vadd.f32 %v6290_v33, %v5663_v35  ;;  %v5664_v40 = vmul.f32 %v6289_v11, %v5654_v24 }
 0xc3a   : > { %v5674_v42 = vadd.f32 %v6290_v33, %v5664_v40  ;;  %5677 = vst.msk [vmem:[%s979_s25] sm:$0xff] %vm1101_vm0, %v5673_v39 }
 0xc3b   : > { %v7225_v2 = vpop.eup %7224 }
 0xc3c   : > { %v5655_v32 = vmul.f32 %v7225_v2, %v5623_v17  ;;  %5678 = vst.msk [vmem:[%s979_s25 + $0x8] sm:$0xff] %vm1101_vm0, %v5674_v42 }
 0xc3d   : > { %v7227_v43 = vpop.eup %7226 }
 0xc3e   : > { %v5665_v50 = vmul.f32 %v6289_v11, %v5655_v32  ;;  %v5656_v51 = vmul.f32 %v7227_v43, %v5624_v29 }
 0xc40   : > { %v5675_v52 = vadd.f32 %v6290_v33, %v5665_v50  ;;  %v5666_v9 = vmul.f32 %v6289_v11, %v5656_v51 }
 0xc42   : > { %v5676_v37 = vadd.f32 %v6290_v33, %v5666_v9  ;;  %5679 = vst.msk [vmem:[%s979_s25 + $0x10] sm:$0xff] %vm1101_vm0, %v5675_v52 }
 0xc44   : > { %5680 = vst.msk [vmem:[%s979_s25 + $0x18] sm:$0xff] %vm1101_vm0, %v5676_v37 }
 0xc45   : > { %7241 = shalt.err (!%p7238_p5)
}
 0xc46   : > { %s7242_s5 = scalar_lea.hbm %s8330_s4, 512  ;;  %s7246_s24 = scalar_lea.hbm %s8449_s21, 1024 }
 0xc47   : > { %p7243_p6 = scmp.ne.s32.totalorder %s8330_s4, %s7242_s5  ;;  %p7247_p10 = scmp.lt.u32.totalorder %s8330_s4, %s8449_s21 }
 0xc48   : > { %p7248_p11 = scmp.lt.u32.totalorder %s7246_s24, %s7242_s5  ;;  %p7250_p13 = scmp.lt.u32.totalorder %s7242_s5, %s8330_s4 }
 0xc49   : > { %p7244_p7 = pnand %p7243_p6, %p7471_p4 }
 0xc4a   : > { %p7249_p12 = por %p7248_p11, %p7247_p10 }
 0xc4b   : > { %p7245_p9 = pneg %p7244_p7 }
 0xc4c   : > { %p7251_p0 = por %p7250_p13, %p7249_p12 }
 0xc4e   : > { %p7252_p1 = pnand %p7251_p0, %p7245_p9 }
 0xc50   : > { %7255 = shalt.err (!%p7252_p1)
}
 0xc51   : > { %s7314_s30 = smov 128   ;;  %s7315_s23 = smov 8  }
 0xc52   : > { %6982 = dma.vmem_to_hbm [thread:$0]  (%p7471_p4), %s8332_s22, 512, %s8330_s4, %s8338_s0, %s7314_s30, %s7314_s30, %s7315_s23  }
 0xc53 PF: > { %s8450_s6 = sld [smem:[#allocation9_spill]]  ;;  %s8451_s26 = sld [smem:[#allocation5_spill]] }
 0xc59   : > { %p6988_p2 = scmp.ge.s32.totalorder %s8450_s6, 2  ;;  %s5712_s1 = sand.u32 1, %s8451_s26  }
 0xc5a   : > { %s5713_s5 = scalar_lea.sflag [#allocation3], %s5712_s1 }
 0xc5b   : > { %p6985_p3 = pnand %p6988_p2, %p7478_p8 }
 0xc5d   : > { %7281 = dma.done.wait (!%p6985_p3), %s5713_s5, 512  }
 0xc5e   : > { %7283 = vsyncadd (!%p6985_p3), %s5713_s5, 4294966784  ;;  %s35_s0 = sadd.s32 1, %s8450_s6   ;;  %s8453_s25 = sld [smem:[#allocation6_spill]] }
 0xc5f   : > { %p32_p5 = scmp.ge.s32.totalorder %s35_s0, 4   ;;  %s8454_s29 = sld [smem:[#allocation13_spill]] }
 0xc60   : > { %s8455_s30 = sld [smem:[#allocation8_spill]]  ;;  %s8456_s4 = sld [smem:[#allocation10_spill]] }
 0xc61   : > { %s8457_s3 = smov %s7290_s28  ;;  %34 = sbr.rel (!%p32_p5) target bundleno = 14 (0xe), region = 206 }
 0xc64   : > { %s8458_s28 = smov %s8453_s25 }
 0xc68   :  { %5718 = vsyncpa [#allocation3], 1 }
 0xc69   :  { %5720 = vsyncpa [#allocation3 + $0x1], 1 }

</bundles_post_ra>
